<compile_context>
chip_gen: v7x
topology: tpu7x:2x2x1
jax: 0.10.0
libtpu: 0.0.40
codegen_flags: <defaults>
</compile_context>

<pallas_src>
import functools

import jax
import jax.numpy as jnp
from jax.experimental import pallas as pl
from jax.experimental.pallas import tpu as pltpu


# ----------------------------- Pallas kernel --------------------------------
def _i3d_stream_kernel(p_ref, w_ref, b_ref, o_ref, *, inv_m):
    """One grid step == G frame-stacks of one I3D stream (RGB or Flow).

    p_ref: (G, M, K) bf16  im2col patches, true (unpadded) K; Mosaic pads
                           lanes/sublanes in VMEM only.
    w_ref: (K, N)    bf16  flattened 3D conv-stem weights (resident).
    b_ref: (1, N)    f32   conv bias (resident).
    o_ref: (G, 1, N) f32   per-stack pooled features.
    """
    w = w_ref[...]                      # hoisted: loaded once per grid step
    b = b_ref[...]
    G = p_ref.shape[0]
    for g in range(G):                  # static unroll; G is small by design
        # MXU: bf16 x bf16 -> f32 accumulation.
        acts = jnp.dot(p_ref[g], w, preferred_element_type=jnp.float32)  # (M,N)
        acts = jnp.maximum(acts + b, 0.0)             # bias + ReLU in f32 (VPU)
        # Spatio-temporal average pool: sublane reduction (XLU), no pool matrix.
        o_ref[g] = jnp.sum(acts, axis=0, keepdims=True) * inv_m


# ------------------------------ JAX glue -------------------------------------
def _round_up(x, m):
    return ((x + m - 1) // m) * m


def _choose_group(n_stacks, rows_per_stack, target_rows=2048):
    """Largest divisor of n_stacks whose block stays near `target_rows` rows."""
    g_max = max(1, min(n_stacks, target_rows // max(rows_per_stack, 1)))
    for g in range(g_max, 0, -1):
        if n_stacks % g == 0:
            return g
    return 1


def _stream_features(patches, w_flat, bias):
    """patches: (n_stacks, M, K) bf16 -> (n_stacks, N) f32 pooled features."""
    n_stacks, M, K = patches.shape
    N = w_flat.shape[-1]
    G = _choose_group(n_stacks, M)

    # Rough per-step VMEM estimate (double-buffered patch tile + resident
    # weights/bias + one f32 activation tile); raise the scoped-VMEM limit
    # only when the conservative 16 MiB default (v5e) would be exceeded.
    k_lanes = _round_up(K, 128)
    m_sub = _round_up(M, 16)
    patch_block = G * m_sub * k_lanes * 2
    est = 2 * patch_block + 2 * k_lanes * N * 2 + m_sub * N * 4 + (2 << 20)
    cp_kwargs = dict(dimension_semantics=("parallel",))
    if est > (14 << 20):
        cp_kwargs["vmem_limit_bytes"] = min(2 * est, 60 << 20)

    out = pl.pallas_call(
        functools.partial(_i3d_stream_kernel, inv_m=1.0 / M),
        out_shape=jax.ShapeDtypeStruct((n_stacks, 1, N), jnp.float32),
        grid=(n_stacks // G,),
        in_specs=[
            pl.BlockSpec((G, M, K), lambda g: (g, 0, 0)),   # tiled over stacks
            pl.BlockSpec((K, N), lambda g: (0, 0)),         # resident weights
            pl.BlockSpec((1, N), lambda g: (0, 0)),         # resident bias
        ],
        out_specs=pl.BlockSpec((G, 1, N), lambda g: (g, 0, 0)),
        compiler_params=pltpu.CompilerParams(**cp_kwargs),
    )(patches, w_flat, bias)
    return out.reshape(n_stacks, N)


def extract_patches_3d(x, kt, kh, kw, st, sh, sw):
    """x: (S, T, H, W, C) -> (S, T'*H'*W', kt*kh*kw*C) im2col (VALID, strided)."""
    S, T, H, W, C = x.shape
    To = (T - kt) // st + 1
    Ho = (H - kh) // sh + 1
    Wo = (W - kw) // sw + 1
    taps = []
    for dt in range(kt):
        for dh in range(kh):
            for dw in range(kw):
                sub = x[:, dt:dt + To * st:st,
                          dh:dh + Ho * sh:sh,
                          dw:dw + Wo * sw:sw, :]          # (S, To, Ho, Wo, C)
                taps.append(sub)
    p = jnp.stack(taps, axis=-2)                          # (S, To, Ho, Wo, k, C)
    return p.reshape(S, To * Ho * Wo, kt * kh * kw * C)


@functools.partial(jax.jit, static_argnames=("conv_cfg",))
def i3d_batched_forward(indices, rgb_all, flow_all,
                        w_rgb, b_rgb, w_flow, b_flow, *, conv_cfg):
    """Fused per-batch forward: gather videos by `indices`, cast to bf16,
    im2col both streams, and run one Pallas kernel per stream.
    Returns ((V,S,N) rgb, (V,S,N) flow)."""
    kt, kh, kw, st, sh, sw = conv_cfg

    # bf16 BEFORE im2col: halves the XLA-side patch intermediate in HBM.
    rgb_sel = jnp.take(rgb_all, indices, axis=0).astype(jnp.bfloat16)
    flow_sel = jnp.take(flow_all, indices, axis=0).astype(jnp.bfloat16)
    V, S = rgb_sel.shape[0], rgb_sel.shape[1]
    n_stacks = V * S
    rgb_flat = rgb_sel.reshape((n_stacks,) + rgb_sel.shape[2:])
    flow_flat = flow_sel.reshape((n_stacks,) + flow_sel.shape[2:])

    # im2col fused into the same jit; true K per stream (no HBM zero-padding).
    p_rgb = extract_patches_3d(rgb_flat, kt, kh, kw, st, sh, sw)
    p_flow = extract_patches_3d(flow_flat, kt, kh, kw, st, sh, sw)

    N = w_rgb.shape[-1]
    w_rgb_f = w_rgb.reshape(-1, N).astype(jnp.bfloat16)
    w_flow_f = w_flow.reshape(-1, N).astype(jnp.bfloat16)

    rgb_feats = _stream_features(p_rgb, w_rgb_f, b_rgb.astype(jnp.float32))
    flow_feats = _stream_features(p_flow, w_flow_f, b_flow.astype(jnp.float32))
    return rgb_feats.reshape(V, S, N), flow_feats.reshape(V, S, N)


def stream_forward_ref(stacks, w, b, conv_cfg):
    """Pure-JAX reference (same numerics: bf16 im2col/weights, f32 accumulation,
    f32 bias/ReLU/mean) for correctness checking."""
    kt, kh, kw, st, sh, sw = conv_cfg
    patches = extract_patches_3d(stacks.astype(jnp.bfloat16),
                                 kt, kh, kw, st, sh, sw)
    K = patches.shape[-1]
    w_flat = w.reshape(K, w.shape[-1]).astype(jnp.bfloat16)
    acc = jnp.einsum('smk,kn->smn', patches, w_flat,
                     preferred_element_type=jnp.float32)
    acc = jnp.maximum(acc + b[None].astype(jnp.float32), 0.0)
    return jnp.mean(acc, axis=1)


class ExtractI3DPallas:
    """Mirrors ExtractI3D.forward: selects videos by `indices` and produces
    {'rgb': (S, F), 'flow': (S, F)} features per video."""

    def __init__(self, key, feat_dim=128, kt=3, kh=3, kw=3, st=1, sh=2, sw=2):
        self.conv_cfg = (kt, kh, kw, st, sh, sw)
        k1, k2, k3, k4 = jax.random.split(key, 4)
        # I3D RGB stem weights (Cin=3) and I3D Flow stem weights (Cin=2)
        self.w_rgb = 0.05 * jax.random.normal(k1, (kt, kh, kw, 3, feat_dim),
                                              jnp.float32)
        self.b_rgb = 0.05 * jax.random.normal(k2, (1, feat_dim), jnp.float32)
        self.w_flow = 0.05 * jax.random.normal(k3, (kt, kh, kw, 2, feat_dim),
                                               jnp.float32)
        self.b_flow = 0.05 * jax.random.normal(k4, (1, feat_dim), jnp.float32)

    def forward(self, indices, video_rgb_stacks, video_flow_stacks):
        # TODO(synk): ffmpeg frame extraction, PWCNet optical flow, tqdm and
        # np.save/shutil side effects have no Pallas equivalent; frame / flow
        # stacks are provided directly as synthetic inputs.
        rgb_all = (jnp.stack(video_rgb_stacks)
                   if isinstance(video_rgb_stacks, (list, tuple))
                   else video_rgb_stacks)
        flow_all = (jnp.stack(video_flow_stacks)
                    if isinstance(video_flow_stacks, (list, tuple))
                    else video_flow_stacks)
        idx = jnp.asarray(indices, jnp.int32)
        rgb_feats, flow_feats = i3d_batched_forward(
            idx, rgb_all, flow_all,
            self.w_rgb, self.b_rgb, self.w_flow, self.b_flow,
            conv_cfg=self.conv_cfg)
        return [{'rgb': rgb_feats[v], 'flow': flow_feats[v]}
                for v in range(rgb_feats.shape[0])]


# -------------------------------- main ----------------------------------------
if __name__ == "__main__":
    key = jax.random.PRNGKey(0)
    k_model, k_rgb0, k_fl0, k_rgb1, k_fl1 = jax.random.split(key, 5)

    # Small shapes: 2 "videos", 4 frame stacks each, stack of T=8 frames,
    # 16x16 spatial, RGB (C=3) and flow (C=2) streams, 128-d features.
    S, T, H, W = 4, 8, 16, 16
    model = ExtractI3DPallas(k_model, feat_dim=128)

    video_rgb = [
        jax.random.uniform(k_rgb0, (S, T, H, W, 3), jnp.float32),
        jax.random.uniform(k_rgb1, (S, T, H, W, 3), jnp.float32),
    ]
    video_flow = [
        jax.random.normal(k_fl0, (S, T, H, W, 2), jnp.float32),
        jax.random.normal(k_fl1, (S, T, H, W, 2), jnp.float32),
    ]

    indices = jnp.array([0, 1], dtype=jnp.int32)
    feats_list = model.forward(indices, video_rgb, video_flow)

    # Block on results and check against pure-JAX reference.
    ok = True
    for i, feats in zip([0, 1], feats_list):
        rgb = jax.block_until_ready(feats['rgb'])
        flow = jax.block_until_ready(feats['flow'])
        rgb_ref = stream_forward_ref(video_rgb[i], model.w_rgb, model.b_rgb,
                                     model.conv_cfg)
        flow_ref = stream_forward_ref(video_flow[i], model.w_flow, model.b_flow,
                                      model.conv_cfg)
        ok &= bool(jnp.allclose(rgb, rgb_ref, atol=2e-4, rtol=2e-4))
        ok &= bool(jnp.allclose(flow, flow_ref, atol=2e-4, rtol=2e-4))
        assert rgb.shape == (S, 128) and flow.shape == (S, 128)

    if ok:
        print("KERNEL_OK")
    else:
        print("KERNEL_MISMATCH")
</pallas_src>

<mosaic_0001>
module attributes {stable_mosaic.version = 11 : i64} {
  func.func @_i3d_stream_kernel(%arg0: i32, %arg1: memref<4x294x81xbf16, #tpu.memory_space<vmem>>, %arg2: memref<81x128xbf16, #tpu.memory_space<vmem>>, %arg3: memref<1x128xf32, #tpu.memory_space<vmem>>, %arg4: memref<4x1x128xf32, #tpu.memory_space<vmem>>) attributes {dimension_semantics = [#tpu.dimension_semantics<parallel>], iteration_bounds = array<i64: 2>, scalar_prefetch = 0 : i64, scratch_operands = 0 : i64, tpu.core_type = #tpu.core_type<tc>, window_params = [{transform_indices = @transform_0, window_bounds = array<i64: 4, 294, 81>}, {pipeline_mode = #tpu.pipeline_mode<synchronous>, transform_indices = @transform_1, window_bounds = array<i64: 81, 128>}, {pipeline_mode = #tpu.pipeline_mode<synchronous>, transform_indices = @transform_2, window_bounds = array<i64: 1, 128>}, {transform_indices = @transform_3, window_bounds = array<i64: 4, 1, 128>}]} {
    %c0 = arith.constant 0 : index
    %c0_0 = arith.constant 0 : index
    %0 = vector.load %arg2[%c0, %c0_0] : memref<81x128xbf16, #tpu.memory_space<vmem>>, vector<81x128xbf16>
    %c0_1 = arith.constant 0 : index
    %c0_2 = arith.constant 0 : index
    %1 = vector.load %arg3[%c0_1, %c0_2] : memref<1x128xf32, #tpu.memory_space<vmem>>, vector<1x128xf32>
    %c0_3 = arith.constant 0 : index
    %c0_4 = arith.constant 0 : index
    %c0_5 = arith.constant 0 : index
    %2 = vector.load %arg1[%c0_3, %c0_4, %c0_5] : memref<4x294x81xbf16, #tpu.memory_space<vmem>>, vector<1x294x81xbf16>
    %3 = vector.shape_cast %2 : vector<1x294x81xbf16> to vector<294x81xbf16>
    %cst = arith.constant dense<0.000000e+00> : vector<294x128xf32>
    %4 = tpu.matmul %3, %0, %cst {dimension_numbers = #tpu.dot_dimension_numbers<[1], [0], [0], [1], [0, 0, 1, 1], [], []>} : vector<294x81xbf16>, vector<81x128xbf16>, vector<294x128xf32> -> vector<294x128xf32>
    %5 = vector.broadcast %1 : vector<1x128xf32> to vector<294x128xf32>
    %6 = arith.addf %4, %5 : vector<294x128xf32>
    %cst_6 = arith.constant 0.000000e+00 : f32
    %7 = vector.broadcast %cst_6 : f32 to vector<294x128xf32>
    %8 = arith.maximumf %6, %7 : vector<294x128xf32>
    %cst_7 = arith.constant dense<0.000000e+00> : vector<128xf32>
    %9 = vector.multi_reduction <add>, %8, %cst_7 [0] : vector<294x128xf32> to vector<128xf32>
    %10 = vector.shape_cast %9 : vector<128xf32> to vector<1x128xf32>
    %cst_8 = arith.constant 0.00340136047 : f32
    %11 = vector.broadcast %cst_8 : f32 to vector<1x128xf32>
    %12 = arith.mulf %10, %11 : vector<1x128xf32>
    %c0_9 = arith.constant 0 : index
    %c0_10 = arith.constant 0 : index
    %c0_11 = arith.constant 0 : index
    %13 = vector.load %arg4[%c0_9, %c0_10, %c0_11] : memref<4x1x128xf32, #tpu.memory_space<vmem>>, vector<1x1x128xf32>
    %14 = vector.shape_cast %13 : vector<1x1x128xf32> to vector<1x128xf32>
    %15 = vector.shape_cast %12 : vector<1x128xf32> to vector<1x1x128xf32>
    tpu.vector_store %arg4[%c0_9, %c0_10, %c0_11], %15 {strides = array<i32>} : memref<4x1x128xf32, #tpu.memory_space<vmem>>, vector<1x1x128xf32>,
    %c1 = arith.constant 1 : index
    %c0_12 = arith.constant 0 : index
    %c0_13 = arith.constant 0 : index
    %16 = vector.load %arg1[%c1, %c0_12, %c0_13] : memref<4x294x81xbf16, #tpu.memory_space<vmem>>, vector<1x294x81xbf16>
    %17 = vector.shape_cast %16 : vector<1x294x81xbf16> to vector<294x81xbf16>
    %cst_14 = arith.constant dense<0.000000e+00> : vector<294x128xf32>
    %18 = tpu.matmul %17, %0, %cst_14 {dimension_numbers = #tpu.dot_dimension_numbers<[1], [0], [0], [1], [0, 0, 1, 1], [], []>} : vector<294x81xbf16>, vector<81x128xbf16>, vector<294x128xf32> -> vector<294x128xf32>
    %19 = vector.broadcast %1 : vector<1x128xf32> to vector<294x128xf32>
    %20 = arith.addf %18, %19 : vector<294x128xf32>
    %cst_15 = arith.constant 0.000000e+00 : f32
    %21 = vector.broadcast %cst_15 : f32 to vector<294x128xf32>
    %22 = arith.maximumf %20, %21 : vector<294x128xf32>
    %cst_16 = arith.constant dense<0.000000e+00> : vector<128xf32>
    %23 = vector.multi_reduction <add>, %22, %cst_16 [0] : vector<294x128xf32> to vector<128xf32>
    %24 = vector.shape_cast %23 : vector<128xf32> to vector<1x128xf32>
    %cst_17 = arith.constant 0.00340136047 : f32
    %25 = vector.broadcast %cst_17 : f32 to vector<1x128xf32>
    %26 = arith.mulf %24, %25 : vector<1x128xf32>
    %c1_18 = arith.constant 1 : index
    %c0_19 = arith.constant 0 : index
    %c0_20 = arith.constant 0 : index
    %27 = vector.load %arg4[%c1_18, %c0_19, %c0_20] : memref<4x1x128xf32, #tpu.memory_space<vmem>>, vector<1x1x128xf32>
    %28 = vector.shape_cast %27 : vector<1x1x128xf32> to vector<1x128xf32>
    %29 = vector.shape_cast %26 : vector<1x128xf32> to vector<1x1x128xf32>
    tpu.vector_store %arg4[%c1_18, %c0_19, %c0_20], %29 {strides = array<i32>} : memref<4x1x128xf32, #tpu.memory_space<vmem>>, vector<1x1x128xf32>,
    %c2 = arith.constant 2 : index
    %c0_21 = arith.constant 0 : index
    %c0_22 = arith.constant 0 : index
    %30 = vector.load %arg1[%c2, %c0_21, %c0_22] : memref<4x294x81xbf16, #tpu.memory_space<vmem>>, vector<1x294x81xbf16>
    %31 = vector.shape_cast %30 : vector<1x294x81xbf16> to vector<294x81xbf16>
    %cst_23 = arith.constant dense<0.000000e+00> : vector<294x128xf32>
    %32 = tpu.matmul %31, %0, %cst_23 {dimension_numbers = #tpu.dot_dimension_numbers<[1], [0], [0], [1], [0, 0, 1, 1], [], []>} : vector<294x81xbf16>, vector<81x128xbf16>, vector<294x128xf32> -> vector<294x128xf32>
    %33 = vector.broadcast %1 : vector<1x128xf32> to vector<294x128xf32>
    %34 = arith.addf %32, %33 : vector<294x128xf32>
    %cst_24 = arith.constant 0.000000e+00 : f32
    %35 = vector.broadcast %cst_24 : f32 to vector<294x128xf32>
    %36 = arith.maximumf %34, %35 : vector<294x128xf32>
    %cst_25 = arith.constant dense<0.000000e+00> : vector<128xf32>
    %37 = vector.multi_reduction <add>, %36, %cst_25 [0] : vector<294x128xf32> to vector<128xf32>
    %38 = vector.shape_cast %37 : vector<128xf32> to vector<1x128xf32>
    %cst_26 = arith.constant 0.00340136047 : f32
    %39 = vector.broadcast %cst_26 : f32 to vector<1x128xf32>
    %40 = arith.mulf %38, %39 : vector<1x128xf32>
    %c2_27 = arith.constant 2 : index
    %c0_28 = arith.constant 0 : index
    %c0_29 = arith.constant 0 : index
    %41 = vector.load %arg4[%c2_27, %c0_28, %c0_29] : memref<4x1x128xf32, #tpu.memory_space<vmem>>, vector<1x1x128xf32>
    %42 = vector.shape_cast %41 : vector<1x1x128xf32> to vector<1x128xf32>
    %43 = vector.shape_cast %40 : vector<1x128xf32> to vector<1x1x128xf32>
    tpu.vector_store %arg4[%c2_27, %c0_28, %c0_29], %43 {strides = array<i32>} : memref<4x1x128xf32, #tpu.memory_space<vmem>>, vector<1x1x128xf32>,
    %c3 = arith.constant 3 : index
    %c0_30 = arith.constant 0 : index
    %c0_31 = arith.constant 0 : index
    %44 = vector.load %arg1[%c3, %c0_30, %c0_31] : memref<4x294x81xbf16, #tpu.memory_space<vmem>>, vector<1x294x81xbf16>
    %45 = vector.shape_cast %44 : vector<1x294x81xbf16> to vector<294x81xbf16>
    %cst_32 = arith.constant dense<0.000000e+00> : vector<294x128xf32>
    %46 = tpu.matmul %45, %0, %cst_32 {dimension_numbers = #tpu.dot_dimension_numbers<[1], [0], [0], [1], [0, 0, 1, 1], [], []>} : vector<294x81xbf16>, vector<81x128xbf16>, vector<294x128xf32> -> vector<294x128xf32>
    %47 = vector.broadcast %1 : vector<1x128xf32> to vector<294x128xf32>
    %48 = arith.addf %46, %47 : vector<294x128xf32>
    %cst_33 = arith.constant 0.000000e+00 : f32
    %49 = vector.broadcast %cst_33 : f32 to vector<294x128xf32>
    %50 = arith.maximumf %48, %49 : vector<294x128xf32>
    %cst_34 = arith.constant dense<0.000000e+00> : vector<128xf32>
    %51 = vector.multi_reduction <add>, %50, %cst_34 [0] : vector<294x128xf32> to vector<128xf32>
    %52 = vector.shape_cast %51 : vector<128xf32> to vector<1x128xf32>
    %cst_35 = arith.constant 0.00340136047 : f32
    %53 = vector.broadcast %cst_35 : f32 to vector<1x128xf32>
    %54 = arith.mulf %52, %53 : vector<1x128xf32>
    %c3_36 = arith.constant 3 : index
    %c0_37 = arith.constant 0 : index
    %c0_38 = arith.constant 0 : index
    %55 = vector.load %arg4[%c3_36, %c0_37, %c0_38] : memref<4x1x128xf32, #tpu.memory_space<vmem>>, vector<1x1x128xf32>
    %56 = vector.shape_cast %55 : vector<1x1x128xf32> to vector<1x128xf32>
    %57 = vector.shape_cast %54 : vector<1x128xf32> to vector<1x1x128xf32>
    tpu.vector_store %arg4[%c3_36, %c0_37, %c0_38], %57 {strides = array<i32>} : memref<4x1x128xf32, #tpu.memory_space<vmem>>, vector<1x1x128xf32>,
    return
  }
  func.func @transform_0(%arg0: i32) -> (i32, i32, i32) {
    %c0_i32 = arith.constant 0 : i32
    %c0_i32_0 = arith.constant 0 : i32
    %c0_i32_1 = arith.constant 0 : i32
    return %arg0, %c0_i32, %c0_i32_0 : i32, i32, i32
  }
  func.func @transform_1(%arg0: i32) -> (i32, i32) {
    %c0_i32 = arith.constant 0 : i32
    %c0_i32_0 = arith.constant 0 : i32
    %c0_i32_1 = arith.constant 0 : i32
    return %c0_i32, %c0_i32_0 : i32, i32
  }
  func.func @transform_2(%arg0: i32) -> (i32, i32) {
    %c0_i32 = arith.constant 0 : i32
    %c0_i32_0 = arith.constant 0 : i32
    %c0_i32_1 = arith.constant 0 : i32
    return %c0_i32, %c0_i32_0 : i32, i32
  }
  func.func @transform_3(%arg0: i32) -> (i32, i32, i32) {
    %c0_i32 = arith.constant 0 : i32
    %c0_i32_0 = arith.constant 0 : i32
    %c0_i32_1 = arith.constant 0 : i32
    return %arg0, %c0_i32, %c0_i32_0 : i32, i32, i32
  }
}

module attributes {stable_mosaic.version = 11 : i64} {
  func.func @_i3d_stream_kernel(%arg0: i32, %arg1: memref<4x294x54xbf16, #tpu.memory_space<vmem>>, %arg2: memref<54x128xbf16, #tpu.memory_space<vmem>>, %arg3: memref<1x128xf32, #tpu.memory_space<vmem>>, %arg4: memref<4x1x128xf32, #tpu.memory_space<vmem>>) attributes {dimension_semantics = [#tpu.dimension_semantics<parallel>], iteration_bounds = array<i64: 2>, scalar_prefetch = 0 : i64, scratch_operands = 0 : i64, tpu.core_type = #tpu.core_type<tc>, window_params = [{transform_indices = @transform_0, window_bounds = array<i64: 4, 294, 54>}, {pipeline_mode = #tpu.pipeline_mode<synchronous>, transform_indices = @transform_1, window_bounds = array<i64: 54, 128>}, {pipeline_mode = #tpu.pipeline_mode<synchronous>, transform_indices = @transform_2, window_bounds = array<i64: 1, 128>}, {transform_indices = @transform_3, window_bounds = array<i64: 4, 1, 128>}]} {
    %c0 = arith.constant 0 : index
    %c0_0 = arith.constant 0 : index
    %0 = vector.load %arg2[%c0, %c0_0] : memref<54x128xbf16, #tpu.memory_space<vmem>>, vector<54x128xbf16>
    %c0_1 = arith.constant 0 : index
    %c0_2 = arith.constant 0 : index
    %1 = vector.load %arg3[%c0_1, %c0_2] : memref<1x128xf32, #tpu.memory_space<vmem>>, vector<1x128xf32>
    %c0_3 = arith.constant 0 : index
    %c0_4 = arith.constant 0 : index
    %c0_5 = arith.constant 0 : index
    %2 = vector.load %arg1[%c0_3, %c0_4, %c0_5] : memref<4x294x54xbf16, #tpu.memory_space<vmem>>, vector<1x294x54xbf16>
    %3 = vector.shape_cast %2 : vector<1x294x54xbf16> to vector<294x54xbf16>
    %cst = arith.constant dense<0.000000e+00> : vector<294x128xf32>
    %4 = tpu.matmul %3, %0, %cst {dimension_numbers = #tpu.dot_dimension_numbers<[1], [0], [0], [1], [0, 0, 1, 1], [], []>} : vector<294x54xbf16>, vector<54x128xbf16>, vector<294x128xf32> -> vector<294x128xf32>
    %5 = vector.broadcast %1 : vector<1x128xf32> to vector<294x128xf32>
    %6 = arith.addf %4, %5 : vector<294x128xf32>
    %cst_6 = arith.constant 0.000000e+00 : f32
    %7 = vector.broadcast %cst_6 : f32 to vector<294x128xf32>
    %8 = arith.maximumf %6, %7 : vector<294x128xf32>
    %cst_7 = arith.constant dense<0.000000e+00> : vector<128xf32>
    %9 = vector.multi_reduction <add>, %8, %cst_7 [0] : vector<294x128xf32> to vector<128xf32>
    %10 = vector.shape_cast %9 : vector<128xf32> to vector<1x128xf32>
    %cst_8 = arith.constant 0.00340136047 : f32
    %11 = vector.broadcast %cst_8 : f32 to vector<1x128xf32>
    %12 = arith.mulf %10, %11 : vector<1x128xf32>
    %c0_9 = arith.constant 0 : index
    %c0_10 = arith.constant 0 : index
    %c0_11 = arith.constant 0 : index
    %13 = vector.load %arg4[%c0_9, %c0_10, %c0_11] : memref<4x1x128xf32, #tpu.memory_space<vmem>>, vector<1x1x128xf32>
    %14 = vector.shape_cast %13 : vector<1x1x128xf32> to vector<1x128xf32>
    %15 = vector.shape_cast %12 : vector<1x128xf32> to vector<1x1x128xf32>
    tpu.vector_store %arg4[%c0_9, %c0_10, %c0_11], %15 {strides = array<i32>} : memref<4x1x128xf32, #tpu.memory_space<vmem>>, vector<1x1x128xf32>,
    %c1 = arith.constant 1 : index
    %c0_12 = arith.constant 0 : index
    %c0_13 = arith.constant 0 : index
    %16 = vector.load %arg1[%c1, %c0_12, %c0_13] : memref<4x294x54xbf16, #tpu.memory_space<vmem>>, vector<1x294x54xbf16>
    %17 = vector.shape_cast %16 : vector<1x294x54xbf16> to vector<294x54xbf16>
    %cst_14 = arith.constant dense<0.000000e+00> : vector<294x128xf32>
    %18 = tpu.matmul %17, %0, %cst_14 {dimension_numbers = #tpu.dot_dimension_numbers<[1], [0], [0], [1], [0, 0, 1, 1], [], []>} : vector<294x54xbf16>, vector<54x128xbf16>, vector<294x128xf32> -> vector<294x128xf32>
    %19 = vector.broadcast %1 : vector<1x128xf32> to vector<294x128xf32>
    %20 = arith.addf %18, %19 : vector<294x128xf32>
    %cst_15 = arith.constant 0.000000e+00 : f32
    %21 = vector.broadcast %cst_15 : f32 to vector<294x128xf32>
    %22 = arith.maximumf %20, %21 : vector<294x128xf32>
    %cst_16 = arith.constant dense<0.000000e+00> : vector<128xf32>
    %23 = vector.multi_reduction <add>, %22, %cst_16 [0] : vector<294x128xf32> to vector<128xf32>
    %24 = vector.shape_cast %23 : vector<128xf32> to vector<1x128xf32>
    %cst_17 = arith.constant 0.00340136047 : f32
    %25 = vector.broadcast %cst_17 : f32 to vector<1x128xf32>
    %26 = arith.mulf %24, %25 : vector<1x128xf32>
    %c1_18 = arith.constant 1 : index
    %c0_19 = arith.constant 0 : index
    %c0_20 = arith.constant 0 : index
    %27 = vector.load %arg4[%c1_18, %c0_19, %c0_20] : memref<4x1x128xf32, #tpu.memory_space<vmem>>, vector<1x1x128xf32>
    %28 = vector.shape_cast %27 : vector<1x1x128xf32> to vector<1x128xf32>
    %29 = vector.shape_cast %26 : vector<1x128xf32> to vector<1x1x128xf32>
    tpu.vector_store %arg4[%c1_18, %c0_19, %c0_20], %29 {strides = array<i32>} : memref<4x1x128xf32, #tpu.memory_space<vmem>>, vector<1x1x128xf32>,
    %c2 = arith.constant 2 : index
    %c0_21 = arith.constant 0 : index
    %c0_22 = arith.constant 0 : index
    %30 = vector.load %arg1[%c2, %c0_21, %c0_22] : memref<4x294x54xbf16, #tpu.memory_space<vmem>>, vector<1x294x54xbf16>
    %31 = vector.shape_cast %30 : vector<1x294x54xbf16> to vector<294x54xbf16>
    %cst_23 = arith.constant dense<0.000000e+00> : vector<294x128xf32>
    %32 = tpu.matmul %31, %0, %cst_23 {dimension_numbers = #tpu.dot_dimension_numbers<[1], [0], [0], [1], [0, 0, 1, 1], [], []>} : vector<294x54xbf16>, vector<54x128xbf16>, vector<294x128xf32> -> vector<294x128xf32>
    %33 = vector.broadcast %1 : vector<1x128xf32> to vector<294x128xf32>
    %34 = arith.addf %32, %33 : vector<294x128xf32>
    %cst_24 = arith.constant 0.000000e+00 : f32
    %35 = vector.broadcast %cst_24 : f32 to vector<294x128xf32>
    %36 = arith.maximumf %34, %35 : vector<294x128xf32>
    %cst_25 = arith.constant dense<0.000000e+00> : vector<128xf32>
    %37 = vector.multi_reduction <add>, %36, %cst_25 [0] : vector<294x128xf32> to vector<128xf32>
    %38 = vector.shape_cast %37 : vector<128xf32> to vector<1x128xf32>
    %cst_26 = arith.constant 0.00340136047 : f32
    %39 = vector.broadcast %cst_26 : f32 to vector<1x128xf32>
    %40 = arith.mulf %38, %39 : vector<1x128xf32>
    %c2_27 = arith.constant 2 : index
    %c0_28 = arith.constant 0 : index
    %c0_29 = arith.constant 0 : index
    %41 = vector.load %arg4[%c2_27, %c0_28, %c0_29] : memref<4x1x128xf32, #tpu.memory_space<vmem>>, vector<1x1x128xf32>
    %42 = vector.shape_cast %41 : vector<1x1x128xf32> to vector<1x128xf32>
    %43 = vector.shape_cast %40 : vector<1x128xf32> to vector<1x1x128xf32>
    tpu.vector_store %arg4[%c2_27, %c0_28, %c0_29], %43 {strides = array<i32>} : memref<4x1x128xf32, #tpu.memory_space<vmem>>, vector<1x1x128xf32>,
    %c3 = arith.constant 3 : index
    %c0_30 = arith.constant 0 : index
    %c0_31 = arith.constant 0 : index
    %44 = vector.load %arg1[%c3, %c0_30, %c0_31] : memref<4x294x54xbf16, #tpu.memory_space<vmem>>, vector<1x294x54xbf16>
    %45 = vector.shape_cast %44 : vector<1x294x54xbf16> to vector<294x54xbf16>
    %cst_32 = arith.constant dense<0.000000e+00> : vector<294x128xf32>
    %46 = tpu.matmul %45, %0, %cst_32 {dimension_numbers = #tpu.dot_dimension_numbers<[1], [0], [0], [1], [0, 0, 1, 1], [], []>} : vector<294x54xbf16>, vector<54x128xbf16>, vector<294x128xf32> -> vector<294x128xf32>
    %47 = vector.broadcast %1 : vector<1x128xf32> to vector<294x128xf32>
    %48 = arith.addf %46, %47 : vector<294x128xf32>
    %cst_33 = arith.constant 0.000000e+00 : f32
    %49 = vector.broadcast %cst_33 : f32 to vector<294x128xf32>
    %50 = arith.maximumf %48, %49 : vector<294x128xf32>
    %cst_34 = arith.constant dense<0.000000e+00> : vector<128xf32>
    %51 = vector.multi_reduction <add>, %50, %cst_34 [0] : vector<294x128xf32> to vector<128xf32>
    %52 = vector.shape_cast %51 : vector<128xf32> to vector<1x128xf32>
    %cst_35 = arith.constant 0.00340136047 : f32
    %53 = vector.broadcast %cst_35 : f32 to vector<1x128xf32>
    %54 = arith.mulf %52, %53 : vector<1x128xf32>
    %c3_36 = arith.constant 3 : index
    %c0_37 = arith.constant 0 : index
    %c0_38 = arith.constant 0 : index
    %55 = vector.load %arg4[%c3_36, %c0_37, %c0_38] : memref<4x1x128xf32, #tpu.memory_space<vmem>>, vector<1x1x128xf32>
    %56 = vector.shape_cast %55 : vector<1x1x128xf32> to vector<1x128xf32>
    %57 = vector.shape_cast %54 : vector<1x128xf32> to vector<1x1x128xf32>
    tpu.vector_store %arg4[%c3_36, %c0_37, %c0_38], %57 {strides = array<i32>} : memref<4x1x128xf32, #tpu.memory_space<vmem>>, vector<1x1x128xf32>,
    return
  }
  func.func @transform_0(%arg0: i32) -> (i32, i32, i32) {
    %c0_i32 = arith.constant 0 : i32
    %c0_i32_0 = arith.constant 0 : i32
    %c0_i32_1 = arith.constant 0 : i32
    return %arg0, %c0_i32, %c0_i32_0 : i32, i32, i32
  }
  func.func @transform_1(%arg0: i32) -> (i32, i32) {
    %c0_i32 = arith.constant 0 : i32
    %c0_i32_0 = arith.constant 0 : i32
    %c0_i32_1 = arith.constant 0 : i32
    return %c0_i32, %c0_i32_0 : i32, i32
  }
  func.func @transform_2(%arg0: i32) -> (i32, i32) {
    %c0_i32 = arith.constant 0 : i32
    %c0_i32_0 = arith.constant 0 : i32
    %c0_i32_1 = arith.constant 0 : i32
    return %c0_i32, %c0_i32_0 : i32, i32
  }
  func.func @transform_3(%arg0: i32) -> (i32, i32, i32) {
    %c0_i32 = arith.constant 0 : i32
    %c0_i32_0 = arith.constant 0 : i32
    %c0_i32_1 = arith.constant 0 : i32
    return %arg0, %c0_i32, %c0_i32_0 : i32, i32, i32
  }
}

</mosaic_0001>

<bundles_post_ra>
// kernel: i3d_batched_forward.2
= control target key start
LH: loop header
LB: loop body
LE: loop exit
PB: predicated region body
PF: predicated region fallthrough
CT: control target
= control target key end

     0   :  { %8 = vsyncpa [#allocation3], 0  ;;  %s3708_s0 = inlined_call_operand.vmem [shape: bf16[8,294,81], index: 0, kind: input, shape index: {}]   ;;  %s3709_s1 = inlined_call_operand.vmem [shape: bf16[81,128], index: 1, kind: input, shape index: {}]   ;;  %s3710_s2 = inlined_call_operand.vmem [shape: f32[1,128], index: 2, kind: input, shape index: {}]   ;;  %s3711_s3 = inlined_call_operand.hbm [shape: f32[8,1,128], index: 3, kind: output, shape index: {}]  }
   0x1   :  { %10 = vsyncpa [#allocation3 + $0x1], 0  ;;  %s3085_s12 = smov 0   ;;  %s3087_s13 = smov 0  }
   0x2   :  { %s3089_s14 = smov 0   ;;  %s3091_s15 = smov 0  }
   0x3 LB: > { %s3106_s16 = sadd.s32 4294967295, %s3057_s15   ;;  %s2129_s17 = sadd.s32 4294967294, %s3057_s15   ;;  %s3057_s15 = sphi %s3091_s15, %s3717_s15   ;;  %s3053_s14 = sphi %s3089_s14, %s3716_s14   ;;  %s3049_s13 = sphi %s3087_s13, %s3715_s13   ;;  %s3045_s12 = sphi %s3085_s12, %s3714_s12  }
   0x4   : > { %s3110_s18 = sadd.s32 1, %s3057_s15   ;;  %s91_s19 = sadd.s32 1, %s3053_s14 }
   0x5   : > { %s88_s20 = ssub.s32 %s3057_s15, %s3110_s18  ;;  %p101_p0 = scmp.ne.s32.totalorder %s3053_s14, %s3049_s13 }
   0x6   : > { %p89_p1 = scmp.eq.s32.totalorder %s88_s20, 0  ;;  %p102_p2 = scmp.eq.s32.totalorder %s3106_s16, 1 }
   0x7   : > { %p107_p3 = scmp.ne.s32.totalorder %s3049_s13, %s3045_s12  ;;  %p108_p4 = scmp.eq.s32.totalorder %s2129_s17, 1 }
   0x8   : > { %s3121_s21 = scalar_select %p89_p1, %s3053_s14, %s91_s19  }
   0x9   : > { %p3123_p5 = por %p102_p2, %p101_p0  ;;  %p3127_p6 = por %p108_p4, %p107_p3 }
   0xa   : > { %p2132_p7 = scmp.ge.s32.totalorder %s3057_s15, 1  ;;  %p142_p8 = scmp.lt.s32.totalorder %s3057_s15, 3 }
   0xc   : > { %p143_p9 = pnand %p2132_p7, %p142_p8 }
   0xd   : > { %v2912_v0 = vld [vmem:[%s3709_s1] sm:$0xff] (!%p143_p9)   ;;  %v3059_v1 = vmov (!%p143_p9), 0.0   ;;  %v2913_v2 = vld [vmem:[%s3709_s1 + $0x8] sm:$0xff] (!%p143_p9)   ;;  %vm3060_vm0 = vmmov (!%p143_p9), 0   ;;  %s2134_s28 = sshll.u32 (!%p143_p9), %s3106_s16, 2  ;;  %v2914_v3 = vld [vmem:[%s3709_s1 + $0x10] sm:$0xff] (!%p143_p9)  }
   0xe   : > { %146 = sbr.rel (%p143_p9) target bundleno = 582 (0x246), region = 32  ;;  %2515 = vmatprep.subr.bf16.mxu0 (!%p143_p9), %v3059_v1  ;;  %2603 = vmatprep.subr.bf16.mxu1 (!%p143_p9), %v3059_v1  ;;  %p168_p10 = scmp.lt.s32.totalorder (!%p143_p9), %s2134_s28, 7  ;;  %v2915_v4 = vld [vmem:[%s3709_s1 + $0x18] sm:$0xff] (!%p143_p9)   ;;  %v2917_v5 = vld [vmem:[%s3709_s1 + $0x28] ss:$0 sps:$4 sm:$0x11] (!%p143_p9)  }
   0xf   : > { %2516 = vmatpush3.bf16.msra.mxu0 (!%p143_p9), %v2912_v0  ;;  %2604 = vmatpush3.bf16.msra.mxu1 (!%p143_p9), %v2912_v0  ;;  %vm415_vm1 = vcmask (!%p143_p9), 1040384   ;;  %v2916_v6 = vld [vmem:[%s3709_s1 + $0x20] sm:$0xff] (!%p143_p9)   ;;  %v3061_v7 = vmov (!%p143_p9), 0   ;;  %vm357_vm2 = vcmask (!%p143_p9), 662528   ;;  %vm677_vm3 = vcmask (!%p143_p9), 1045504   ;;  %s164_s25 = sand.u32 (!%p143_p9), 1, %s3049_s13  }
  0x10   : > { %2517 = vmatprep.subr.bf16.mxu0 (!%p143_p9), %v3059_v1  ;;  %2605 = vmatprep.subr.bf16.mxu1 (!%p143_p9), %v3059_v1  ;;  %v417_v8 = vsel (!%p143_p9), %vm415_vm1, 65535, %v3061_v7  ;;  %s2133_s26 = sshll.u32 (!%p143_p9), %s164_s25, 2  ;;  %s2414_s30 = sshll.u32 (!%p143_p9), %s3106_s16, 6 }
  0x11   : > { %2527 = vmatprep.mubr.msk.bf16.mxu0 (!%p143_p9), %vm3060_vm0, %v3059_v1  ;;  %2615 = vmatprep.mubr.msk.bf16.mxu1 (!%p143_p9), %vm3060_vm0, %v3059_v1  ;;  %v419_v9 = vand.u32 (!%p143_p9), %v2917_v5, %v417_v8  ;;  %s3577_s27 = scalar_lea.vmem (!%p143_p9), [#allocation2], %s2133_s26  ;;  %s3659_s7 = scalar_lea.hbm (!%p143_p9), %s3711_s3, %s2414_s30 }
  0x12   : > { %s2067_s4 = sshll.u32 (!%p143_p9), %s3577_s27, 4  ;;  %s3667_s8 = scalar_lea.sflag (!%p143_p9), [#allocation3], %s164_s25  ;;  %s3661_s4 = int_to_ptr.vmem [resolvable:$true] %s2067_s4 }
  0x13   : > { %2518 = vmatpush3.bf16.msra.mxu0 (!%p143_p9), %v2913_v2  ;;  %2606 = vmatpush3.bf16.msra.mxu1 (!%p143_p9), %v2913_v2  ;;  %s2995_s16 = scalar_lea.vmem (!%p143_p9), %s3661_s4, 64  ;;  %s3062_s9 = smov (!%p143_p9), [#allocation2]  }
  0x14   : > { %2519 = vmatprep.subr.bf16.mxu0 (!%p143_p9), %v3059_v1  ;;  %2607 = vmatprep.subr.bf16.mxu1 (!%p143_p9), %v3059_v1  ;;  %p2996_p11 = scmp.ne.s32.totalorder (!%p143_p9), %s3661_s4, %s2995_s16  ;;  %s2999_s10 = sshll.u32 (!%p143_p9), %s3062_s9, 4  ;;  %s3000_s10 = int_to_ptr.vmem [resolvable:$false] %s2999_s10 }
  0x15   : > { %s3719_s28 = smov (!%p168_p10, %s2134_s28), 7  ;;  %p3002_p0 = scmp.lt.s32.totalorder %s3661_s4, %s3000_s10 }
  0x16   : > { %s2867_s6 = smul.u32 148, %s3719_s28  ;;  %p2997_p12 = pnand %p2996_p11, %p3123_p5 }
  0x17   : > { %2520 = vmatpush3.bf16.msra.mxu0 %v2914_v3  ;;  %2608 = vmatpush3.bf16.msra.mxu1 %v2914_v3 }
  0x18   : > { %2521 = vmatprep.subr.bf16.mxu0 %v3059_v1  ;;  %2609 = vmatprep.subr.bf16.mxu1 %v3059_v1  ;;  %s3164_s11 = scalar_lea.vmem %s3708_s0, %s2867_s6  ;;  %p2998_p13 = pneg %p2997_p12 }
  0x19   : > { %v2918_v10 = vld [vmem:[%s3164_s11] sm:$0xff]   ;;  %v2919_v11 = vld [vmem:[%s3164_s11 + $0x94] sm:$0xff]   ;;  %v2920_v12 = vld [vmem:[%s3164_s11 + $0x8] sm:$0xff]  }
  0x1a   : > { %v2921_v13 = vld [vmem:[%s3164_s11 + $0x9c] sm:$0xff]   ;;  %v2922_v14 = vld [vmem:[%s3164_s11 + $0x10] sm:$0xff]   ;;  %v2923_v15 = vld [vmem:[%s3164_s11 + $0xa4] sm:$0xff]  }
  0x1b   : > { %2522 = vmatpush3.bf16.msra.mxu0 %v2915_v4  ;;  %2610 = vmatpush3.bf16.msra.mxu1 %v2915_v4  ;;  %v2924_v16 = vld [vmem:[%s3164_s11 + $0x18] sm:$0xff]   ;;  %v2925_v17 = vld [vmem:[%s3164_s11 + $0xac] sm:$0xff]   ;;  %v2926_v18 = vld [vmem:[%s3164_s11 + $0x20] sm:$0xff]  }
  0x1c   : > { %2523 = vmatprep.subr.bf16.mxu0 %v3059_v1  ;;  %2611 = vmatprep.subr.bf16.mxu1 %v3059_v1  ;;  %v2927_v19 = vld [vmem:[%s3164_s11 + $0xb4] sm:$0xff]   ;;  %v2928_v20 = vld [vmem:[%s3164_s11 + $0x28] sm:$0xff]   ;;  %v2929_v21 = vld [vmem:[%s3164_s11 + $0xbc] sm:$0xff]  }
  0x1d   : > { %v2930_v22 = vld [vmem:[%s3164_s11 + $0x30] sm:$0xff]   ;;  %v2931_v23 = vld [vmem:[%s3164_s11 + $0xc4] sm:$0xff]   ;;  %v2932_v24 = vld [vmem:[%s3164_s11 + $0x38] sm:$0xff]  }
  0x1e   : > { %v2933_v25 = vld [vmem:[%s3164_s11 + $0xcc] sm:$0xff]   ;;  %v2934_v26 = vld [vmem:[%s3164_s11 + $0x40] sm:$0xff]   ;;  %v2935_v27 = vld [vmem:[%s3164_s11 + $0xd4] sm:$0xff]  }
  0x1f   : > { %2524 = vmatpush3.bf16.msra.mxu0 %v2916_v6  ;;  %2612 = vmatpush3.bf16.msra.mxu1 %v2916_v6  ;;  %v2936_v28 = vld [vmem:[%s3164_s11 + $0x48] sm:$0xff]   ;;  %v2937_v29 = vld [vmem:[%s3164_s11 + $0xdc] sm:$0xff]   ;;  %v2938_v30 = vld [vmem:[%s3164_s11 + $0x50] sm:$0xff]  }
  0x20   : > { %2525 = vmatprep.subr.bf16.mxu0 %v3059_v1  ;;  %2613 = vmatprep.subr.bf16.mxu1 %v3059_v1  ;;  %v2939_v31 = vld [vmem:[%s3164_s11 + $0xe4] sm:$0xff]   ;;  %v2940_v32 = vld [vmem:[%s3164_s11 + $0x58] sm:$0xff]   ;;  %v2941_v33 = vld [vmem:[%s3164_s11 + $0xec] sm:$0xff]  }
  0x21   : > { %v2942_v34 = vld [vmem:[%s3164_s11 + $0x60] sm:$0xff]   ;;  %v2943_v35 = vld [vmem:[%s3164_s11 + $0xf4] sm:$0xff]   ;;  %v2944_v36 = vld [vmem:[%s3164_s11 + $0x68] sm:$0xff]  }
  0x22   : > { %v2945_v37 = vld [vmem:[%s3164_s11 + $0xfc] sm:$0xff]   ;;  %v2946_v38 = vld [vmem:[%s3164_s11 + $0x70] sm:$0xff]   ;;  %v2947_v39 = vld [vmem:[%s3164_s11 + $0x104] sm:$0xff]  }
  0x23   : > { %2526 = vmatpush3.bf16.msra.mxu0 %v419_v9  ;;  %2614 = vmatpush3.bf16.msra.mxu1 %v419_v9  ;;  %v2948_v40 = vld [vmem:[%s3164_s11 + $0x78] sm:$0xff]   ;;  %v2949_v41 = vld [vmem:[%s3164_s11 + $0x10c] sm:$0xff]   ;;  %v2950_v42 = vld [vmem:[%s3164_s11 + $0x80] sm:$0xff]  }
  0x24   : > { %2691 = vmatprep.subr.bf16.mxu0 %v3059_v1  ;;  %2779 = vmatprep.subr.bf16.mxu1 %v3059_v1  ;;  %v2951_v43 = vld [vmem:[%s3164_s11 + $0x114] sm:$0xff]   ;;  %v2952_v44 = vld [vmem:[%s3164_s11 + $0x88] sm:$0xff]   ;;  %v2953_v45 = vld [vmem:[%s3164_s11 + $0x11c] sm:$0xff]  }
  0x25   : > { %v2954_v46 = vld [vmem:[%s3164_s11 + $0x90] ss:$0 sps:$4 sm:$0x77]   ;;  %v2955_v47 = vld [vmem:[%s3164_s11 + $0x124] ss:$0 sps:$4 sm:$0x77]  }
  0x26   : > { %2528 = vmatmul.mubr.msk.bf16.vlgmr.msra.gmra.mrb[0].mxu0 %vm357_vm2, %v2918_v10  ;;  %2616 = vmatmul.mubr.msk.bf16.vlgmr.msra.gmra.mrb[0].mxu1 %vm357_vm2, %v2919_v11  ;;  %v2956_v48 = vld [vmem:[%s3164_s11 + $0x128] sm:$0xff]   ;;  %v2957_v49 = vld [vmem:[%s3164_s11 + $0x1bc] sm:$0xff]   ;;  %v2958_v50 = vld [vmem:[%s3164_s11 + $0x130] sm:$0xff]  }
  0x27   : > { %2692 = vmatpush3.bf16.msra.mxu0 %v2912_v0  ;;  %2780 = vmatpush3.bf16.msra.mxu1 %v2912_v0  ;;  %v2959_v51 = vld [vmem:[%s3164_s11 + $0x1c4] sm:$0xff]   ;;  %v2960_v52 = vld [vmem:[%s3164_s11 + $0x138] sm:$0xff]   ;;  %v2961_v53 = vld [vmem:[%s3164_s11 + $0x1cc] sm:$0xff]  }
  0x28   : > { %2531 = vmatprep.mubr.msk.bf16.mxu0 %vm3060_vm0, %v3059_v1  ;;  %2619 = vmatprep.mubr.msk.bf16.mxu1 %vm3060_vm0, %v3059_v1  ;;  %v2962_v54 = vld [vmem:[%s3164_s11 + $0x140] sm:$0xff]   ;;  %v2963_v55 = vld [vmem:[%s3164_s11 + $0x1d4] sm:$0xff]   ;;  %v2964_v56 = vld [vmem:[%s3164_s11 + $0x148] sm:$0xff]  }
  0x29   : > { %2693 = vmatprep.subr.bf16.mxu0 %v3059_v1  ;;  %2781 = vmatprep.subr.bf16.mxu1 %v3059_v1  ;;  %v2965_v57 = vld [vmem:[%s3164_s11 + $0x1dc] sm:$0xff]   ;;  %v2966_v58 = vld [vmem:[%s3164_s11 + $0x150] sm:$0xff]   ;;  %v2967_v59 = vld [vmem:[%s3164_s11 + $0x1e4] sm:$0xff]  }
  0x2a   : > { %v2968_v60 = vld [vmem:[%s3164_s11 + $0x158] sm:$0xff]   ;;  %v2969_v61 = vld [vmem:[%s3164_s11 + $0x1ec] sm:$0xff]   ;;  %v2970_v62 = vld [vmem:[%s3164_s11 + $0x160] sm:$0xff]  }
  0x2b   : > { %2694 = vmatpush3.bf16.msra.mxu0 %v2913_v2  ;;  %2782 = vmatpush3.bf16.msra.mxu1 %v2913_v2  ;;  %v2971_v63 = vld [vmem:[%s3164_s11 + $0x1f4] sm:$0xff]   ;;  %v3400_v0 = vld [vmem:[%s3710_s2] ss:$0 sm:$0xff]  ;;  %v2972_v8 = vld [vmem:[%s3164_s11 + $0x168] sm:$0xff]  }
  0x2c   : > { %2695 = vmatprep.subr.bf16.mxu0 %v3059_v1  ;;  %2783 = vmatprep.subr.bf16.mxu1 %v3059_v1 }
  0x2e   : > { %2532 = vmatmul.mubr.msk.bf16.gmra.mrb[4].mxu0 %vm357_vm2, %v2920_v12  ;;  %2620 = vmatmul.mubr.msk.bf16.gmra.mrb[4].mxu1 %vm357_vm2, %v2921_v13 }
  0x2f   : > { %2535 = vmatprep.mubr.msk.bf16.mxu0 %vm3060_vm0, %v3059_v1  ;;  %2623 = vmatprep.mubr.msk.bf16.mxu1 %vm3060_vm0, %v3059_v1 }
  0x30   : > { %2696 = vmatpush3.bf16.msra.mxu0 %v2914_v3  ;;  %2784 = vmatpush3.bf16.msra.mxu1 %v2914_v3 }
  0x31   : > { %2697 = vmatprep.subr.bf16.mxu0 %v3059_v1  ;;  %2785 = vmatprep.subr.bf16.mxu1 %v3059_v1 }
  0x34   : > { %2698 = vmatpush3.bf16.msra.mxu0 %v2915_v4  ;;  %2786 = vmatpush3.bf16.msra.mxu1 %v2915_v4 }
  0x35   : > { %2699 = vmatprep.subr.bf16.mxu0 %v3059_v1  ;;  %2787 = vmatprep.subr.bf16.mxu1 %v3059_v1 }
  0x36   : > { %2536 = vmatmul.mubr.msk.bf16.gmra.mrb[8].mxu0 %vm357_vm2, %v2922_v14  ;;  %2624 = vmatmul.mubr.msk.bf16.gmra.mrb[8].mxu1 %vm357_vm2, %v2923_v15 }
  0x37   : > { %2539 = vmatprep.mubr.msk.bf16.mxu0 %vm3060_vm0, %v3059_v1  ;;  %2627 = vmatprep.mubr.msk.bf16.mxu1 %vm3060_vm0, %v3059_v1 }
  0x38   : > { %2700 = vmatpush3.bf16.msra.mxu0 %v2916_v6  ;;  %2788 = vmatpush3.bf16.msra.mxu1 %v2916_v6 }
  0x39   : > { %2701 = vmatprep.subr.bf16.mxu0 %v3059_v1  ;;  %2789 = vmatprep.subr.bf16.mxu1 %v3059_v1 }
  0x3c   : > { %2702 = vmatpush3.bf16.msra.mxu0 %v419_v9  ;;  %2790 = vmatpush3.bf16.msra.mxu1 %v419_v9  ;;  %v2973_v9 = vld [vmem:[%s3164_s11 + $0x1fc] sm:$0xff]  }
  0x3e   : > { %2540 = vmatmul.mubr.msk.bf16.gmra.mrb[12].mxu0 %vm357_vm2, %v2924_v16  ;;  %2628 = vmatmul.mubr.msk.bf16.gmra.mrb[12].mxu1 %vm357_vm2, %v2925_v17 }
  0x3f   : > { %2543 = vmatprep.mubr.msk.bf16.mxu0 %vm3060_vm0, %v3059_v1  ;;  %2631 = vmatprep.mubr.msk.bf16.mxu1 %vm3060_vm0, %v3059_v1 }
  0x46   : > { %2544 = vmatmul.mubr.msk.bf16.gmra.mrb[16].mxu0 %vm357_vm2, %v2926_v18  ;;  %2632 = vmatmul.mubr.msk.bf16.gmra.mrb[16].mxu1 %vm357_vm2, %v2927_v19 }
  0x47   : > { %2547 = vmatprep.mubr.msk.bf16.mxu0 %vm3060_vm0, %v3059_v1  ;;  %2635 = vmatprep.mubr.msk.bf16.mxu1 %vm3060_vm0, %v3059_v1 }
  0x4e   : > { %2548 = vmatmul.mubr.msk.bf16.gmra.mrb[20].mxu0 %vm357_vm2, %v2928_v20  ;;  %2636 = vmatmul.mubr.msk.bf16.gmra.mrb[20].mxu1 %vm357_vm2, %v2929_v21 }
  0x4f   : > { %2551 = vmatprep.mubr.msk.bf16.mxu0 %vm3060_vm0, %v3059_v1  ;;  %2639 = vmatprep.mubr.msk.bf16.mxu1 %vm3060_vm0, %v3059_v1 }
  0x56   : > { %2552 = vmatmul.mubr.msk.bf16.gmra.mrb[24].mxu0 %vm357_vm2, %v2930_v22  ;;  %2640 = vmatmul.mubr.msk.bf16.gmra.mrb[24].mxu1 %vm357_vm2, %v2931_v23 }
  0x57   : > { %2555 = vmatprep.mubr.msk.bf16.mxu0 %vm3060_vm0, %v3059_v1  ;;  %2643 = vmatprep.mubr.msk.bf16.mxu1 %vm3060_vm0, %v3059_v1 }
  0x5e   : > { %2556 = vmatmul.mubr.msk.bf16.gmra.mrb[28].mxu0 %vm357_vm2, %v2932_v24  ;;  %2644 = vmatmul.mubr.msk.bf16.gmra.mrb[28].mxu1 %vm357_vm2, %v2933_v25 }
  0x5f   : > { %2559 = vmatprep.mubr.msk.bf16.mxu0 %vm3060_vm0, %v3059_v1  ;;  %2647 = vmatprep.mubr.msk.bf16.mxu1 %vm3060_vm0, %v3059_v1 }
  0x66   : > { %2560 = vmatmul.mubr.msk.bf16.gmra.mrb[32].mxu0 %vm357_vm2, %v2934_v26  ;;  %2648 = vmatmul.mubr.msk.bf16.gmra.mrb[32].mxu1 %vm357_vm2, %v2935_v27 }
  0x67   : > { %2563 = vmatprep.mubr.msk.bf16.mxu0 %vm3060_vm0, %v3059_v1  ;;  %2651 = vmatprep.mubr.msk.bf16.mxu1 %vm3060_vm0, %v3059_v1 }
  0x6e   : > { %2564 = vmatmul.mubr.msk.bf16.gmra.mrb[36].mxu0 %vm357_vm2, %v2936_v28  ;;  %2652 = vmatmul.mubr.msk.bf16.gmra.mrb[36].mxu1 %vm357_vm2, %v2937_v29  ;;  %v2974_v28 = vld [vmem:[%s3164_s11 + $0x170] sm:$0xff]   ;;  %v2975_v29 = vld [vmem:[%s3164_s11 + $0x204] sm:$0xff]  }
  0x6f   : > { %2567 = vmatprep.mubr.msk.bf16.mxu0 %vm3060_vm0, %v3059_v1  ;;  %2655 = vmatprep.mubr.msk.bf16.mxu1 %vm3060_vm0, %v3059_v1 }
  0x76   : > { %2568 = vmatmul.mubr.msk.bf16.gmra.mrb[40].mxu0 %vm357_vm2, %v2938_v30  ;;  %2656 = vmatmul.mubr.msk.bf16.gmra.mrb[40].mxu1 %vm357_vm2, %v2939_v31 }
  0x77   : > { %2571 = vmatprep.mubr.msk.bf16.mxu0 %vm3060_vm0, %v3059_v1  ;;  %2659 = vmatprep.mubr.msk.bf16.mxu1 %vm3060_vm0, %v3059_v1 }
  0x7e   : > { %2572 = vmatmul.mubr.msk.bf16.gmra.mrb[44].mxu0 %vm357_vm2, %v2940_v32  ;;  %2660 = vmatmul.mubr.msk.bf16.gmra.mrb[44].mxu1 %vm357_vm2, %v2941_v33 }
  0x7f   : > { %2575 = vmatprep.mubr.msk.bf16.mxu0 %vm3060_vm0, %v3059_v1  ;;  %2663 = vmatprep.mubr.msk.bf16.mxu1 %vm3060_vm0, %v3059_v1 }
  0x86   : > { %2576 = vmatmul.mubr.msk.bf16.gmra.mrb[48].mxu0 %vm357_vm2, %v2942_v34  ;;  %2664 = vmatmul.mubr.msk.bf16.gmra.mrb[48].mxu1 %vm357_vm2, %v2943_v35 }
  0x87   : > { %2579 = vmatprep.mubr.msk.bf16.mxu0 %vm3060_vm0, %v3059_v1  ;;  %2667 = vmatprep.mubr.msk.bf16.mxu1 %vm3060_vm0, %v3059_v1 }
  0x8e   : > { %2580 = vmatmul.mubr.msk.bf16.gmra.mrb[52].mxu0 %vm357_vm2, %v2944_v36  ;;  %2668 = vmatmul.mubr.msk.bf16.gmra.mrb[52].mxu1 %vm357_vm2, %v2945_v37 }
  0x8f   : > { %2583 = vmatprep.mubr.msk.bf16.mxu0 %vm3060_vm0, %v3059_v1  ;;  %2671 = vmatprep.mubr.msk.bf16.mxu1 %vm3060_vm0, %v3059_v1 }
  0x96   : > { %2584 = vmatmul.mubr.msk.bf16.gmra.mrb[56].mxu0 %vm357_vm2, %v2946_v38  ;;  %2672 = vmatmul.mubr.msk.bf16.gmra.mrb[56].mxu1 %vm357_vm2, %v2947_v39 }
  0x97   : > { %2587 = vmatprep.mubr.msk.bf16.mxu0 %vm3060_vm0, %v3059_v1  ;;  %2675 = vmatprep.mubr.msk.bf16.mxu1 %vm3060_vm0, %v3059_v1 }
  0x9e   : > { %2588 = vmatmul.mubr.msk.bf16.gmra.mrb[60].mxu0 %vm357_vm2, %v2948_v40  ;;  %2676 = vmatmul.mubr.msk.bf16.gmra.mrb[60].mxu1 %vm357_vm2, %v2949_v41 }
  0x9f   : > { %2591 = vmatprep.mubr.msk.bf16.mxu0 %vm3060_vm0, %v3059_v1  ;;  %2679 = vmatprep.mubr.msk.bf16.mxu1 %vm3060_vm0, %v3059_v1 }
  0xa6   : > { %2592 = vmatmul.mubr.msk.bf16.gmra.mrb[64].mxu0 %vm357_vm2, %v2950_v42  ;;  %2680 = vmatmul.mubr.msk.bf16.gmra.mrb[64].mxu1 %vm357_vm2, %v2951_v43 }
  0xa7   : > { %2595 = vmatprep.mubr.msk.bf16.mxu0 %vm3060_vm0, %v3059_v1  ;;  %2683 = vmatprep.mubr.msk.bf16.mxu1 %vm3060_vm0, %v3059_v1 }
  0xae   : > { %2596 = vmatmul.mubr.msk.bf16.gmra.mrb[68].mxu0 %vm357_vm2, %v2952_v44  ;;  %2684 = vmatmul.mubr.msk.bf16.gmra.mrb[68].mxu1 %vm357_vm2, %v2953_v45 }
  0xaf   : > { %2599 = vmatprep.mubr.msk.bf16.mxu0 %vm3060_vm0, %v3059_v1  ;;  %2687 = vmatprep.mubr.msk.bf16.mxu1 %vm3060_vm0, %v3059_v1 }
  0xb6   : > { %2600 = vmatmul.mubr.msk.bf16.gmra.mrb[72].mxu0 %vm357_vm2, %v2954_v46  ;;  %2688 = vmatmul.mubr.msk.bf16.gmra.mrb[72].mxu1 %vm357_vm2, %v2955_v47 }
  0xb7   : > { %2703 = vmatprep.mubr.msk.bf16.mxu0 %vm3060_vm0, %v3059_v1  ;;  %2791 = vmatprep.mubr.msk.bf16.mxu1 %vm3060_vm0, %v3059_v1 }
  0xbe   : > { %2704 = vmatmul.mubr.msk.bf16.vlgmr.msra.gmra.mrb[76].mxu0 %vm357_vm2, %v2956_v48  ;;  %2792 = vmatmul.mubr.msk.bf16.vlgmr.msra.gmra.mrb[76].mxu1 %vm357_vm2, %v2957_v49 }
  0xbf   : > { %2707 = vmatprep.mubr.msk.bf16.mxu0 %vm3060_vm0, %v3059_v1  ;;  %2795 = vmatprep.mubr.msk.bf16.mxu1 %vm3060_vm0, %v3059_v1 }
  0xc6   : > { %2708 = vmatmul.mubr.msk.bf16.gmra.mrb[80].mxu0 %vm357_vm2, %v2958_v50  ;;  %2796 = vmatmul.mubr.msk.bf16.gmra.mrb[80].mxu1 %vm357_vm2, %v2959_v51  ;;  %v2976_v50 = vld [vmem:[%s3164_s11 + $0x178] sm:$0xff]   ;;  %v2977_v51 = vld [vmem:[%s3164_s11 + $0x20c] sm:$0xff]  }
  0xc7   : > { %2711 = vmatprep.mubr.msk.bf16.mxu0 %vm3060_vm0, %v3059_v1  ;;  %2799 = vmatprep.mubr.msk.bf16.mxu1 %vm3060_vm0, %v3059_v1 }
  0xce   : > { %2712 = vmatmul.mubr.msk.bf16.gmra.mrb[84].mxu0 %vm357_vm2, %v2960_v52  ;;  %2800 = vmatmul.mubr.msk.bf16.gmra.mrb[84].mxu1 %vm357_vm2, %v2961_v53 }
  0xcf   : > { %2715 = vmatprep.mubr.msk.bf16.mxu0 %vm3060_vm0, %v3059_v1  ;;  %2803 = vmatprep.mubr.msk.bf16.mxu1 %vm3060_vm0, %v3059_v1 }
  0xd6   : > { %2716 = vmatmul.mubr.msk.bf16.gmra.mrb[88].mxu0 %vm357_vm2, %v2962_v54  ;;  %2804 = vmatmul.mubr.msk.bf16.gmra.mrb[88].mxu1 %vm357_vm2, %v2963_v55 }
  0xd7   : > { %2719 = vmatprep.mubr.msk.bf16.mxu0 %vm3060_vm0, %v3059_v1  ;;  %2807 = vmatprep.mubr.msk.bf16.mxu1 %vm3060_vm0, %v3059_v1 }
  0xde   : > { %2720 = vmatmul.mubr.msk.bf16.gmra.mrb[92].mxu0 %vm357_vm2, %v2964_v56  ;;  %2808 = vmatmul.mubr.msk.bf16.gmra.mrb[92].mxu1 %vm357_vm2, %v2965_v57 }
  0xdf   : > { %2723 = vmatprep.mubr.msk.bf16.mxu0 %vm3060_vm0, %v3059_v1  ;;  %2811 = vmatprep.mubr.msk.bf16.mxu1 %vm3060_vm0, %v3059_v1 }
  0xe6   : > { %2724 = vmatmul.mubr.msk.bf16.gmra.mrb[96].mxu0 %vm357_vm2, %v2966_v58  ;;  %2812 = vmatmul.mubr.msk.bf16.gmra.mrb[96].mxu1 %vm357_vm2, %v2967_v59 }
  0xe7   : > { %2727 = vmatprep.mubr.msk.bf16.mxu0 %vm3060_vm0, %v3059_v1  ;;  %2815 = vmatprep.mubr.msk.bf16.mxu1 %vm3060_vm0, %v3059_v1 }
  0xee   : > { %2728 = vmatmul.mubr.msk.bf16.gmra.mrb[100].mxu0 %vm357_vm2, %v2968_v60  ;;  %2816 = vmatmul.mubr.msk.bf16.gmra.mrb[100].mxu1 %vm357_vm2, %v2969_v61 }
  0xef   : > { %2731 = vmatprep.mubr.msk.bf16.mxu0 %vm3060_vm0, %v3059_v1  ;;  %2819 = vmatprep.mubr.msk.bf16.mxu1 %vm3060_vm0, %v3059_v1 }
  0xf6   : > { %2732 = vmatmul.mubr.msk.bf16.gmra.mrb[104].mxu0 %vm357_vm2, %v2970_v62  ;;  %2820 = vmatmul.mubr.msk.bf16.gmra.mrb[104].mxu1 %vm357_vm2, %v2971_v63 }
  0xf7   : > { %2735 = vmatprep.mubr.msk.bf16.mxu0 %vm3060_vm0, %v3059_v1  ;;  %2823 = vmatprep.mubr.msk.bf16.mxu1 %vm3060_vm0, %v3059_v1 }
  0xf9   : > { %v455_v2 = vpop.f32.mrb[0].mxu0  ;;  %v910_v3 = vpop.f32.mrb[0].mxu1 }
  0xfa   : > { %v456_v4 = vadd.f32 %v3400_v0, %v455_v2  ;;  %v911_v5 = vadd.f32 %v3400_v0, %v910_v3  ;;  %v2529_v6 = vpop.f32.mrb[1].mxu0  ;;  %v2617_v7 = vpop.f32.mrb[1].mxu1 }
  0xfb   : > { %v458_v10 = vpop.f32.mrb[2].mxu0  ;;  %v913_v11 = vpop.f32.mrb[2].mxu1 }
  0xfc   : > { %v459_v12 = vadd.f32 %v3400_v0, %v458_v10  ;;  %v914_v13 = vadd.f32 %v3400_v0, %v913_v11  ;;  %v2530_v14 = vpop.f32.mrb[3].mxu0  ;;  %v2618_v15 = vpop.f32.mrb[3].mxu1  ;;  %v605_v16 = vmax.f32 %v456_v4, 0.0  ;;  %v1060_v17 = vmax.f32 %v911_v5, 0.0  ;;  %v2978_v10 = vld [vmem:[%s3164_s11 + $0x180] sm:$0xff]   ;;  %v2979_v11 = vld [vmem:[%s3164_s11 + $0x214] sm:$0xff]  }
  0xfe   : > { %v606_v18 = vmax.f32 %v459_v12, 0.0  ;;  %v1061_v19 = vmax.f32 %v914_v13, 0.0  ;;  %2736 = vmatmul.mubr.msk.bf16.gmra.mrb[108].mxu0 %vm357_vm2, %v2972_v8  ;;  %2824 = vmatmul.mubr.msk.bf16.gmra.mrb[108].mxu1 %vm357_vm2, %v2973_v9 }
  0xff   : > { %2739 = vmatprep.mubr.msk.bf16.mxu0 %vm3060_vm0, %v3059_v1  ;;  %2827 = vmatprep.mubr.msk.bf16.mxu1 %vm3060_vm0, %v3059_v1 }
 0x100   : > { %v642_v20 = vadd.f32 %v606_v18, %v605_v16  ;;  %v1097_v21 = vadd.f32 %v1061_v19, %v1060_v17 }
 0x101   : > { %v463_v22 = vpop.f32.mrb[4].mxu0  ;;  %v918_v23 = vpop.f32.mrb[4].mxu1 }
 0x102   : > { %v464_v24 = vadd.f32 %v3400_v0, %v463_v22  ;;  %v919_v25 = vadd.f32 %v3400_v0, %v918_v23  ;;  %v2533_v26 = vpop.f32.mrb[5].mxu0  ;;  %v2621_v27 = vpop.f32.mrb[5].mxu1 }
 0x103   : > { %v466_v30 = vpop.f32.mrb[6].mxu0  ;;  %v921_v31 = vpop.f32.mrb[6].mxu1 }
 0x104   : > { %v607_v32 = vmax.f32 %v464_v24, 0.0  ;;  %v1062_v33 = vmax.f32 %v919_v25, 0.0  ;;  %v467_v34 = vadd.f32 %v3400_v0, %v466_v30  ;;  %v922_v35 = vadd.f32 %v3400_v0, %v921_v31  ;;  %v2534_v36 = vpop.f32.mrb[7].mxu0  ;;  %v2622_v37 = vpop.f32.mrb[7].mxu1 }
 0x106   : > { %v643_v38 = vadd.f32 %v642_v20, %v607_v32  ;;  %v1098_v39 = vadd.f32 %v1097_v21, %v1062_v33  ;;  %v608_v40 = vmax.f32 %v467_v34, 0.0  ;;  %v1063_v41 = vmax.f32 %v922_v35, 0.0  ;;  %2740 = vmatmul.mubr.msk.bf16.gmra.mrb[112].mxu0 %vm357_vm2, %v2974_v28  ;;  %2828 = vmatmul.mubr.msk.bf16.gmra.mrb[112].mxu1 %vm357_vm2, %v2975_v29  ;;  %v2980_v32 = vld [vmem:[%s3164_s11 + $0x188] sm:$0xff]   ;;  %v2981_v33 = vld [vmem:[%s3164_s11 + $0x21c] sm:$0xff]  }
 0x107   : > { %2743 = vmatprep.mubr.msk.bf16.mxu0 %vm3060_vm0, %v3059_v1  ;;  %2831 = vmatprep.mubr.msk.bf16.mxu1 %vm3060_vm0, %v3059_v1 }
 0x108   : > { %v644_v42 = vadd.f32 %v643_v38, %v608_v40  ;;  %v1099_v43 = vadd.f32 %v1098_v39, %v1063_v41 }
 0x109   : > { %v471_v44 = vpop.f32.mrb[8].mxu0  ;;  %v926_v45 = vpop.f32.mrb[8].mxu1 }
 0x10a   : > { %v472_v46 = vadd.f32 %v3400_v0, %v471_v44  ;;  %v927_v47 = vadd.f32 %v3400_v0, %v926_v45  ;;  %v2537_v48 = vpop.f32.mrb[9].mxu0  ;;  %v2625_v49 = vpop.f32.mrb[9].mxu1 }
 0x10b   : > { %v474_v52 = vpop.f32.mrb[10].mxu0  ;;  %v929_v53 = vpop.f32.mrb[10].mxu1 }
 0x10c   : > { %v609_v54 = vmax.f32 %v472_v46, 0.0  ;;  %v1064_v55 = vmax.f32 %v927_v47, 0.0  ;;  %v475_v56 = vadd.f32 %v3400_v0, %v474_v52  ;;  %v930_v57 = vadd.f32 %v3400_v0, %v929_v53  ;;  %v2538_v58 = vpop.f32.mrb[11].mxu0  ;;  %v2626_v59 = vpop.f32.mrb[11].mxu1 }
 0x10e   : > { %v645_v60 = vadd.f32 %v644_v42, %v609_v54  ;;  %v1100_v61 = vadd.f32 %v1099_v43, %v1064_v55  ;;  %v610_v62 = vmax.f32 %v475_v56, 0.0  ;;  %v1065_v63 = vmax.f32 %v930_v57, 0.0  ;;  %2744 = vmatmul.mubr.msk.bf16.gmra.mrb[116].mxu0 %vm357_vm2, %v2976_v50  ;;  %2832 = vmatmul.mubr.msk.bf16.gmra.mrb[116].mxu1 %vm357_vm2, %v2977_v51  ;;  %v2982_v54 = vld [vmem:[%s3164_s11 + $0x190] sm:$0xff]   ;;  %v2983_v55 = vld [vmem:[%s3164_s11 + $0x224] sm:$0xff]  }
 0x10f   : > { %2747 = vmatprep.mubr.msk.bf16.mxu0 %vm3060_vm0, %v3059_v1  ;;  %2835 = vmatprep.mubr.msk.bf16.mxu1 %vm3060_vm0, %v3059_v1 }
 0x110   : > { %v646_v2 = vadd.f32 %v645_v60, %v610_v62  ;;  %v1101_v3 = vadd.f32 %v1100_v61, %v1065_v63 }
 0x111   : > { %v479_v4 = vpop.f32.mrb[12].mxu0  ;;  %v934_v5 = vpop.f32.mrb[12].mxu1 }
 0x112   : > { %v480_v6 = vadd.f32 %v3400_v0, %v479_v4  ;;  %v935_v7 = vadd.f32 %v3400_v0, %v934_v5  ;;  %v2541_v8 = vpop.f32.mrb[13].mxu0  ;;  %v2629_v9 = vpop.f32.mrb[13].mxu1 }
 0x113   : > { %v482_v12 = vpop.f32.mrb[14].mxu0  ;;  %v937_v13 = vpop.f32.mrb[14].mxu1 }
 0x114   : > { %v611_v14 = vmax.f32 %v480_v6, 0.0  ;;  %v1066_v15 = vmax.f32 %v935_v7, 0.0  ;;  %v483_v16 = vadd.f32 %v3400_v0, %v482_v12  ;;  %v938_v17 = vadd.f32 %v3400_v0, %v937_v13  ;;  %v2542_v18 = vpop.f32.mrb[15].mxu0  ;;  %v2630_v19 = vpop.f32.mrb[15].mxu1 }
 0x116   : > { %v647_v20 = vadd.f32 %v646_v2, %v611_v14  ;;  %v1102_v21 = vadd.f32 %v1101_v3, %v1066_v15  ;;  %v612_v22 = vmax.f32 %v483_v16, 0.0  ;;  %v1067_v23 = vmax.f32 %v938_v17, 0.0  ;;  %2748 = vmatmul.mubr.msk.bf16.gmra.mrb[120].mxu0 %vm357_vm2, %v2978_v10  ;;  %2836 = vmatmul.mubr.msk.bf16.gmra.mrb[120].mxu1 %vm357_vm2, %v2979_v11  ;;  %v2984_v14 = vld [vmem:[%s3164_s11 + $0x198] sm:$0xff]   ;;  %v2985_v15 = vld [vmem:[%s3164_s11 + $0x22c] sm:$0xff]  }
 0x117   : > { %2751 = vmatprep.mubr.msk.bf16.mxu0 %vm3060_vm0, %v3059_v1  ;;  %2839 = vmatprep.mubr.msk.bf16.mxu1 %vm3060_vm0, %v3059_v1 }
 0x118   : > { %v648_v24 = vadd.f32 %v647_v20, %v612_v22  ;;  %v1103_v25 = vadd.f32 %v1102_v21, %v1067_v23 }
 0x119   : > { %v487_v26 = vpop.f32.mrb[16].mxu0  ;;  %v942_v27 = vpop.f32.mrb[16].mxu1 }
 0x11a   : > { %v488_v28 = vadd.f32 %v3400_v0, %v487_v26  ;;  %v943_v29 = vadd.f32 %v3400_v0, %v942_v27  ;;  %v2545_v30 = vpop.f32.mrb[17].mxu0  ;;  %v2633_v31 = vpop.f32.mrb[17].mxu1 }
 0x11b   : > { %v490_v34 = vpop.f32.mrb[18].mxu0  ;;  %v945_v35 = vpop.f32.mrb[18].mxu1 }
 0x11c   : > { %v613_v36 = vmax.f32 %v488_v28, 0.0  ;;  %v1068_v37 = vmax.f32 %v943_v29, 0.0  ;;  %v491_v38 = vadd.f32 %v3400_v0, %v490_v34  ;;  %v946_v39 = vadd.f32 %v3400_v0, %v945_v35  ;;  %v2546_v40 = vpop.f32.mrb[19].mxu0  ;;  %v2634_v41 = vpop.f32.mrb[19].mxu1 }
 0x11e   : > { %v649_v42 = vadd.f32 %v648_v24, %v613_v36  ;;  %v1104_v43 = vadd.f32 %v1103_v25, %v1068_v37  ;;  %v614_v44 = vmax.f32 %v491_v38, 0.0  ;;  %v1069_v45 = vmax.f32 %v946_v39, 0.0  ;;  %2752 = vmatmul.mubr.msk.bf16.gmra.mrb[124].mxu0 %vm357_vm2, %v2980_v32  ;;  %2840 = vmatmul.mubr.msk.bf16.gmra.mrb[124].mxu1 %vm357_vm2, %v2981_v33  ;;  %v2986_v36 = vld [vmem:[%s3164_s11 + $0x1a0] sm:$0xff]   ;;  %v2987_v37 = vld [vmem:[%s3164_s11 + $0x234] sm:$0xff]  }
 0x11f   : > { %2755 = vmatprep.mubr.msk.bf16.mxu0 %vm3060_vm0, %v3059_v1  ;;  %2843 = vmatprep.mubr.msk.bf16.mxu1 %vm3060_vm0, %v3059_v1 }
 0x120   : > { %v650_v46 = vadd.f32 %v649_v42, %v614_v44  ;;  %v1105_v47 = vadd.f32 %v1104_v43, %v1069_v45 }
 0x121   : > { %v495_v48 = vpop.f32.mrb[20].mxu0  ;;  %v950_v49 = vpop.f32.mrb[20].mxu1 }
 0x122   : > { %v496_v50 = vadd.f32 %v3400_v0, %v495_v48  ;;  %v951_v51 = vadd.f32 %v3400_v0, %v950_v49  ;;  %v2549_v52 = vpop.f32.mrb[21].mxu0  ;;  %v2637_v53 = vpop.f32.mrb[21].mxu1 }
 0x123   : > { %v498_v56 = vpop.f32.mrb[22].mxu0  ;;  %v953_v57 = vpop.f32.mrb[22].mxu1 }
 0x124   : > { %v615_v58 = vmax.f32 %v496_v50, 0.0  ;;  %v1070_v59 = vmax.f32 %v951_v51, 0.0  ;;  %v499_v60 = vadd.f32 %v3400_v0, %v498_v56  ;;  %v954_v61 = vadd.f32 %v3400_v0, %v953_v57  ;;  %v2550_v62 = vpop.f32.mrb[23].mxu0  ;;  %v2638_v63 = vpop.f32.mrb[23].mxu1 }
 0x126   : > { %v651_v2 = vadd.f32 %v650_v46, %v615_v58  ;;  %v1106_v3 = vadd.f32 %v1105_v47, %v1070_v59  ;;  %v616_v4 = vmax.f32 %v499_v60, 0.0  ;;  %v1071_v5 = vmax.f32 %v954_v61, 0.0  ;;  %2756 = vmatmul.mubr.msk.bf16.gmra.mrb[128].mxu0 %vm357_vm2, %v2982_v54  ;;  %2844 = vmatmul.mubr.msk.bf16.gmra.mrb[128].mxu1 %vm357_vm2, %v2983_v55  ;;  %v2988_v58 = vld [vmem:[%s3164_s11 + $0x1a8] sm:$0xff]   ;;  %v2989_v59 = vld [vmem:[%s3164_s11 + $0x23c] sm:$0xff]  }
 0x127   : > { %2759 = vmatprep.mubr.msk.bf16.mxu0 %vm3060_vm0, %v3059_v1  ;;  %2847 = vmatprep.mubr.msk.bf16.mxu1 %vm3060_vm0, %v3059_v1 }
 0x128   : > { %v652_v6 = vadd.f32 %v651_v2, %v616_v4  ;;  %v1107_v7 = vadd.f32 %v1106_v3, %v1071_v5 }
 0x129   : > { %v503_v8 = vpop.f32.mrb[24].mxu0  ;;  %v958_v9 = vpop.f32.mrb[24].mxu1 }
 0x12a   : > { %v504_v10 = vadd.f32 %v3400_v0, %v503_v8  ;;  %v959_v11 = vadd.f32 %v3400_v0, %v958_v9  ;;  %v2553_v12 = vpop.f32.mrb[25].mxu0  ;;  %v2641_v13 = vpop.f32.mrb[25].mxu1 }
 0x12b   : > { %v506_v16 = vpop.f32.mrb[26].mxu0  ;;  %v961_v17 = vpop.f32.mrb[26].mxu1 }
 0x12c   : > { %v617_v18 = vmax.f32 %v504_v10, 0.0  ;;  %v1072_v19 = vmax.f32 %v959_v11, 0.0  ;;  %v507_v20 = vadd.f32 %v3400_v0, %v506_v16  ;;  %v962_v21 = vadd.f32 %v3400_v0, %v961_v17  ;;  %v2554_v22 = vpop.f32.mrb[27].mxu0  ;;  %v2642_v23 = vpop.f32.mrb[27].mxu1 }
 0x12e   : > { %v653_v24 = vadd.f32 %v652_v6, %v617_v18  ;;  %v1108_v25 = vadd.f32 %v1107_v7, %v1072_v19  ;;  %v618_v26 = vmax.f32 %v507_v20, 0.0  ;;  %v1073_v27 = vmax.f32 %v962_v21, 0.0  ;;  %2760 = vmatmul.mubr.msk.bf16.gmra.mrb[132].mxu0 %vm357_vm2, %v2984_v14  ;;  %2848 = vmatmul.mubr.msk.bf16.gmra.mrb[132].mxu1 %vm357_vm2, %v2985_v15  ;;  %v2990_v18 = vld [vmem:[%s3164_s11 + $0x1b0] sm:$0xff]   ;;  %v2991_v19 = vld [vmem:[%s3164_s11 + $0x244] sm:$0xff]  }
 0x12f   : > { %2763 = vmatprep.mubr.msk.bf16.mxu0 %vm3060_vm0, %v3059_v1  ;;  %2851 = vmatprep.mubr.msk.bf16.mxu1 %vm3060_vm0, %v3059_v1 }
 0x130   : > { %v654_v28 = vadd.f32 %v653_v24, %v618_v26  ;;  %v1109_v29 = vadd.f32 %v1108_v25, %v1073_v27 }
 0x131   : > { %v511_v30 = vpop.f32.mrb[28].mxu0  ;;  %v966_v31 = vpop.f32.mrb[28].mxu1 }
 0x132   : > { %v512_v32 = vadd.f32 %v3400_v0, %v511_v30  ;;  %v967_v33 = vadd.f32 %v3400_v0, %v966_v31  ;;  %v2557_v34 = vpop.f32.mrb[29].mxu0  ;;  %v2645_v35 = vpop.f32.mrb[29].mxu1 }
 0x133   : > { %v514_v38 = vpop.f32.mrb[30].mxu0  ;;  %v969_v39 = vpop.f32.mrb[30].mxu1 }
 0x134   : > { %v619_v40 = vmax.f32 %v512_v32, 0.0  ;;  %v1074_v41 = vmax.f32 %v967_v33, 0.0  ;;  %v515_v42 = vadd.f32 %v3400_v0, %v514_v38  ;;  %v970_v43 = vadd.f32 %v3400_v0, %v969_v39  ;;  %v2558_v44 = vpop.f32.mrb[31].mxu0  ;;  %v2646_v45 = vpop.f32.mrb[31].mxu1 }
 0x136   : > { %v655_v46 = vadd.f32 %v654_v28, %v619_v40  ;;  %v1110_v47 = vadd.f32 %v1109_v29, %v1074_v41  ;;  %v620_v48 = vmax.f32 %v515_v42, 0.0  ;;  %v1075_v49 = vmax.f32 %v970_v43, 0.0  ;;  %2764 = vmatmul.mubr.msk.bf16.gmra.mrb[136].mxu0 %vm357_vm2, %v2986_v36  ;;  %2852 = vmatmul.mubr.msk.bf16.gmra.mrb[136].mxu1 %vm357_vm2, %v2987_v37  ;;  %v2992_v36 = vld [vmem:[%s3164_s11 + $0x1b8] ss:$0 sps:$4 sm:$0x77]  }
 0x137   : > { %2767 = vmatprep.mubr.msk.bf16.mxu0 %vm3060_vm0, %v3059_v1  ;;  %2855 = vmatprep.mubr.msk.bf16.mxu1 %vm3060_vm0, %v3059_v1  ;;  %v2993_v41 = vld [vmem:[%s3164_s11 + $0x24c] ss:$0 sps:$4 sm:$0x77]   ;;  %s3001_s11 = scalar_lea.vmem %s3000_s10, 128 }
 0x138   : > { %v656_v50 = vadd.f32 %v655_v46, %v620_v48  ;;  %v1111_v51 = vadd.f32 %v1110_v47, %v1075_v49  ;;  %p3003_p1 = scmp.lt.s32.totalorder %s3001_s11, %s2995_s16 }
 0x139   : > { %v519_v52 = vpop.f32.mrb[32].mxu0  ;;  %v974_v53 = vpop.f32.mrb[32].mxu1 }
 0x13a   : > { %v520_v54 = vadd.f32 %v3400_v0, %v519_v52  ;;  %v975_v55 = vadd.f32 %v3400_v0, %v974_v53  ;;  %v2561_v56 = vpop.f32.mrb[33].mxu0  ;;  %v2649_v57 = vpop.f32.mrb[33].mxu1  ;;  %p3004_p2 = por %p3003_p1, %p3002_p0 }
 0x13b   : > { %v522_v60 = vpop.f32.mrb[34].mxu0  ;;  %v977_v61 = vpop.f32.mrb[34].mxu1 }
 0x13c   : > { %v621_v62 = vmax.f32 %v520_v54, 0.0  ;;  %v1076_v63 = vmax.f32 %v975_v55, 0.0  ;;  %v523_v2 = vadd.f32 %v3400_v0, %v522_v60  ;;  %v978_v3 = vadd.f32 %v3400_v0, %v977_v61  ;;  %v2562_v4 = vpop.f32.mrb[35].mxu0  ;;  %v2650_v5 = vpop.f32.mrb[35].mxu1  ;;  %p3005_p3 = pnand %p3004_p2, %p2998_p13 }
 0x13e   : > { %v657_v6 = vadd.f32 %v656_v50, %v621_v62  ;;  %v1112_v7 = vadd.f32 %v1111_v51, %v1076_v63  ;;  %v622_v8 = vmax.f32 %v523_v2, 0.0  ;;  %v1077_v9 = vmax.f32 %v978_v3, 0.0  ;;  %2768 = vmatmul.mubr.msk.bf16.gmra.mrb[140].mxu0 %vm357_vm2, %v2988_v58  ;;  %2856 = vmatmul.mubr.msk.bf16.gmra.mrb[140].mxu1 %vm357_vm2, %v2989_v59 }
 0x13f   : > { %2771 = vmatprep.mubr.msk.bf16.mxu0 %vm3060_vm0, %v3059_v1  ;;  %2859 = vmatprep.mubr.msk.bf16.mxu1 %vm3060_vm0, %v3059_v1 }
 0x140   : > { %v658_v10 = vadd.f32 %v657_v6, %v622_v8  ;;  %v1113_v11 = vadd.f32 %v1112_v7, %v1077_v9 }
 0x141   : > { %v527_v12 = vpop.f32.mrb[36].mxu0  ;;  %v982_v13 = vpop.f32.mrb[36].mxu1 }
 0x142   : > { %v528_v14 = vadd.f32 %v3400_v0, %v527_v12  ;;  %v983_v15 = vadd.f32 %v3400_v0, %v982_v13  ;;  %v2565_v16 = vpop.f32.mrb[37].mxu0  ;;  %v2653_v17 = vpop.f32.mrb[37].mxu1 }
 0x143   : > { %v530_v20 = vpop.f32.mrb[38].mxu0  ;;  %v985_v21 = vpop.f32.mrb[38].mxu1 }
 0x144   : > { %v623_v22 = vmax.f32 %v528_v14, 0.0  ;;  %v1078_v23 = vmax.f32 %v983_v15, 0.0  ;;  %v531_v24 = vadd.f32 %v3400_v0, %v530_v20  ;;  %v986_v25 = vadd.f32 %v3400_v0, %v985_v21  ;;  %v2566_v26 = vpop.f32.mrb[39].mxu0  ;;  %v2654_v27 = vpop.f32.mrb[39].mxu1 }
 0x146   : > { %v659_v28 = vadd.f32 %v658_v10, %v623_v22  ;;  %v1114_v29 = vadd.f32 %v1113_v11, %v1078_v23  ;;  %v624_v30 = vmax.f32 %v531_v24, 0.0  ;;  %v1079_v31 = vmax.f32 %v986_v25, 0.0  ;;  %2772 = vmatmul.mubr.msk.bf16.gmra.mrb[144].mxu0 %vm357_vm2, %v2990_v18  ;;  %2860 = vmatmul.mubr.msk.bf16.gmra.mrb[144].mxu1 %vm357_vm2, %v2991_v19 }
 0x147   : > { %2775 = vmatprep.mubr.msk.bf16.mxu0 %vm3060_vm0, %v3059_v1  ;;  %2863 = vmatprep.mubr.msk.bf16.mxu1 %vm3060_vm0, %v3059_v1 }
 0x148   : > { %v660_v32 = vadd.f32 %v659_v28, %v624_v30  ;;  %v1115_v33 = vadd.f32 %v1114_v29, %v1079_v31 }
 0x149   : > { %v535_v34 = vpop.f32.mrb[40].mxu0  ;;  %v990_v35 = vpop.f32.mrb[40].mxu1 }
 0x14a   : > { %v536_v37 = vadd.f32 %v3400_v0, %v535_v34  ;;  %v991_v38 = vadd.f32 %v3400_v0, %v990_v35  ;;  %v2569_v39 = vpop.f32.mrb[41].mxu0  ;;  %v2657_v40 = vpop.f32.mrb[41].mxu1 }
 0x14b   : > { %v538_v42 = vpop.f32.mrb[42].mxu0  ;;  %v993_v43 = vpop.f32.mrb[42].mxu1 }
 0x14c   : > { %v625_v44 = vmax.f32 %v536_v37, 0.0  ;;  %v1080_v45 = vmax.f32 %v991_v38, 0.0  ;;  %v539_v46 = vadd.f32 %v3400_v0, %v538_v42  ;;  %v994_v1 = vadd.f32 %v3400_v0, %v993_v43  ;;  %v2570_v47 = vpop.f32.mrb[43].mxu0  ;;  %v2658_v48 = vpop.f32.mrb[43].mxu1 }
 0x14e   : > { %v661_v49 = vadd.f32 %v660_v32, %v625_v44  ;;  %v1116_v50 = vadd.f32 %v1115_v33, %v1080_v45  ;;  %v626_v51 = vmax.f32 %v539_v46, 0.0  ;;  %v1081_v52 = vmax.f32 %v994_v1, 0.0  ;;  %2776 = vmatmul.mubr.msk.bf16.gmra.mrb[148].mxu0 %vm357_vm2, %v2992_v36  ;;  %2864 = vmatmul.mubr.msk.bf16.gmra.mrb[148].mxu1 %vm357_vm2, %v2993_v41 }
 0x150   : > { %v662_v53 = vadd.f32 %v661_v49, %v626_v51  ;;  %v1117_v54 = vadd.f32 %v1116_v50, %v1081_v52 }
 0x151   : > { %v543_v55 = vpop.f32.mrb[44].mxu0  ;;  %v998_v56 = vpop.f32.mrb[44].mxu1 }
 0x152   : > { %v544_v57 = vadd.f32 %v3400_v0, %v543_v55  ;;  %v999_v58 = vadd.f32 %v3400_v0, %v998_v56  ;;  %v2573_v59 = vpop.f32.mrb[45].mxu0  ;;  %v2661_v60 = vpop.f32.mrb[45].mxu1 }
 0x153   : > { %v546_v61 = vpop.f32.mrb[46].mxu0  ;;  %v1001_v62 = vpop.f32.mrb[46].mxu1 }
 0x154   : > { %v627_v63 = vmax.f32 %v544_v57, 0.0  ;;  %v1082_v2 = vmax.f32 %v999_v58, 0.0  ;;  %v547_v3 = vadd.f32 %v3400_v0, %v546_v61  ;;  %v1002_v4 = vadd.f32 %v3400_v0, %v1001_v62  ;;  %v2574_v5 = vpop.f32.mrb[47].mxu0  ;;  %v2662_v6 = vpop.f32.mrb[47].mxu1 }
 0x156   : > { %v663_v7 = vadd.f32 %v662_v53, %v627_v63  ;;  %v1118_v8 = vadd.f32 %v1117_v54, %v1082_v2  ;;  %v628_v9 = vmax.f32 %v547_v3, 0.0  ;;  %v1083_v10 = vmax.f32 %v1002_v4, 0.0 }
 0x158   : > { %v664_v11 = vadd.f32 %v663_v7, %v628_v9  ;;  %v1119_v12 = vadd.f32 %v1118_v8, %v1083_v10 }
 0x159   : > { %v551_v13 = vpop.f32.mrb[48].mxu0  ;;  %v1006_v14 = vpop.f32.mrb[48].mxu1 }
 0x15a   : > { %v552_v15 = vadd.f32 %v3400_v0, %v551_v13  ;;  %v1007_v16 = vadd.f32 %v3400_v0, %v1006_v14  ;;  %v2577_v17 = vpop.f32.mrb[49].mxu0  ;;  %v2665_v18 = vpop.f32.mrb[49].mxu1 }
 0x15b   : > { %v554_v19 = vpop.f32.mrb[50].mxu0  ;;  %v1009_v20 = vpop.f32.mrb[50].mxu1 }
 0x15c   : > { %v629_v21 = vmax.f32 %v552_v15, 0.0  ;;  %v1084_v22 = vmax.f32 %v1007_v16, 0.0  ;;  %v555_v23 = vadd.f32 %v3400_v0, %v554_v19  ;;  %v1010_v24 = vadd.f32 %v3400_v0, %v1009_v20  ;;  %v2578_v25 = vpop.f32.mrb[51].mxu0  ;;  %v2666_v26 = vpop.f32.mrb[51].mxu1 }
 0x15e   : > { %v665_v27 = vadd.f32 %v664_v11, %v629_v21  ;;  %v1120_v28 = vadd.f32 %v1119_v12, %v1084_v22  ;;  %v630_v29 = vmax.f32 %v555_v23, 0.0  ;;  %v1085_v30 = vmax.f32 %v1010_v24, 0.0 }
 0x160   : > { %v666_v31 = vadd.f32 %v665_v27, %v630_v29  ;;  %v1121_v32 = vadd.f32 %v1120_v28, %v1085_v30 }
 0x161   : > { %v559_v33 = vpop.f32.mrb[52].mxu0  ;;  %v1014_v34 = vpop.f32.mrb[52].mxu1 }
 0x162   : > { %v560_v35 = vadd.f32 %v3400_v0, %v559_v33  ;;  %v1015_v36 = vadd.f32 %v3400_v0, %v1014_v34  ;;  %v2581_v37 = vpop.f32.mrb[53].mxu0  ;;  %v2669_v38 = vpop.f32.mrb[53].mxu1 }
 0x163   : > { %v562_v39 = vpop.f32.mrb[54].mxu0  ;;  %v1017_v40 = vpop.f32.mrb[54].mxu1 }
 0x164   : > { %v631_v41 = vmax.f32 %v560_v35, 0.0  ;;  %v1086_v42 = vmax.f32 %v1015_v36, 0.0  ;;  %v563_v43 = vadd.f32 %v3400_v0, %v562_v39  ;;  %v1018_v44 = vadd.f32 %v3400_v0, %v1017_v40  ;;  %v2582_v45 = vpop.f32.mrb[55].mxu0  ;;  %v2670_v46 = vpop.f32.mrb[55].mxu1 }
 0x166   : > { %v667_v1 = vadd.f32 %v666_v31, %v631_v41  ;;  %v1122_v47 = vadd.f32 %v1121_v32, %v1086_v42  ;;  %v632_v48 = vmax.f32 %v563_v43, 0.0  ;;  %v1087_v49 = vmax.f32 %v1018_v44, 0.0 }
 0x168   : > { %v668_v50 = vadd.f32 %v667_v1, %v632_v48  ;;  %v1123_v51 = vadd.f32 %v1122_v47, %v1087_v49 }
 0x169   : > { %v567_v52 = vpop.f32.mrb[56].mxu0  ;;  %v1022_v53 = vpop.f32.mrb[56].mxu1 }
 0x16a   : > { %v568_v54 = vadd.f32 %v3400_v0, %v567_v52  ;;  %v1023_v55 = vadd.f32 %v3400_v0, %v1022_v53  ;;  %v2585_v56 = vpop.f32.mrb[57].mxu0  ;;  %v2673_v57 = vpop.f32.mrb[57].mxu1 }
 0x16b   : > { %v570_v58 = vpop.f32.mrb[58].mxu0  ;;  %v1025_v59 = vpop.f32.mrb[58].mxu1 }
 0x16c   : > { %v633_v60 = vmax.f32 %v568_v54, 0.0  ;;  %v1088_v61 = vmax.f32 %v1023_v55, 0.0  ;;  %v571_v62 = vadd.f32 %v3400_v0, %v570_v58  ;;  %v1026_v63 = vadd.f32 %v3400_v0, %v1025_v59  ;;  %v2586_v2 = vpop.f32.mrb[59].mxu0  ;;  %v2674_v3 = vpop.f32.mrb[59].mxu1 }
 0x16e   : > { %v669_v4 = vadd.f32 %v668_v50, %v633_v60  ;;  %v1124_v5 = vadd.f32 %v1123_v51, %v1088_v61  ;;  %v634_v6 = vmax.f32 %v571_v62, 0.0  ;;  %v1089_v7 = vmax.f32 %v1026_v63, 0.0 }
 0x170   : > { %v670_v8 = vadd.f32 %v669_v4, %v634_v6  ;;  %v1125_v9 = vadd.f32 %v1124_v5, %v1089_v7 }
 0x171   : > { %v575_v10 = vpop.f32.mrb[60].mxu0  ;;  %v1030_v11 = vpop.f32.mrb[60].mxu1 }
 0x172   : > { %v576_v12 = vadd.f32 %v3400_v0, %v575_v10  ;;  %v1031_v13 = vadd.f32 %v3400_v0, %v1030_v11  ;;  %v2589_v14 = vpop.f32.mrb[61].mxu0  ;;  %v2677_v15 = vpop.f32.mrb[61].mxu1 }
 0x173   : > { %v578_v16 = vpop.f32.mrb[62].mxu0  ;;  %v1033_v17 = vpop.f32.mrb[62].mxu1 }
 0x174   : > { %v635_v18 = vmax.f32 %v576_v12, 0.0  ;;  %v1090_v19 = vmax.f32 %v1031_v13, 0.0  ;;  %v579_v20 = vadd.f32 %v3400_v0, %v578_v16  ;;  %v1034_v21 = vadd.f32 %v3400_v0, %v1033_v17  ;;  %v2590_v22 = vpop.f32.mrb[63].mxu0  ;;  %v2678_v23 = vpop.f32.mrb[63].mxu1 }
 0x176   : > { %v671_v24 = vadd.f32 %v670_v8, %v635_v18  ;;  %v1126_v25 = vadd.f32 %v1125_v9, %v1090_v19  ;;  %v636_v26 = vmax.f32 %v579_v20, 0.0  ;;  %v1091_v27 = vmax.f32 %v1034_v21, 0.0 }
 0x178   : > { %v672_v28 = vadd.f32 %v671_v24, %v636_v26  ;;  %v1127_v29 = vadd.f32 %v1126_v25, %v1091_v27 }
 0x179   : > { %v583_v30 = vpop.f32.mrb[64].mxu0  ;;  %v1038_v31 = vpop.f32.mrb[64].mxu1 }
 0x17a   : > { %v584_v32 = vadd.f32 %v3400_v0, %v583_v30  ;;  %v1039_v33 = vadd.f32 %v3400_v0, %v1038_v31  ;;  %v2593_v34 = vpop.f32.mrb[65].mxu0  ;;  %v2681_v35 = vpop.f32.mrb[65].mxu1 }
 0x17b   : > { %v586_v36 = vpop.f32.mrb[66].mxu0  ;;  %v1041_v37 = vpop.f32.mrb[66].mxu1 }
 0x17c   : > { %v637_v38 = vmax.f32 %v584_v32, 0.0  ;;  %v1092_v39 = vmax.f32 %v1039_v33, 0.0  ;;  %v587_v40 = vadd.f32 %v3400_v0, %v586_v36  ;;  %v1042_v41 = vadd.f32 %v3400_v0, %v1041_v37  ;;  %v2594_v42 = vpop.f32.mrb[67].mxu0  ;;  %v2682_v43 = vpop.f32.mrb[67].mxu1 }
 0x17e   : > { %v673_v44 = vadd.f32 %v672_v28, %v637_v38  ;;  %v1128_v45 = vadd.f32 %v1127_v29, %v1092_v39  ;;  %v638_v46 = vmax.f32 %v587_v40, 0.0  ;;  %v1093_v1 = vmax.f32 %v1042_v41, 0.0 }
 0x180   : > { %v674_v47 = vadd.f32 %v673_v44, %v638_v46  ;;  %v1129_v48 = vadd.f32 %v1128_v45, %v1093_v1 }
 0x181   : > { %v591_v49 = vpop.f32.mrb[68].mxu0  ;;  %v1046_v50 = vpop.f32.mrb[68].mxu1 }
 0x182   : > { %v592_v51 = vadd.f32 %v3400_v0, %v591_v49  ;;  %v1047_v52 = vadd.f32 %v3400_v0, %v1046_v50  ;;  %v2597_v53 = vpop.f32.mrb[69].mxu0  ;;  %v2685_v54 = vpop.f32.mrb[69].mxu1 }
 0x183   : > { %v594_v55 = vpop.f32.mrb[70].mxu0  ;;  %v1049_v56 = vpop.f32.mrb[70].mxu1 }
 0x184   : > { %v639_v57 = vmax.f32 %v592_v51, 0.0  ;;  %v1094_v58 = vmax.f32 %v1047_v52, 0.0  ;;  %v595_v59 = vadd.f32 %v3400_v0, %v594_v55  ;;  %v1050_v60 = vadd.f32 %v3400_v0, %v1049_v56  ;;  %v2598_v61 = vpop.f32.mrb[71].mxu0  ;;  %v2686_v62 = vpop.f32.mrb[71].mxu1 }
 0x186   : > { %v675_v63 = vadd.f32 %v674_v47, %v639_v57  ;;  %v1130_v2 = vadd.f32 %v1129_v48, %v1094_v58  ;;  %v640_v3 = vmax.f32 %v595_v59, 0.0  ;;  %v1095_v4 = vmax.f32 %v1050_v60, 0.0 }
 0x188   : > { %v676_v5 = vadd.f32 %v675_v63, %v640_v3  ;;  %v1131_v6 = vadd.f32 %v1130_v2, %v1095_v4 }
 0x189   : > { %v599_v7 = vpop.f32.mrb[72].mxu0  ;;  %v1054_v8 = vpop.f32.mrb[72].mxu1 }
 0x18a   : > { %v600_v9 = vadd.f32 %v3400_v0, %v599_v7  ;;  %v1055_v10 = vadd.f32 %v3400_v0, %v1054_v8  ;;  %v2601_v11 = vpop.f32.mrb[73].mxu0  ;;  %v2689_v12 = vpop.f32.mrb[73].mxu1 }
 0x18b   : > { %v602_v13 = vpop.f32.mrb[74].mxu0  ;;  %v1057_v14 = vpop.f32.mrb[74].mxu1 }
 0x18c   : > { %v641_v15 = vmax.f32 %v600_v9, 0.0  ;;  %v1096_v16 = vmax.f32 %v1055_v10, 0.0  ;;  %v2602_v17 = vpop.f32.mrb[75].mxu0  ;;  %v2690_v18 = vpop.f32.mrb[75].mxu1 }
 0x18e   : > { %v678_v19 = vsel %vm677_vm3, %v641_v15, 0.0  ;;  %v1132_v20 = vsel %vm677_vm3, %v1096_v16, 0.0 }
 0x18f   : > { %v679_v21 = vadd.f32 %v678_v19, %v676_v5  ;;  %v1133_v22 = vadd.f32 %v1132_v20, %v1131_v6 }
 0x191   : > { %v680_v23 = vrot.slane %v679_v21, 4  ;;  %v1134_v24 = vrot.slane %v1133_v22, 4  ;;  %v1365_v25 = vpop.f32.mrb[76].mxu0  ;;  %v1820_v26 = vpop.f32.mrb[76].mxu1 }
 0x192   : > { %v1366_v27 = vadd.f32 %v3400_v0, %v1365_v25  ;;  %v1821_v28 = vadd.f32 %v3400_v0, %v1820_v26  ;;  %v2705_v29 = vpop.f32.mrb[77].mxu0  ;;  %v2793_v30 = vpop.f32.mrb[77].mxu1 }
 0x193   : > { %v681_v31 = vadd.f32 %v680_v23, %v679_v21  ;;  %v1135_v32 = vadd.f32 %v1134_v24, %v1133_v22  ;;  %v1368_v33 = vpop.f32.mrb[78].mxu0  ;;  %v1823_v34 = vpop.f32.mrb[78].mxu1 }
 0x194   : > { %v1369_v35 = vadd.f32 %v3400_v0, %v1368_v33  ;;  %v1824_v36 = vadd.f32 %v3400_v0, %v1823_v34  ;;  %v2706_v37 = vpop.f32.mrb[79].mxu0  ;;  %v2794_v38 = vpop.f32.mrb[79].mxu1  ;;  %v1515_v41 = vmax.f32 %v1366_v27, 0.0  ;;  %v1970_v42 = vmax.f32 %v1821_v28, 0.0  ;;  %v3588_v34 = vld [vmem:[%s3710_s2] ss:$0 sm:$0xff] }
 0x195   : > { %v682_v39 = vrot.slane %v681_v31, 2  ;;  %v1136_v40 = vrot.slane %v1135_v32, 2 }
 0x196   : > { %v1516_v43 = vmax.f32 %v1369_v35, 0.0  ;;  %v1971_v44 = vmax.f32 %v1824_v36, 0.0 }
 0x197   : > { %v683_v45 = vadd.f32 %v682_v39, %v681_v31  ;;  %v1137_v46 = vadd.f32 %v1136_v40, %v1135_v32 }
 0x198   : > { %v1552_v1 = vadd.f32 %v1516_v43, %v1515_v41  ;;  %v2007_v47 = vadd.f32 %v1971_v44, %v1970_v42 }
 0x199   : > { %v684_v48 = vrot.slane %v683_v45, 1  ;;  %v1138_v49 = vrot.slane %v1137_v46, 1  ;;  %v1373_v50 = vpop.f32.mrb[80].mxu0  ;;  %v1828_v51 = vpop.f32.mrb[80].mxu1 }
 0x19a   : > { %v1374_v52 = vadd.f32 %v3400_v0, %v1373_v50  ;;  %v1829_v53 = vadd.f32 %v3400_v0, %v1828_v51  ;;  %v2709_v54 = vpop.f32.mrb[81].mxu0  ;;  %v2797_v55 = vpop.f32.mrb[81].mxu1 }
 0x19b   : > { %v685_v56 = vadd.f32 %v684_v48, %v683_v45  ;;  %v1139_v57 = vadd.f32 %v1138_v49, %v1137_v46  ;;  %v1376_v58 = vpop.f32.mrb[82].mxu0  ;;  %v1831_v59 = vpop.f32.mrb[82].mxu1 }
 0x19c   : > { %v1517_v60 = vmax.f32 %v1374_v52, 0.0  ;;  %v1972_v61 = vmax.f32 %v1829_v53, 0.0  ;;  %v1377_v62 = vadd.f32 %v3400_v0, %v1376_v58  ;;  %v1832_v63 = vadd.f32 %v3400_v0, %v1831_v59  ;;  %v2710_v2 = vpop.f32.mrb[83].mxu0  ;;  %v2798_v3 = vpop.f32.mrb[83].mxu1 }
 0x19d   : > { %v686_v4 = vmul.f32 0.0034013605, %v685_v56  ;;  %v1140_v5 = vmul.f32 0.0034013605, %v1139_v57 }
 0x19e   : > { %v1553_v6 = vadd.f32 %v1552_v1, %v1517_v60  ;;  %v2008_v7 = vadd.f32 %v2007_v47, %v1972_v61  ;;  %v1518_v8 = vmax.f32 %v1377_v62, 0.0  ;;  %v1973_v9 = vmax.f32 %v1832_v63, 0.0 }
 0x19f   : > { %687 = vst [vmem:[%s3577_s27] sm:$0x1] %v686_v4  ;;  %2256 = vst [vmem:[%s3577_s27 + $0x1] sm:$0x1] %v1140_v5 }
 0x1a0   : > { %v1554_v10 = vadd.f32 %v1553_v6, %v1518_v8  ;;  %v2009_v11 = vadd.f32 %v2008_v7, %v1973_v9 }
 0x1a1   : > { %v1381_v12 = vpop.f32.mrb[84].mxu0  ;;  %v1836_v13 = vpop.f32.mrb[84].mxu1 }
 0x1a2   : > { %v1382_v14 = vadd.f32 %v3400_v0, %v1381_v12  ;;  %v1837_v15 = vadd.f32 %v3400_v0, %v1836_v13  ;;  %v2713_v16 = vpop.f32.mrb[85].mxu0  ;;  %v2801_v17 = vpop.f32.mrb[85].mxu1 }
 0x1a3   : > { %v1384_v18 = vpop.f32.mrb[86].mxu0  ;;  %v1839_v19 = vpop.f32.mrb[86].mxu1 }
 0x1a4   : > { %v1519_v20 = vmax.f32 %v1382_v14, 0.0  ;;  %v1974_v21 = vmax.f32 %v1837_v15, 0.0  ;;  %v1385_v22 = vadd.f32 %v3400_v0, %v1384_v18  ;;  %v1840_v23 = vadd.f32 %v3400_v0, %v1839_v19  ;;  %v2714_v24 = vpop.f32.mrb[87].mxu0  ;;  %v2802_v25 = vpop.f32.mrb[87].mxu1 }
 0x1a6   : > { %v1555_v26 = vadd.f32 %v1554_v10, %v1519_v20  ;;  %v2010_v27 = vadd.f32 %v2009_v11, %v1974_v21  ;;  %v1520_v28 = vmax.f32 %v1385_v22, 0.0  ;;  %v1975_v29 = vmax.f32 %v1840_v23, 0.0 }
 0x1a8   : > { %v1556_v30 = vadd.f32 %v1555_v26, %v1520_v28  ;;  %v2011_v31 = vadd.f32 %v2010_v27, %v1975_v29 }
 0x1a9   : > { %v1389_v32 = vpop.f32.mrb[88].mxu0  ;;  %v1844_v33 = vpop.f32.mrb[88].mxu1 }
 0x1aa   : > { %v1390_v35 = vadd.f32 %v3588_v34, %v1389_v32  ;;  %v1845_v36 = vadd.f32 %v3588_v34, %v1844_v33  ;;  %v2717_v0 = vpop.f32.mrb[89].mxu0  ;;  %v2805_v37 = vpop.f32.mrb[89].mxu1 }
 0x1ab   : > { %v1392_v38 = vpop.f32.mrb[90].mxu0  ;;  %v1847_v39 = vpop.f32.mrb[90].mxu1 }
 0x1ac   : > { %v1521_v40 = vmax.f32 %v1390_v35, 0.0  ;;  %v1976_v41 = vmax.f32 %v1845_v36, 0.0  ;;  %v1393_v42 = vadd.f32 %v3588_v34, %v1392_v38  ;;  %v1848_v43 = vadd.f32 %v3588_v34, %v1847_v39  ;;  %v2718_v44 = vpop.f32.mrb[91].mxu0  ;;  %v2806_v45 = vpop.f32.mrb[91].mxu1 }
 0x1ae   : > { %v1557_v46 = vadd.f32 %v1556_v30, %v1521_v40  ;;  %v2012_v1 = vadd.f32 %v2011_v31, %v1976_v41  ;;  %v1522_v47 = vmax.f32 %v1393_v42, 0.0  ;;  %v1977_v48 = vmax.f32 %v1848_v43, 0.0 }
 0x1b0   : > { %v1558_v49 = vadd.f32 %v1557_v46, %v1522_v47  ;;  %v2013_v50 = vadd.f32 %v2012_v1, %v1977_v48 }
 0x1b1   : > { %v1397_v51 = vpop.f32.mrb[92].mxu0  ;;  %v1852_v52 = vpop.f32.mrb[92].mxu1 }
 0x1b2   : > { %v1398_v53 = vadd.f32 %v3588_v34, %v1397_v51  ;;  %v1853_v54 = vadd.f32 %v3588_v34, %v1852_v52  ;;  %v2721_v55 = vpop.f32.mrb[93].mxu0  ;;  %v2809_v56 = vpop.f32.mrb[93].mxu1 }
 0x1b3   : > { %v1400_v57 = vpop.f32.mrb[94].mxu0  ;;  %v1855_v58 = vpop.f32.mrb[94].mxu1 }
 0x1b4   : > { %v1523_v59 = vmax.f32 %v1398_v53, 0.0  ;;  %v1978_v60 = vmax.f32 %v1853_v54, 0.0  ;;  %v1401_v61 = vadd.f32 %v3588_v34, %v1400_v57  ;;  %v1856_v62 = vadd.f32 %v3588_v34, %v1855_v58  ;;  %v2722_v63 = vpop.f32.mrb[95].mxu0  ;;  %v2810_v2 = vpop.f32.mrb[95].mxu1 }
 0x1b6   : > { %v1559_v3 = vadd.f32 %v1558_v49, %v1523_v59  ;;  %v2014_v4 = vadd.f32 %v2013_v50, %v1978_v60  ;;  %v1524_v5 = vmax.f32 %v1401_v61, 0.0  ;;  %v1979_v6 = vmax.f32 %v1856_v62, 0.0 }
 0x1b8   : > { %v1560_v7 = vadd.f32 %v1559_v3, %v1524_v5  ;;  %v2015_v8 = vadd.f32 %v2014_v4, %v1979_v6 }
 0x1b9   : > { %v1405_v9 = vpop.f32.mrb[96].mxu0  ;;  %v1860_v10 = vpop.f32.mrb[96].mxu1 }
 0x1ba   : > { %v1406_v11 = vadd.f32 %v3588_v34, %v1405_v9  ;;  %v1861_v12 = vadd.f32 %v3588_v34, %v1860_v10  ;;  %v2725_v13 = vpop.f32.mrb[97].mxu0  ;;  %v2813_v14 = vpop.f32.mrb[97].mxu1 }
 0x1bb   : > { %v1408_v15 = vpop.f32.mrb[98].mxu0  ;;  %v1863_v16 = vpop.f32.mrb[98].mxu1 }
 0x1bc   : > { %v1525_v17 = vmax.f32 %v1406_v11, 0.0  ;;  %v1980_v18 = vmax.f32 %v1861_v12, 0.0  ;;  %v1409_v19 = vadd.f32 %v3588_v34, %v1408_v15  ;;  %v1864_v20 = vadd.f32 %v3588_v34, %v1863_v16  ;;  %v2726_v21 = vpop.f32.mrb[99].mxu0  ;;  %v2814_v22 = vpop.f32.mrb[99].mxu1 }
 0x1be   : > { %v1561_v23 = vadd.f32 %v1560_v7, %v1525_v17  ;;  %v2016_v24 = vadd.f32 %v2015_v8, %v1980_v18  ;;  %v1526_v25 = vmax.f32 %v1409_v19, 0.0  ;;  %v1981_v26 = vmax.f32 %v1864_v20, 0.0 }
 0x1c0   : > { %v1562_v27 = vadd.f32 %v1561_v23, %v1526_v25  ;;  %v2017_v28 = vadd.f32 %v2016_v24, %v1981_v26 }
 0x1c1   : > { %v1413_v29 = vpop.f32.mrb[100].mxu0  ;;  %v1868_v30 = vpop.f32.mrb[100].mxu1 }
 0x1c2   : > { %v1414_v31 = vadd.f32 %v3588_v34, %v1413_v29  ;;  %v1869_v32 = vadd.f32 %v3588_v34, %v1868_v30  ;;  %v2729_v33 = vpop.f32.mrb[101].mxu0  ;;  %v2817_v35 = vpop.f32.mrb[101].mxu1 }
 0x1c3   : > { %v1416_v36 = vpop.f32.mrb[102].mxu0  ;;  %v1871_v0 = vpop.f32.mrb[102].mxu1 }
 0x1c4   : > { %v1527_v37 = vmax.f32 %v1414_v31, 0.0  ;;  %v1982_v38 = vmax.f32 %v1869_v32, 0.0  ;;  %v1417_v39 = vadd.f32 %v3588_v34, %v1416_v36  ;;  %v1872_v40 = vadd.f32 %v3588_v34, %v1871_v0  ;;  %v2730_v41 = vpop.f32.mrb[103].mxu0  ;;  %v2818_v42 = vpop.f32.mrb[103].mxu1 }
 0x1c6   : > { %v1563_v43 = vadd.f32 %v1562_v27, %v1527_v37  ;;  %v2018_v44 = vadd.f32 %v2017_v28, %v1982_v38  ;;  %v1528_v45 = vmax.f32 %v1417_v39, 0.0  ;;  %v1983_v46 = vmax.f32 %v1872_v40, 0.0 }
 0x1c8   : > { %v1564_v1 = vadd.f32 %v1563_v43, %v1528_v45  ;;  %v2019_v47 = vadd.f32 %v2018_v44, %v1983_v46 }
 0x1c9   : > { %v1421_v48 = vpop.f32.mrb[104].mxu0  ;;  %v1876_v49 = vpop.f32.mrb[104].mxu1 }
 0x1ca   : > { %v1422_v50 = vadd.f32 %v3588_v34, %v1421_v48  ;;  %v1877_v51 = vadd.f32 %v3588_v34, %v1876_v49  ;;  %v2733_v52 = vpop.f32.mrb[105].mxu0  ;;  %v2821_v53 = vpop.f32.mrb[105].mxu1 }
 0x1cb   : > { %v1424_v54 = vpop.f32.mrb[106].mxu0  ;;  %v1879_v55 = vpop.f32.mrb[106].mxu1 }
 0x1cc   : > { %v1529_v56 = vmax.f32 %v1422_v50, 0.0  ;;  %v1984_v57 = vmax.f32 %v1877_v51, 0.0  ;;  %v1425_v58 = vadd.f32 %v3588_v34, %v1424_v54  ;;  %v1880_v59 = vadd.f32 %v3588_v34, %v1879_v55  ;;  %v2734_v60 = vpop.f32.mrb[107].mxu0  ;;  %v2822_v61 = vpop.f32.mrb[107].mxu1 }
 0x1ce   : > { %v1565_v62 = vadd.f32 %v1564_v1, %v1529_v56  ;;  %v2020_v63 = vadd.f32 %v2019_v47, %v1984_v57  ;;  %v1530_v2 = vmax.f32 %v1425_v58, 0.0  ;;  %v1985_v3 = vmax.f32 %v1880_v59, 0.0 }
 0x1d0   : > { %v1566_v4 = vadd.f32 %v1565_v62, %v1530_v2  ;;  %v2021_v5 = vadd.f32 %v2020_v63, %v1985_v3 }
 0x1d1   : > { %v1429_v6 = vpop.f32.mrb[108].mxu0  ;;  %v1884_v7 = vpop.f32.mrb[108].mxu1 }
 0x1d2   : > { %v1430_v8 = vadd.f32 %v3588_v34, %v1429_v6  ;;  %v1885_v9 = vadd.f32 %v3588_v34, %v1884_v7  ;;  %v2737_v10 = vpop.f32.mrb[109].mxu0  ;;  %v2825_v11 = vpop.f32.mrb[109].mxu1 }
 0x1d3   : > { %v1432_v12 = vpop.f32.mrb[110].mxu0  ;;  %v1887_v13 = vpop.f32.mrb[110].mxu1 }
 0x1d4   : > { %v1531_v14 = vmax.f32 %v1430_v8, 0.0  ;;  %v1986_v15 = vmax.f32 %v1885_v9, 0.0  ;;  %v1433_v16 = vadd.f32 %v3588_v34, %v1432_v12  ;;  %v1888_v17 = vadd.f32 %v3588_v34, %v1887_v13  ;;  %v2738_v18 = vpop.f32.mrb[111].mxu0  ;;  %v2826_v19 = vpop.f32.mrb[111].mxu1 }
 0x1d6   : > { %v1567_v20 = vadd.f32 %v1566_v4, %v1531_v14  ;;  %v2022_v21 = vadd.f32 %v2021_v5, %v1986_v15  ;;  %v1532_v22 = vmax.f32 %v1433_v16, 0.0  ;;  %v1987_v23 = vmax.f32 %v1888_v17, 0.0 }
 0x1d8   : > { %v1568_v24 = vadd.f32 %v1567_v20, %v1532_v22  ;;  %v2023_v25 = vadd.f32 %v2022_v21, %v1987_v23 }
 0x1d9   : > { %v1437_v26 = vpop.f32.mrb[112].mxu0  ;;  %v1892_v27 = vpop.f32.mrb[112].mxu1 }
 0x1da   : > { %v1438_v28 = vadd.f32 %v3588_v34, %v1437_v26  ;;  %v1893_v29 = vadd.f32 %v3588_v34, %v1892_v27  ;;  %v2741_v30 = vpop.f32.mrb[113].mxu0  ;;  %v2829_v31 = vpop.f32.mrb[113].mxu1 }
 0x1db   : > { %v1440_v32 = vpop.f32.mrb[114].mxu0  ;;  %v1895_v33 = vpop.f32.mrb[114].mxu1 }
 0x1dc   : > { %v1533_v35 = vmax.f32 %v1438_v28, 0.0  ;;  %v1988_v36 = vmax.f32 %v1893_v29, 0.0  ;;  %v1441_v0 = vadd.f32 %v3588_v34, %v1440_v32  ;;  %v1896_v37 = vadd.f32 %v3588_v34, %v1895_v33  ;;  %v2742_v38 = vpop.f32.mrb[115].mxu0  ;;  %v2830_v39 = vpop.f32.mrb[115].mxu1 }
 0x1de   : > { %v1569_v40 = vadd.f32 %v1568_v24, %v1533_v35  ;;  %v2024_v41 = vadd.f32 %v2023_v25, %v1988_v36  ;;  %v1534_v42 = vmax.f32 %v1441_v0, 0.0  ;;  %v1989_v43 = vmax.f32 %v1896_v37, 0.0 }
 0x1e0   : > { %v1570_v44 = vadd.f32 %v1569_v40, %v1534_v42  ;;  %v2025_v45 = vadd.f32 %v2024_v41, %v1989_v43 }
 0x1e1   : > { %v1445_v46 = vpop.f32.mrb[116].mxu0  ;;  %v1900_v1 = vpop.f32.mrb[116].mxu1 }
 0x1e2   : > { %v1446_v47 = vadd.f32 %v3588_v34, %v1445_v46  ;;  %v1901_v48 = vadd.f32 %v3588_v34, %v1900_v1  ;;  %v2745_v49 = vpop.f32.mrb[117].mxu0  ;;  %v2833_v50 = vpop.f32.mrb[117].mxu1 }
 0x1e3   : > { %v1448_v51 = vpop.f32.mrb[118].mxu0  ;;  %v1903_v52 = vpop.f32.mrb[118].mxu1 }
 0x1e4   : > { %v1535_v53 = vmax.f32 %v1446_v47, 0.0  ;;  %v1990_v54 = vmax.f32 %v1901_v48, 0.0  ;;  %v1449_v55 = vadd.f32 %v3588_v34, %v1448_v51  ;;  %v1904_v56 = vadd.f32 %v3588_v34, %v1903_v52  ;;  %v2746_v57 = vpop.f32.mrb[119].mxu0  ;;  %v2834_v58 = vpop.f32.mrb[119].mxu1 }
 0x1e6   : > { %v1571_v59 = vadd.f32 %v1570_v44, %v1535_v53  ;;  %v2026_v60 = vadd.f32 %v2025_v45, %v1990_v54  ;;  %v1536_v61 = vmax.f32 %v1449_v55, 0.0  ;;  %v1991_v62 = vmax.f32 %v1904_v56, 0.0 }
 0x1e8   : > { %v1572_v63 = vadd.f32 %v1571_v59, %v1536_v61  ;;  %v2027_v2 = vadd.f32 %v2026_v60, %v1991_v62 }
 0x1e9   : > { %v1453_v3 = vpop.f32.mrb[120].mxu0  ;;  %v1908_v4 = vpop.f32.mrb[120].mxu1 }
 0x1ea   : > { %v1454_v5 = vadd.f32 %v3588_v34, %v1453_v3  ;;  %v1909_v6 = vadd.f32 %v3588_v34, %v1908_v4  ;;  %v2749_v7 = vpop.f32.mrb[121].mxu0  ;;  %v2837_v8 = vpop.f32.mrb[121].mxu1 }
 0x1eb   : > { %v1456_v9 = vpop.f32.mrb[122].mxu0  ;;  %v1911_v10 = vpop.f32.mrb[122].mxu1 }
 0x1ec   : > { %v1537_v11 = vmax.f32 %v1454_v5, 0.0  ;;  %v1992_v12 = vmax.f32 %v1909_v6, 0.0  ;;  %v1457_v13 = vadd.f32 %v3588_v34, %v1456_v9  ;;  %v1912_v14 = vadd.f32 %v3588_v34, %v1911_v10  ;;  %v2750_v15 = vpop.f32.mrb[123].mxu0  ;;  %v2838_v16 = vpop.f32.mrb[123].mxu1 }
 0x1ee   : > { %v1573_v17 = vadd.f32 %v1572_v63, %v1537_v11  ;;  %v2028_v18 = vadd.f32 %v2027_v2, %v1992_v12  ;;  %v1538_v19 = vmax.f32 %v1457_v13, 0.0  ;;  %v1993_v20 = vmax.f32 %v1912_v14, 0.0 }
 0x1f0   : > { %v1574_v21 = vadd.f32 %v1573_v17, %v1538_v19  ;;  %v2029_v22 = vadd.f32 %v2028_v18, %v1993_v20 }
 0x1f1   : > { %v1461_v23 = vpop.f32.mrb[124].mxu0  ;;  %v1916_v24 = vpop.f32.mrb[124].mxu1 }
 0x1f2   : > { %v1462_v25 = vadd.f32 %v3588_v34, %v1461_v23  ;;  %v1917_v26 = vadd.f32 %v3588_v34, %v1916_v24  ;;  %v2753_v27 = vpop.f32.mrb[125].mxu0  ;;  %v2841_v28 = vpop.f32.mrb[125].mxu1 }
 0x1f3   : > { %v1464_v29 = vpop.f32.mrb[126].mxu0  ;;  %v1919_v30 = vpop.f32.mrb[126].mxu1 }
 0x1f4   : > { %v1539_v31 = vmax.f32 %v1462_v25, 0.0  ;;  %v1994_v32 = vmax.f32 %v1917_v26, 0.0  ;;  %v1465_v33 = vadd.f32 %v3588_v34, %v1464_v29  ;;  %v1920_v35 = vadd.f32 %v3588_v34, %v1919_v30  ;;  %v2754_v36 = vpop.f32.mrb[127].mxu0  ;;  %v2842_v0 = vpop.f32.mrb[127].mxu1 }
 0x1f6   : > { %v1575_v37 = vadd.f32 %v1574_v21, %v1539_v31  ;;  %v2030_v38 = vadd.f32 %v2029_v22, %v1994_v32  ;;  %v1540_v39 = vmax.f32 %v1465_v33, 0.0  ;;  %v1995_v40 = vmax.f32 %v1920_v35, 0.0 }
 0x1f8   : > { %v1576_v41 = vadd.f32 %v1575_v37, %v1540_v39  ;;  %v2031_v42 = vadd.f32 %v2030_v38, %v1995_v40 }
 0x1f9   : > { %v1469_v43 = vpop.f32.mrb[128].mxu0  ;;  %v1924_v44 = vpop.f32.mrb[128].mxu1 }
 0x1fa   : > { %v1470_v45 = vadd.f32 %v3588_v34, %v1469_v43  ;;  %v1925_v46 = vadd.f32 %v3588_v34, %v1924_v44  ;;  %v2757_v1 = vpop.f32.mrb[129].mxu0  ;;  %v2845_v47 = vpop.f32.mrb[129].mxu1 }
 0x1fb   : > { %v1472_v48 = vpop.f32.mrb[130].mxu0  ;;  %v1927_v49 = vpop.f32.mrb[130].mxu1 }
 0x1fc   : > { %v1541_v50 = vmax.f32 %v1470_v45, 0.0  ;;  %v1996_v51 = vmax.f32 %v1925_v46, 0.0  ;;  %v1473_v52 = vadd.f32 %v3588_v34, %v1472_v48  ;;  %v1928_v53 = vadd.f32 %v3588_v34, %v1927_v49  ;;  %v2758_v54 = vpop.f32.mrb[131].mxu0  ;;  %v2846_v55 = vpop.f32.mrb[131].mxu1 }
 0x1fe   : > { %v1577_v56 = vadd.f32 %v1576_v41, %v1541_v50  ;;  %v2032_v57 = vadd.f32 %v2031_v42, %v1996_v51  ;;  %v1542_v58 = vmax.f32 %v1473_v52, 0.0  ;;  %v1997_v59 = vmax.f32 %v1928_v53, 0.0 }
 0x200   : > { %v1578_v60 = vadd.f32 %v1577_v56, %v1542_v58  ;;  %v2033_v61 = vadd.f32 %v2032_v57, %v1997_v59 }
 0x201   : > { %v1477_v62 = vpop.f32.mrb[132].mxu0  ;;  %v1932_v63 = vpop.f32.mrb[132].mxu1 }
 0x202   : > { %v1478_v2 = vadd.f32 %v3588_v34, %v1477_v62  ;;  %v1933_v3 = vadd.f32 %v3588_v34, %v1932_v63  ;;  %v2761_v4 = vpop.f32.mrb[133].mxu0  ;;  %v2849_v5 = vpop.f32.mrb[133].mxu1 }
 0x203   : > { %v1480_v6 = vpop.f32.mrb[134].mxu0  ;;  %v1935_v7 = vpop.f32.mrb[134].mxu1 }
 0x204   : > { %v1543_v8 = vmax.f32 %v1478_v2, 0.0  ;;  %v1998_v9 = vmax.f32 %v1933_v3, 0.0  ;;  %v1481_v10 = vadd.f32 %v3588_v34, %v1480_v6  ;;  %v1936_v11 = vadd.f32 %v3588_v34, %v1935_v7  ;;  %v2762_v12 = vpop.f32.mrb[135].mxu0  ;;  %v2850_v13 = vpop.f32.mrb[135].mxu1 }
 0x206   : > { %v1579_v14 = vadd.f32 %v1578_v60, %v1543_v8  ;;  %v2034_v15 = vadd.f32 %v2033_v61, %v1998_v9  ;;  %v1544_v16 = vmax.f32 %v1481_v10, 0.0  ;;  %v1999_v17 = vmax.f32 %v1936_v11, 0.0 }
 0x208   : > { %v1580_v18 = vadd.f32 %v1579_v14, %v1544_v16  ;;  %v2035_v19 = vadd.f32 %v2034_v15, %v1999_v17 }
 0x209   : > { %v1485_v20 = vpop.f32.mrb[136].mxu0  ;;  %v1940_v21 = vpop.f32.mrb[136].mxu1 }
 0x20a   : > { %v1486_v22 = vadd.f32 %v3588_v34, %v1485_v20  ;;  %v1941_v23 = vadd.f32 %v3588_v34, %v1940_v21  ;;  %v2765_v24 = vpop.f32.mrb[137].mxu0  ;;  %v2853_v25 = vpop.f32.mrb[137].mxu1 }
 0x20b   : > { %v1488_v26 = vpop.f32.mrb[138].mxu0  ;;  %v1943_v27 = vpop.f32.mrb[138].mxu1 }
 0x20c   : > { %v1545_v28 = vmax.f32 %v1486_v22, 0.0  ;;  %v2000_v29 = vmax.f32 %v1941_v23, 0.0  ;;  %v1489_v30 = vadd.f32 %v3588_v34, %v1488_v26  ;;  %v1944_v31 = vadd.f32 %v3588_v34, %v1943_v27  ;;  %v2766_v32 = vpop.f32.mrb[139].mxu0  ;;  %v2854_v33 = vpop.f32.mrb[139].mxu1 }
 0x20e   : > { %v1581_v35 = vadd.f32 %v1580_v18, %v1545_v28  ;;  %v2036_v36 = vadd.f32 %v2035_v19, %v2000_v29  ;;  %v1546_v0 = vmax.f32 %v1489_v30, 0.0  ;;  %v2001_v37 = vmax.f32 %v1944_v31, 0.0 }
 0x210   : > { %v1582_v38 = vadd.f32 %v1581_v35, %v1546_v0  ;;  %v2037_v39 = vadd.f32 %v2036_v36, %v2001_v37 }
 0x211   : > { %v1493_v40 = vpop.f32.mrb[140].mxu0  ;;  %v1948_v41 = vpop.f32.mrb[140].mxu1 }
 0x212   : > { %v1494_v42 = vadd.f32 %v3588_v34, %v1493_v40  ;;  %v1949_v43 = vadd.f32 %v3588_v34, %v1948_v41  ;;  %v2769_v44 = vpop.f32.mrb[141].mxu0  ;;  %v2857_v45 = vpop.f32.mrb[141].mxu1 }
 0x213   : > { %v1496_v46 = vpop.f32.mrb[142].mxu0  ;;  %v1951_v1 = vpop.f32.mrb[142].mxu1 }
 0x214   : > { %v1547_v47 = vmax.f32 %v1494_v42, 0.0  ;;  %v2002_v48 = vmax.f32 %v1949_v43, 0.0  ;;  %v1497_v49 = vadd.f32 %v3588_v34, %v1496_v46  ;;  %v1952_v50 = vadd.f32 %v3588_v34, %v1951_v1  ;;  %v2770_v51 = vpop.f32.mrb[143].mxu0  ;;  %v2858_v52 = vpop.f32.mrb[143].mxu1 }
 0x216   : > { %v1583_v53 = vadd.f32 %v1582_v38, %v1547_v47  ;;  %v2038_v54 = vadd.f32 %v2037_v39, %v2002_v48  ;;  %v1548_v55 = vmax.f32 %v1497_v49, 0.0  ;;  %v2003_v56 = vmax.f32 %v1952_v50, 0.0 }
 0x218   : > { %v1584_v57 = vadd.f32 %v1583_v53, %v1548_v55  ;;  %v2039_v58 = vadd.f32 %v2038_v54, %v2003_v56 }
 0x219   : > { %v1501_v59 = vpop.f32.mrb[144].mxu0  ;;  %v1956_v60 = vpop.f32.mrb[144].mxu1 }
 0x21a   : > { %v1502_v61 = vadd.f32 %v3588_v34, %v1501_v59  ;;  %v1957_v62 = vadd.f32 %v3588_v34, %v1956_v60  ;;  %v2773_v63 = vpop.f32.mrb[145].mxu0  ;;  %v2861_v2 = vpop.f32.mrb[145].mxu1 }
 0x21b   : > { %v1504_v3 = vpop.f32.mrb[146].mxu0  ;;  %v1959_v4 = vpop.f32.mrb[146].mxu1 }
 0x21c   : > { %v1549_v5 = vmax.f32 %v1502_v61, 0.0  ;;  %v2004_v6 = vmax.f32 %v1957_v62, 0.0  ;;  %v1505_v7 = vadd.f32 %v3588_v34, %v1504_v3  ;;  %v1960_v8 = vadd.f32 %v3588_v34, %v1959_v4  ;;  %v2774_v9 = vpop.f32.mrb[147].mxu0  ;;  %v2862_v10 = vpop.f32.mrb[147].mxu1 }
 0x21e   : > { %v1585_v11 = vadd.f32 %v1584_v57, %v1549_v5  ;;  %v2040_v12 = vadd.f32 %v2039_v58, %v2004_v6  ;;  %v1550_v13 = vmax.f32 %v1505_v7, 0.0  ;;  %v2005_v14 = vmax.f32 %v1960_v8, 0.0 }
 0x220   : > { %v1586_v15 = vadd.f32 %v1585_v11, %v1550_v13  ;;  %v2041_v16 = vadd.f32 %v2040_v12, %v2005_v14 }
 0x221   : > { %v1509_v17 = vpop.f32.mrb[148].mxu0  ;;  %v1964_v18 = vpop.f32.mrb[148].mxu1 }
 0x222   : > { %v1510_v19 = vadd.f32 %v3588_v34, %v1509_v17  ;;  %v1965_v20 = vadd.f32 %v3588_v34, %v1964_v18  ;;  %v2777_v21 = vpop.f32.mrb[149].mxu0  ;;  %v2865_v22 = vpop.f32.mrb[149].mxu1 }
 0x223   : > { %v1512_v23 = vpop.f32.mrb[150].mxu0  ;;  %v1967_v24 = vpop.f32.mrb[150].mxu1 }
 0x224   : > { %v1551_v25 = vmax.f32 %v1510_v19, 0.0  ;;  %v2006_v26 = vmax.f32 %v1965_v20, 0.0  ;;  %v2778_v27 = vpop.f32.mrb[151].mxu0  ;;  %v2866_v28 = vpop.f32.mrb[151].mxu1 }
 0x226   : > { %v1587_v29 = vsel %vm677_vm3, %v1551_v25, 0.0  ;;  %v2042_v30 = vsel %vm677_vm3, %v2006_v26, 0.0 }
 0x227   : > { %v1588_v31 = vadd.f32 %v1587_v29, %v1586_v15  ;;  %v2043_v32 = vadd.f32 %v2042_v30, %v2041_v16 }
 0x229   : > { %v1589_v33 = vrot.slane %v1588_v31, 4  ;;  %v2044_v35 = vrot.slane %v2043_v32, 4 }
 0x22b   : > { %v1590_v36 = vadd.f32 %v1589_v33, %v1588_v31  ;;  %v2045_v34 = vadd.f32 %v2044_v35, %v2043_v32 }
 0x22d   : > { %v1591_v0 = vrot.slane %v1590_v36, 2  ;;  %v2046_v37 = vrot.slane %v2045_v34, 2 }
 0x22f   : > { %v1592_v38 = vadd.f32 %v1591_v0, %v1590_v36  ;;  %v2047_v39 = vadd.f32 %v2046_v37, %v2045_v34 }
 0x231   : > { %v1593_v40 = vrot.slane %v1592_v38, 1  ;;  %v2048_v41 = vrot.slane %v2047_v39, 1 }
 0x233   : > { %v1594_v42 = vadd.f32 %v1593_v40, %v1592_v38  ;;  %v2049_v43 = vadd.f32 %v2048_v41, %v2047_v39 }
 0x235   : > { %v1595_v44 = vmul.f32 0.0034013605, %v1594_v42  ;;  %v2050_v45 = vmul.f32 0.0034013605, %v2049_v43 }
 0x237   : > { %2332 = vst [vmem:[%s3577_s27 + $0x2] sm:$0x1] %v1595_v44  ;;  %2408 = vst [vmem:[%s3577_s27 + $0x3] sm:$0x1] %v2050_v45 }
 0x238   : > { %3008 = shalt.err (!%p3005_p3)
}
 0x239   : > { %s3009_s17 = scalar_lea.hbm %s3659_s7, 64  ;;  %s3013_s24 = scalar_lea.hbm %s3711_s3, 128 }
 0x23a   : > { %p3010_p4 = scmp.ne.s32.totalorder %s3659_s7, %s3009_s17  ;;  %p3014_p9 = scmp.lt.u32.totalorder %s3659_s7, %s3711_s3 }
 0x23b   : > { %p3015_p10 = scmp.lt.u32.totalorder %s3013_s24, %s3009_s17  ;;  %p3017_p12 = scmp.lt.u32.totalorder %s3009_s17, %s3659_s7 }
 0x23c   : > { %p3011_p7 = pnand %p3010_p4, %p3123_p5 }
 0x23d   : > { %p3016_p11 = por %p3015_p10, %p3014_p9 }
 0x23e   : > { %p3012_p8 = pneg %p3011_p7 }
 0x23f   : > { %p3018_p13 = por %p3017_p12, %p3016_p11 }
 0x241   : > { %p3019_p0 = pnand %p3018_p13, %p3012_p8 }
 0x243   : > { %3022 = shalt.err (!%p3019_p0)
}
 0x244   : > { %s3063_s27 = smov 16   ;;  %s3064_s28 = smov 1  }
 0x245   : > { %2868 = dma.vmem_to_hbm [thread:$0]  (%p3123_p5), %s3661_s4, 64, %s3659_s7, %s3667_s8, %s3063_s27, %s3063_s27, %s3064_s28  }
 0x246 PF: > { %p2874_p1 = scmp.ge.s32.totalorder %s3057_s15, 2  ;;  %s2082_s29 = sand.u32 1, %s3045_s12  }
 0x247   : > { %s2083_s30 = scalar_lea.sflag [#allocation3], %s2082_s29 }
 0x248   : > { %p2871_p2 = pnand %p2874_p1, %p3127_p6 }
 0x24a   : > { %3040 = dma.done.wait (!%p2871_p2), %s2083_s30, 64  }
 0x24b   : > { %3042 = vsyncadd (!%p2871_p2), %s2083_s30, 4294967232  ;;  %p13_p3 = scmp.ge.s32.totalorder %s3110_s18, 4   ;;  %s3714_s12 = smov %s3049_s13 }
 0x24c   : > { %s3715_s13 = smov %s3053_s14  ;;  %s3716_s14 = smov %s3121_s21 }
 0x24d   : > { %s3717_s15 = smov %s3110_s18  ;;  %15 = sbr.rel (!%p13_p3) target bundleno = 3 (0x3), region = 73 }
 0x254   :  { %2088 = vsyncpa [#allocation3], 1 }
 0x255   :  { %2090 = vsyncpa [#allocation3 + $0x1], 1 }

// kernel: i3d_batched_forward.3
= control target key start
LH: loop header
LB: loop body
LE: loop exit
PB: predicated region body
PF: predicated region fallthrough
CT: control target
= control target key end

     0   :  { %8 = vsyncpa [#allocation3], 0  ;;  %s3646_s0 = inlined_call_operand.vmem [shape: bf16[8,294,54], index: 0, kind: input, shape index: {}]   ;;  %s3647_s1 = inlined_call_operand.vmem [shape: bf16[54,128], index: 1, kind: input, shape index: {}]   ;;  %s3648_s2 = inlined_call_operand.vmem [shape: f32[1,128], index: 2, kind: input, shape index: {}]   ;;  %s3649_s3 = inlined_call_operand.hbm [shape: f32[8,1,128], index: 3, kind: output, shape index: {}]  }
   0x1   :  { %10 = vsyncpa [#allocation3 + $0x1], 0  ;;  %s3037_s12 = smov 0   ;;  %s3039_s13 = smov 0  }
   0x2   :  { %s3041_s14 = smov 0   ;;  %s3043_s15 = smov 0  }
   0x3 LB: > { %s3058_s16 = sadd.s32 4294967295, %s3010_s15   ;;  %s2111_s17 = sadd.s32 4294967294, %s3010_s15   ;;  %s3010_s15 = sphi %s3043_s15, %s3655_s15   ;;  %s3006_s14 = sphi %s3041_s14, %s3654_s14   ;;  %s3002_s13 = sphi %s3039_s13, %s3653_s13   ;;  %s2998_s12 = sphi %s3037_s12, %s3652_s12  }
   0x4   : > { %s3062_s18 = sadd.s32 1, %s3010_s15   ;;  %s91_s19 = sadd.s32 1, %s3006_s14 }
   0x5   : > { %s88_s20 = ssub.s32 %s3010_s15, %s3062_s18  ;;  %p101_p0 = scmp.ne.s32.totalorder %s3006_s14, %s3002_s13 }
   0x6   : > { %p89_p1 = scmp.eq.s32.totalorder %s88_s20, 0  ;;  %p102_p2 = scmp.eq.s32.totalorder %s3058_s16, 1 }
   0x7   : > { %p107_p3 = scmp.ne.s32.totalorder %s3002_s13, %s2998_s12  ;;  %p108_p4 = scmp.eq.s32.totalorder %s2111_s17, 1 }
   0x8   : > { %s3073_s21 = scalar_select %p89_p1, %s3006_s14, %s91_s19  }
   0x9   : > { %p3075_p5 = por %p102_p2, %p101_p0  ;;  %p3079_p6 = por %p108_p4, %p107_p3 }
   0xa   : > { %p2114_p7 = scmp.ge.s32.totalorder %s3010_s15, 1  ;;  %p142_p8 = scmp.lt.s32.totalorder %s3010_s15, 3 }
   0xc   : > { %p143_p9 = pnand %p2114_p7, %p142_p8 }
   0xd   : > { %v2867_v0 = vld [vmem:[%s3647_s1] sm:$0xff] (!%p143_p9)   ;;  %v3012_v1 = vmov (!%p143_p9), 0.0   ;;  %v2868_v2 = vld [vmem:[%s3647_s1 + $0x8] sm:$0xff] (!%p143_p9)   ;;  %s2116_s28 = sshll.u32 (!%p143_p9), %s3058_s16, 2  ;;  %vm3013_vm0 = vmmov (!%p143_p9), 0   ;;  %v2869_v3 = vld [vmem:[%s3647_s1 + $0x10] sm:$0xff] (!%p143_p9)  }
   0xe   : > { %146 = sbr.rel (%p143_p9) target bundleno = 574 (0x23e), region = 32  ;;  %2487 = vmatprep.subr.bf16.mxu0 (!%p143_p9), %v3012_v1  ;;  %2571 = vmatprep.subr.bf16.mxu1 (!%p143_p9), %v3012_v1  ;;  %p168_p10 = scmp.lt.s32.totalorder (!%p143_p9), %s2116_s28, 7  ;;  %v2870_v4 = vld [vmem:[%s3647_s1 + $0x18] ss:$0 sps:$4 sm:$0x77] (!%p143_p9)   ;;  %vm399_vm1 = vcmask (!%p143_p9), 1042432  }
   0xf   : > { %2488 = vmatpush3.bf16.msra.mxu0 (!%p143_p9), %v2867_v0  ;;  %2572 = vmatpush3.bf16.msra.mxu1 (!%p143_p9), %v2867_v0  ;;  %v401_v5 = vsel (!%p143_p9), %vm399_vm1, %v2870_v4, 0  ;;  %vm341_vm2 = vcmask (!%p143_p9), 441344   ;;  %v3338_v60 = vld [vmem:[%s3648_s2] ss:$0 sm:$0xff] (!%p143_p9)  ;;  %vm659_vm3 = vcmask (!%p143_p9), 1045504   ;;  %s164_s17 = sand.u32 (!%p143_p9), 1, %s3002_s13  }
  0x10   : > { %2489 = vmatprep.subr.bf16.mxu0 (!%p143_p9), %v3012_v1  ;;  %2573 = vmatprep.subr.bf16.mxu1 (!%p143_p9), %v3012_v1  ;;  %s2115_s19 = sshll.u32 (!%p143_p9), %s164_s17, 2  ;;  %s2394_s26 = sshll.u32 (!%p143_p9), %s3058_s16, 6 }
  0x11   : > { %2495 = vmatprep.mubr.msk.bf16.mxu0 (!%p143_p9), %vm3013_vm0, %v3012_v1  ;;  %2579 = vmatprep.mubr.msk.bf16.mxu1 (!%p143_p9), %vm3013_vm0, %v3012_v1  ;;  %s3515_s20 = scalar_lea.vmem (!%p143_p9), [#allocation2], %s2115_s19  ;;  %s3597_s30 = scalar_lea.hbm (!%p143_p9), %s3649_s3, %s2394_s26 }
  0x12   : > { %s2049_s27 = sshll.u32 (!%p143_p9), %s3515_s20, 4  ;;  %s3605_s4 = scalar_lea.sflag (!%p143_p9), [#allocation3], %s164_s17  ;;  %s3599_s27 = int_to_ptr.vmem [resolvable:$true] %s2049_s27 }
  0x13   : > { %2490 = vmatpush3.bf16.msra.mxu0 (!%p143_p9), %v2868_v2  ;;  %2574 = vmatpush3.bf16.msra.mxu1 (!%p143_p9), %v2868_v2  ;;  %s2948_s16 = scalar_lea.vmem (!%p143_p9), %s3599_s27, 64  ;;  %s3014_s5 = smov (!%p143_p9), [#allocation2]  }
  0x14   : > { %2491 = vmatprep.subr.bf16.mxu0 (!%p143_p9), %v3012_v1  ;;  %2575 = vmatprep.subr.bf16.mxu1 (!%p143_p9), %v3012_v1  ;;  %p2949_p11 = scmp.ne.s32.totalorder (!%p143_p9), %s3599_s27, %s2948_s16 }
  0x15   : > { %s3657_s28 = smov (!%p168_p10, %s2116_s28), 7 }
  0x16   : > { %s2823_s6 = smul.u32 148, %s3657_s28  ;;  %p2950_p12 = pnand %p2949_p11, %p3075_p5 }
  0x17   : > { %2492 = vmatpush3.bf16.msra.mxu0 %v2869_v3  ;;  %2576 = vmatpush3.bf16.msra.mxu1 %v2869_v3 }
  0x18   : > { %s3111_s9 = scalar_lea.vmem %s3646_s0, %s2823_s6  ;;  %2493 = vmatprep.subr.bf16.mxu0 %v3012_v1  ;;  %2577 = vmatprep.subr.bf16.mxu1 %v3012_v1  ;;  %p2951_p13 = pneg %p2950_p12 }
  0x19   : > { %v2871_v6 = vld [vmem:[%s3111_s9] sm:$0xff]   ;;  %v2872_v7 = vld [vmem:[%s3111_s9 + $0x94] sm:$0xff]   ;;  %v2873_v8 = vld [vmem:[%s3111_s9 + $0x8] sm:$0xff]   ;;  %s2952_s6 = sshll.u32 %s3014_s5, 4  ;;  %s2953_s6 = int_to_ptr.vmem [resolvable:$false] %s2952_s6 }
  0x1a   : > { %v2874_v9 = vld [vmem:[%s3111_s9 + $0x9c] sm:$0xff]   ;;  %v2875_v10 = vld [vmem:[%s3111_s9 + $0x10] sm:$0xff]   ;;  %v2876_v11 = vld [vmem:[%s3111_s9 + $0xa4] sm:$0xff]   ;;  %s2954_s7 = scalar_lea.vmem %s2953_s6, 128  ;;  %p2955_p0 = scmp.lt.s32.totalorder %s3599_s27, %s2953_s6 }
  0x1b   : > { %2494 = vmatpush3.bf16.msra.mxu0 %v401_v5  ;;  %2578 = vmatpush3.bf16.msra.mxu1 %v401_v5  ;;  %v2877_v12 = vld [vmem:[%s3111_s9 + $0x18] sm:$0xff]   ;;  %v2878_v13 = vld [vmem:[%s3111_s9 + $0xac] sm:$0xff]   ;;  %v2879_v14 = vld [vmem:[%s3111_s9 + $0x20] sm:$0xff]   ;;  %p2956_p1 = scmp.lt.s32.totalorder %s2954_s7, %s2948_s16 }
  0x1c   : > { %2655 = vmatprep.subr.bf16.mxu0 %v3012_v1  ;;  %2739 = vmatprep.subr.bf16.mxu1 %v3012_v1  ;;  %v2880_v15 = vld [vmem:[%s3111_s9 + $0xb4] sm:$0xff]   ;;  %v2881_v16 = vld [vmem:[%s3111_s9 + $0x28] sm:$0xff]   ;;  %v2882_v17 = vld [vmem:[%s3111_s9 + $0xbc] sm:$0xff]  }
  0x1d   : > { %v2883_v18 = vld [vmem:[%s3111_s9 + $0x30] sm:$0xff]   ;;  %v2884_v19 = vld [vmem:[%s3111_s9 + $0xc4] sm:$0xff]   ;;  %v2885_v20 = vld [vmem:[%s3111_s9 + $0x38] sm:$0xff]   ;;  %p2957_p2 = por %p2956_p1, %p2955_p0 }
  0x1e   : > { %2496 = vmatmul.mubr.msk.bf16.vlgmr.msra.gmra.mrb[0].mxu0 %vm341_vm2, %v2871_v6  ;;  %2580 = vmatmul.mubr.msk.bf16.vlgmr.msra.gmra.mrb[0].mxu1 %vm341_vm2, %v2872_v7  ;;  %v2886_v21 = vld [vmem:[%s3111_s9 + $0xcc] sm:$0xff]   ;;  %v2887_v22 = vld [vmem:[%s3111_s9 + $0x40] sm:$0xff]   ;;  %v2888_v23 = vld [vmem:[%s3111_s9 + $0xd4] sm:$0xff]  }
  0x1f   : > { %2656 = vmatpush3.bf16.msra.mxu0 %v2867_v0  ;;  %2740 = vmatpush3.bf16.msra.mxu1 %v2867_v0  ;;  %v2889_v24 = vld [vmem:[%s3111_s9 + $0x48] sm:$0xff]   ;;  %v2890_v25 = vld [vmem:[%s3111_s9 + $0xdc] sm:$0xff]   ;;  %v2891_v26 = vld [vmem:[%s3111_s9 + $0x50] sm:$0xff]   ;;  %p2958_p3 = pnand %p2957_p2, %p2951_p13 }
  0x20   : > { %2499 = vmatprep.mubr.msk.bf16.mxu0 %vm3013_vm0, %v3012_v1  ;;  %2583 = vmatprep.mubr.msk.bf16.mxu1 %vm3013_vm0, %v3012_v1  ;;  %v2892_v27 = vld [vmem:[%s3111_s9 + $0xe4] sm:$0xff]   ;;  %v2893_v28 = vld [vmem:[%s3111_s9 + $0x58] sm:$0xff]   ;;  %v2894_v29 = vld [vmem:[%s3111_s9 + $0xec] sm:$0xff]  }
  0x21   : > { %2657 = vmatprep.subr.bf16.mxu0 %v3012_v1  ;;  %2741 = vmatprep.subr.bf16.mxu1 %v3012_v1  ;;  %v2895_v30 = vld [vmem:[%s3111_s9 + $0x60] sm:$0xff]   ;;  %v2896_v31 = vld [vmem:[%s3111_s9 + $0xf4] sm:$0xff]   ;;  %v2897_v32 = vld [vmem:[%s3111_s9 + $0x68] sm:$0xff]  }
  0x22   : > { %v2898_v33 = vld [vmem:[%s3111_s9 + $0xfc] sm:$0xff]   ;;  %v2899_v34 = vld [vmem:[%s3111_s9 + $0x70] sm:$0xff]   ;;  %v2900_v35 = vld [vmem:[%s3111_s9 + $0x104] sm:$0xff]  }
  0x23   : > { %2658 = vmatpush3.bf16.msra.mxu0 %v2868_v2  ;;  %2742 = vmatpush3.bf16.msra.mxu1 %v2868_v2  ;;  %v2901_v36 = vld [vmem:[%s3111_s9 + $0x78] sm:$0xff]   ;;  %v2902_v37 = vld [vmem:[%s3111_s9 + $0x10c] sm:$0xff]   ;;  %v2903_v38 = vld [vmem:[%s3111_s9 + $0x80] sm:$0xff]  }
  0x24   : > { %2659 = vmatprep.subr.bf16.mxu0 %v3012_v1  ;;  %2743 = vmatprep.subr.bf16.mxu1 %v3012_v1  ;;  %v2904_v39 = vld [vmem:[%s3111_s9 + $0x114] sm:$0xff]   ;;  %v2905_v40 = vld [vmem:[%s3111_s9 + $0x88] sm:$0xff]   ;;  %v2906_v41 = vld [vmem:[%s3111_s9 + $0x11c] sm:$0xff]  }
  0x25   : > { %v2907_v42 = vld [vmem:[%s3111_s9 + $0x90] ss:$0 sps:$4 sm:$0x77]   ;;  %v2908_v43 = vld [vmem:[%s3111_s9 + $0x124] ss:$0 sps:$4 sm:$0x77]  }
  0x26   : > { %2500 = vmatmul.mubr.msk.bf16.gmra.mrb[4].mxu0 %vm341_vm2, %v2873_v8  ;;  %2584 = vmatmul.mubr.msk.bf16.gmra.mrb[4].mxu1 %vm341_vm2, %v2874_v9  ;;  %v2909_v44 = vld [vmem:[%s3111_s9 + $0x128] sm:$0xff]   ;;  %v2910_v45 = vld [vmem:[%s3111_s9 + $0x1bc] sm:$0xff]   ;;  %v2911_v46 = vld [vmem:[%s3111_s9 + $0x130] sm:$0xff]  }
  0x27   : > { %2503 = vmatprep.mubr.msk.bf16.mxu0 %vm3013_vm0, %v3012_v1  ;;  %2587 = vmatprep.mubr.msk.bf16.mxu1 %vm3013_vm0, %v3012_v1  ;;  %v2912_v47 = vld [vmem:[%s3111_s9 + $0x1c4] sm:$0xff]   ;;  %v2913_v48 = vld [vmem:[%s3111_s9 + $0x138] sm:$0xff]   ;;  %v2914_v49 = vld [vmem:[%s3111_s9 + $0x1cc] sm:$0xff]  }
  0x28   : > { %2660 = vmatpush3.bf16.msra.mxu0 %v2869_v3  ;;  %2744 = vmatpush3.bf16.msra.mxu1 %v2869_v3  ;;  %v2915_v50 = vld [vmem:[%s3111_s9 + $0x140] sm:$0xff]   ;;  %v2916_v51 = vld [vmem:[%s3111_s9 + $0x1d4] sm:$0xff]   ;;  %v2917_v52 = vld [vmem:[%s3111_s9 + $0x148] sm:$0xff]  }
  0x29   : > { %2661 = vmatprep.subr.bf16.mxu0 %v3012_v1  ;;  %2745 = vmatprep.subr.bf16.mxu1 %v3012_v1  ;;  %v2918_v53 = vld [vmem:[%s3111_s9 + $0x1dc] sm:$0xff]   ;;  %v2919_v54 = vld [vmem:[%s3111_s9 + $0x150] sm:$0xff]   ;;  %v2920_v55 = vld [vmem:[%s3111_s9 + $0x1e4] sm:$0xff]  }
  0x2a   : > { %v2921_v56 = vld [vmem:[%s3111_s9 + $0x158] sm:$0xff]   ;;  %v2922_v57 = vld [vmem:[%s3111_s9 + $0x1ec] sm:$0xff]   ;;  %v2923_v58 = vld [vmem:[%s3111_s9 + $0x160] sm:$0xff]  }
  0x2b   : > { %v2924_v59 = vld [vmem:[%s3111_s9 + $0x1f4] sm:$0xff]   ;;  %v2925_v4 = vld [vmem:[%s3111_s9 + $0x168] sm:$0xff]  }
  0x2c   : > { %2662 = vmatpush3.bf16.msra.mxu0 %v401_v5  ;;  %2746 = vmatpush3.bf16.msra.mxu1 %v401_v5  ;;  %v2926_v5 = vld [vmem:[%s3111_s9 + $0x1fc] sm:$0xff]  }
  0x2e   : > { %2504 = vmatmul.mubr.msk.bf16.gmra.mrb[8].mxu0 %vm341_vm2, %v2875_v10  ;;  %2588 = vmatmul.mubr.msk.bf16.gmra.mrb[8].mxu1 %vm341_vm2, %v2876_v11 }
  0x2f   : > { %2507 = vmatprep.mubr.msk.bf16.mxu0 %vm3013_vm0, %v3012_v1  ;;  %2591 = vmatprep.mubr.msk.bf16.mxu1 %vm3013_vm0, %v3012_v1 }
  0x36   : > { %2508 = vmatmul.mubr.msk.bf16.gmra.mrb[12].mxu0 %vm341_vm2, %v2877_v12  ;;  %2592 = vmatmul.mubr.msk.bf16.gmra.mrb[12].mxu1 %vm341_vm2, %v2878_v13 }
  0x37   : > { %2511 = vmatprep.mubr.msk.bf16.mxu0 %vm3013_vm0, %v3012_v1  ;;  %2595 = vmatprep.mubr.msk.bf16.mxu1 %vm3013_vm0, %v3012_v1 }
  0x3e   : > { %2512 = vmatmul.mubr.msk.bf16.gmra.mrb[16].mxu0 %vm341_vm2, %v2879_v14  ;;  %2596 = vmatmul.mubr.msk.bf16.gmra.mrb[16].mxu1 %vm341_vm2, %v2880_v15 }
  0x3f   : > { %2515 = vmatprep.mubr.msk.bf16.mxu0 %vm3013_vm0, %v3012_v1  ;;  %2599 = vmatprep.mubr.msk.bf16.mxu1 %vm3013_vm0, %v3012_v1 }
  0x46   : > { %2516 = vmatmul.mubr.msk.bf16.gmra.mrb[20].mxu0 %vm341_vm2, %v2881_v16  ;;  %2600 = vmatmul.mubr.msk.bf16.gmra.mrb[20].mxu1 %vm341_vm2, %v2882_v17 }
  0x47   : > { %2519 = vmatprep.mubr.msk.bf16.mxu0 %vm3013_vm0, %v3012_v1  ;;  %2603 = vmatprep.mubr.msk.bf16.mxu1 %vm3013_vm0, %v3012_v1 }
  0x4e   : > { %2520 = vmatmul.mubr.msk.bf16.gmra.mrb[24].mxu0 %vm341_vm2, %v2883_v18  ;;  %2604 = vmatmul.mubr.msk.bf16.gmra.mrb[24].mxu1 %vm341_vm2, %v2884_v19 }
  0x4f   : > { %2523 = vmatprep.mubr.msk.bf16.mxu0 %vm3013_vm0, %v3012_v1  ;;  %2607 = vmatprep.mubr.msk.bf16.mxu1 %vm3013_vm0, %v3012_v1 }
  0x56   : > { %2524 = vmatmul.mubr.msk.bf16.gmra.mrb[28].mxu0 %vm341_vm2, %v2885_v20  ;;  %2608 = vmatmul.mubr.msk.bf16.gmra.mrb[28].mxu1 %vm341_vm2, %v2886_v21 }
  0x57   : > { %2527 = vmatprep.mubr.msk.bf16.mxu0 %vm3013_vm0, %v3012_v1  ;;  %2611 = vmatprep.mubr.msk.bf16.mxu1 %vm3013_vm0, %v3012_v1 }
  0x5e   : > { %2528 = vmatmul.mubr.msk.bf16.gmra.mrb[32].mxu0 %vm341_vm2, %v2887_v22  ;;  %2612 = vmatmul.mubr.msk.bf16.gmra.mrb[32].mxu1 %vm341_vm2, %v2888_v23 }
  0x5f   : > { %2531 = vmatprep.mubr.msk.bf16.mxu0 %vm3013_vm0, %v3012_v1  ;;  %2615 = vmatprep.mubr.msk.bf16.mxu1 %vm3013_vm0, %v3012_v1 }
  0x66   : > { %2532 = vmatmul.mubr.msk.bf16.gmra.mrb[36].mxu0 %vm341_vm2, %v2889_v24  ;;  %2616 = vmatmul.mubr.msk.bf16.gmra.mrb[36].mxu1 %vm341_vm2, %v2890_v25  ;;  %v2927_v24 = vld [vmem:[%s3111_s9 + $0x170] sm:$0xff]   ;;  %v2928_v25 = vld [vmem:[%s3111_s9 + $0x204] sm:$0xff]  }
  0x67   : > { %2535 = vmatprep.mubr.msk.bf16.mxu0 %vm3013_vm0, %v3012_v1  ;;  %2619 = vmatprep.mubr.msk.bf16.mxu1 %vm3013_vm0, %v3012_v1 }
  0x6e   : > { %2536 = vmatmul.mubr.msk.bf16.gmra.mrb[40].mxu0 %vm341_vm2, %v2891_v26  ;;  %2620 = vmatmul.mubr.msk.bf16.gmra.mrb[40].mxu1 %vm341_vm2, %v2892_v27 }
  0x6f   : > { %2539 = vmatprep.mubr.msk.bf16.mxu0 %vm3013_vm0, %v3012_v1  ;;  %2623 = vmatprep.mubr.msk.bf16.mxu1 %vm3013_vm0, %v3012_v1 }
  0x76   : > { %2540 = vmatmul.mubr.msk.bf16.gmra.mrb[44].mxu0 %vm341_vm2, %v2893_v28  ;;  %2624 = vmatmul.mubr.msk.bf16.gmra.mrb[44].mxu1 %vm341_vm2, %v2894_v29 }
  0x77   : > { %2543 = vmatprep.mubr.msk.bf16.mxu0 %vm3013_vm0, %v3012_v1  ;;  %2627 = vmatprep.mubr.msk.bf16.mxu1 %vm3013_vm0, %v3012_v1 }
  0x7e   : > { %2544 = vmatmul.mubr.msk.bf16.gmra.mrb[48].mxu0 %vm341_vm2, %v2895_v30  ;;  %2628 = vmatmul.mubr.msk.bf16.gmra.mrb[48].mxu1 %vm341_vm2, %v2896_v31 }
  0x7f   : > { %2547 = vmatprep.mubr.msk.bf16.mxu0 %vm3013_vm0, %v3012_v1  ;;  %2631 = vmatprep.mubr.msk.bf16.mxu1 %vm3013_vm0, %v3012_v1 }
  0x86   : > { %2548 = vmatmul.mubr.msk.bf16.gmra.mrb[52].mxu0 %vm341_vm2, %v2897_v32  ;;  %2632 = vmatmul.mubr.msk.bf16.gmra.mrb[52].mxu1 %vm341_vm2, %v2898_v33 }
  0x87   : > { %2551 = vmatprep.mubr.msk.bf16.mxu0 %vm3013_vm0, %v3012_v1  ;;  %2635 = vmatprep.mubr.msk.bf16.mxu1 %vm3013_vm0, %v3012_v1 }
  0x8e   : > { %2552 = vmatmul.mubr.msk.bf16.gmra.mrb[56].mxu0 %vm341_vm2, %v2899_v34  ;;  %2636 = vmatmul.mubr.msk.bf16.gmra.mrb[56].mxu1 %vm341_vm2, %v2900_v35 }
  0x8f   : > { %2555 = vmatprep.mubr.msk.bf16.mxu0 %vm3013_vm0, %v3012_v1  ;;  %2639 = vmatprep.mubr.msk.bf16.mxu1 %vm3013_vm0, %v3012_v1 }
  0x96   : > { %2556 = vmatmul.mubr.msk.bf16.gmra.mrb[60].mxu0 %vm341_vm2, %v2901_v36  ;;  %2640 = vmatmul.mubr.msk.bf16.gmra.mrb[60].mxu1 %vm341_vm2, %v2902_v37 }
  0x97   : > { %2559 = vmatprep.mubr.msk.bf16.mxu0 %vm3013_vm0, %v3012_v1  ;;  %2643 = vmatprep.mubr.msk.bf16.mxu1 %vm3013_vm0, %v3012_v1 }
  0x9e   : > { %2560 = vmatmul.mubr.msk.bf16.gmra.mrb[64].mxu0 %vm341_vm2, %v2903_v38  ;;  %2644 = vmatmul.mubr.msk.bf16.gmra.mrb[64].mxu1 %vm341_vm2, %v2904_v39 }
  0x9f   : > { %2563 = vmatprep.mubr.msk.bf16.mxu0 %vm3013_vm0, %v3012_v1  ;;  %2647 = vmatprep.mubr.msk.bf16.mxu1 %vm3013_vm0, %v3012_v1 }
  0xa6   : > { %2564 = vmatmul.mubr.msk.bf16.gmra.mrb[68].mxu0 %vm341_vm2, %v2905_v40  ;;  %2648 = vmatmul.mubr.msk.bf16.gmra.mrb[68].mxu1 %vm341_vm2, %v2906_v41 }
  0xa7   : > { %2567 = vmatprep.mubr.msk.bf16.mxu0 %vm3013_vm0, %v3012_v1  ;;  %2651 = vmatprep.mubr.msk.bf16.mxu1 %vm3013_vm0, %v3012_v1 }
  0xae   : > { %2568 = vmatmul.mubr.msk.bf16.gmra.mrb[72].mxu0 %vm341_vm2, %v2907_v42  ;;  %2652 = vmatmul.mubr.msk.bf16.gmra.mrb[72].mxu1 %vm341_vm2, %v2908_v43 }
  0xaf   : > { %2663 = vmatprep.mubr.msk.bf16.mxu0 %vm3013_vm0, %v3012_v1  ;;  %2747 = vmatprep.mubr.msk.bf16.mxu1 %vm3013_vm0, %v3012_v1 }
  0xb6   : > { %2664 = vmatmul.mubr.msk.bf16.vlgmr.msra.gmra.mrb[76].mxu0 %vm341_vm2, %v2909_v44  ;;  %2748 = vmatmul.mubr.msk.bf16.vlgmr.msra.gmra.mrb[76].mxu1 %vm341_vm2, %v2910_v45 }
  0xb7   : > { %2667 = vmatprep.mubr.msk.bf16.mxu0 %vm3013_vm0, %v3012_v1  ;;  %2751 = vmatprep.mubr.msk.bf16.mxu1 %vm3013_vm0, %v3012_v1 }
  0xbe   : > { %2668 = vmatmul.mubr.msk.bf16.gmra.mrb[80].mxu0 %vm341_vm2, %v2911_v46  ;;  %2752 = vmatmul.mubr.msk.bf16.gmra.mrb[80].mxu1 %vm341_vm2, %v2912_v47  ;;  %v2929_v46 = vld [vmem:[%s3111_s9 + $0x178] sm:$0xff]   ;;  %v2930_v47 = vld [vmem:[%s3111_s9 + $0x20c] sm:$0xff]  }
  0xbf   : > { %2671 = vmatprep.mubr.msk.bf16.mxu0 %vm3013_vm0, %v3012_v1  ;;  %2755 = vmatprep.mubr.msk.bf16.mxu1 %vm3013_vm0, %v3012_v1 }
  0xc6   : > { %2672 = vmatmul.mubr.msk.bf16.gmra.mrb[84].mxu0 %vm341_vm2, %v2913_v48  ;;  %2756 = vmatmul.mubr.msk.bf16.gmra.mrb[84].mxu1 %vm341_vm2, %v2914_v49 }
  0xc7   : > { %2675 = vmatprep.mubr.msk.bf16.mxu0 %vm3013_vm0, %v3012_v1  ;;  %2759 = vmatprep.mubr.msk.bf16.mxu1 %vm3013_vm0, %v3012_v1 }
  0xce   : > { %2676 = vmatmul.mubr.msk.bf16.gmra.mrb[88].mxu0 %vm341_vm2, %v2915_v50  ;;  %2760 = vmatmul.mubr.msk.bf16.gmra.mrb[88].mxu1 %vm341_vm2, %v2916_v51 }
  0xcf   : > { %2679 = vmatprep.mubr.msk.bf16.mxu0 %vm3013_vm0, %v3012_v1  ;;  %2763 = vmatprep.mubr.msk.bf16.mxu1 %vm3013_vm0, %v3012_v1 }
  0xd6   : > { %2680 = vmatmul.mubr.msk.bf16.gmra.mrb[92].mxu0 %vm341_vm2, %v2917_v52  ;;  %2764 = vmatmul.mubr.msk.bf16.gmra.mrb[92].mxu1 %vm341_vm2, %v2918_v53 }
  0xd7   : > { %2683 = vmatprep.mubr.msk.bf16.mxu0 %vm3013_vm0, %v3012_v1  ;;  %2767 = vmatprep.mubr.msk.bf16.mxu1 %vm3013_vm0, %v3012_v1 }
  0xde   : > { %2684 = vmatmul.mubr.msk.bf16.gmra.mrb[96].mxu0 %vm341_vm2, %v2919_v54  ;;  %2768 = vmatmul.mubr.msk.bf16.gmra.mrb[96].mxu1 %vm341_vm2, %v2920_v55 }
  0xdf   : > { %2687 = vmatprep.mubr.msk.bf16.mxu0 %vm3013_vm0, %v3012_v1  ;;  %2771 = vmatprep.mubr.msk.bf16.mxu1 %vm3013_vm0, %v3012_v1 }
  0xe6   : > { %2688 = vmatmul.mubr.msk.bf16.gmra.mrb[100].mxu0 %vm341_vm2, %v2921_v56  ;;  %2772 = vmatmul.mubr.msk.bf16.gmra.mrb[100].mxu1 %vm341_vm2, %v2922_v57 }
  0xe7   : > { %2691 = vmatprep.mubr.msk.bf16.mxu0 %vm3013_vm0, %v3012_v1  ;;  %2775 = vmatprep.mubr.msk.bf16.mxu1 %vm3013_vm0, %v3012_v1 }
  0xee   : > { %2692 = vmatmul.mubr.msk.bf16.gmra.mrb[104].mxu0 %vm341_vm2, %v2923_v58  ;;  %2776 = vmatmul.mubr.msk.bf16.gmra.mrb[104].mxu1 %vm341_vm2, %v2924_v59 }
  0xef   : > { %2695 = vmatprep.mubr.msk.bf16.mxu0 %vm3013_vm0, %v3012_v1  ;;  %2779 = vmatprep.mubr.msk.bf16.mxu1 %vm3013_vm0, %v3012_v1 }
  0xf1   : > { %v437_v61 = vpop.f32.mrb[0].mxu0  ;;  %v892_v62 = vpop.f32.mrb[0].mxu1 }
  0xf2   : > { %v438_v63 = vadd.f32 %v3338_v60, %v437_v61  ;;  %v893_v0 = vadd.f32 %v3338_v60, %v892_v62  ;;  %v2497_v2 = vpop.f32.mrb[1].mxu0  ;;  %v2581_v3 = vpop.f32.mrb[1].mxu1 }
  0xf3   : > { %v440_v6 = vpop.f32.mrb[2].mxu0  ;;  %v895_v7 = vpop.f32.mrb[2].mxu1 }
  0xf4   : > { %v441_v8 = vadd.f32 %v3338_v60, %v440_v6  ;;  %v896_v9 = vadd.f32 %v3338_v60, %v895_v7  ;;  %v2498_v10 = vpop.f32.mrb[3].mxu0  ;;  %v2582_v11 = vpop.f32.mrb[3].mxu1  ;;  %v587_v12 = vmax.f32 %v438_v63, 0.0  ;;  %v1042_v13 = vmax.f32 %v893_v0, 0.0  ;;  %v2931_v6 = vld [vmem:[%s3111_s9 + $0x180] sm:$0xff]   ;;  %v2932_v7 = vld [vmem:[%s3111_s9 + $0x214] sm:$0xff]  }
  0xf6   : > { %v588_v14 = vmax.f32 %v441_v8, 0.0  ;;  %v1043_v15 = vmax.f32 %v896_v9, 0.0  ;;  %2696 = vmatmul.mubr.msk.bf16.gmra.mrb[108].mxu0 %vm341_vm2, %v2925_v4  ;;  %2780 = vmatmul.mubr.msk.bf16.gmra.mrb[108].mxu1 %vm341_vm2, %v2926_v5 }
  0xf7   : > { %2699 = vmatprep.mubr.msk.bf16.mxu0 %vm3013_vm0, %v3012_v1  ;;  %2783 = vmatprep.mubr.msk.bf16.mxu1 %vm3013_vm0, %v3012_v1 }
  0xf8   : > { %v624_v16 = vadd.f32 %v588_v14, %v587_v12  ;;  %v1079_v17 = vadd.f32 %v1043_v15, %v1042_v13 }
  0xf9   : > { %v445_v18 = vpop.f32.mrb[4].mxu0  ;;  %v900_v19 = vpop.f32.mrb[4].mxu1 }
  0xfa   : > { %v446_v20 = vadd.f32 %v3338_v60, %v445_v18  ;;  %v901_v21 = vadd.f32 %v3338_v60, %v900_v19  ;;  %v2501_v22 = vpop.f32.mrb[5].mxu0  ;;  %v2585_v23 = vpop.f32.mrb[5].mxu1 }
  0xfb   : > { %v448_v26 = vpop.f32.mrb[6].mxu0  ;;  %v903_v27 = vpop.f32.mrb[6].mxu1 }
  0xfc   : > { %v589_v28 = vmax.f32 %v446_v20, 0.0  ;;  %v1044_v29 = vmax.f32 %v901_v21, 0.0  ;;  %v449_v30 = vadd.f32 %v3338_v60, %v448_v26  ;;  %v904_v31 = vadd.f32 %v3338_v60, %v903_v27  ;;  %v2502_v32 = vpop.f32.mrb[7].mxu0  ;;  %v2586_v33 = vpop.f32.mrb[7].mxu1 }
  0xfe   : > { %v625_v34 = vadd.f32 %v624_v16, %v589_v28  ;;  %v1080_v35 = vadd.f32 %v1079_v17, %v1044_v29  ;;  %v590_v36 = vmax.f32 %v449_v30, 0.0  ;;  %v1045_v37 = vmax.f32 %v904_v31, 0.0  ;;  %2700 = vmatmul.mubr.msk.bf16.gmra.mrb[112].mxu0 %vm341_vm2, %v2927_v24  ;;  %2784 = vmatmul.mubr.msk.bf16.gmra.mrb[112].mxu1 %vm341_vm2, %v2928_v25  ;;  %v2933_v28 = vld [vmem:[%s3111_s9 + $0x188] sm:$0xff]   ;;  %v2934_v29 = vld [vmem:[%s3111_s9 + $0x21c] sm:$0xff]  }
  0xff   : > { %2703 = vmatprep.mubr.msk.bf16.mxu0 %vm3013_vm0, %v3012_v1  ;;  %2787 = vmatprep.mubr.msk.bf16.mxu1 %vm3013_vm0, %v3012_v1 }
 0x100   : > { %v626_v38 = vadd.f32 %v625_v34, %v590_v36  ;;  %v1081_v39 = vadd.f32 %v1080_v35, %v1045_v37 }
 0x101   : > { %v453_v40 = vpop.f32.mrb[8].mxu0  ;;  %v908_v41 = vpop.f32.mrb[8].mxu1 }
 0x102   : > { %v454_v42 = vadd.f32 %v3338_v60, %v453_v40  ;;  %v909_v43 = vadd.f32 %v3338_v60, %v908_v41  ;;  %v2505_v44 = vpop.f32.mrb[9].mxu0  ;;  %v2589_v45 = vpop.f32.mrb[9].mxu1 }
 0x103   : > { %v456_v48 = vpop.f32.mrb[10].mxu0  ;;  %v911_v49 = vpop.f32.mrb[10].mxu1 }
 0x104   : > { %v591_v50 = vmax.f32 %v454_v42, 0.0  ;;  %v1046_v51 = vmax.f32 %v909_v43, 0.0  ;;  %v457_v52 = vadd.f32 %v3338_v60, %v456_v48  ;;  %v912_v53 = vadd.f32 %v3338_v60, %v911_v49  ;;  %v2506_v54 = vpop.f32.mrb[11].mxu0  ;;  %v2590_v55 = vpop.f32.mrb[11].mxu1 }
 0x106   : > { %v627_v56 = vadd.f32 %v626_v38, %v591_v50  ;;  %v1082_v57 = vadd.f32 %v1081_v39, %v1046_v51  ;;  %v592_v58 = vmax.f32 %v457_v52, 0.0  ;;  %v1047_v59 = vmax.f32 %v912_v53, 0.0  ;;  %2704 = vmatmul.mubr.msk.bf16.gmra.mrb[116].mxu0 %vm341_vm2, %v2929_v46  ;;  %2788 = vmatmul.mubr.msk.bf16.gmra.mrb[116].mxu1 %vm341_vm2, %v2930_v47  ;;  %v2935_v50 = vld [vmem:[%s3111_s9 + $0x190] sm:$0xff]   ;;  %v2936_v51 = vld [vmem:[%s3111_s9 + $0x224] sm:$0xff]  }
 0x107   : > { %2707 = vmatprep.mubr.msk.bf16.mxu0 %vm3013_vm0, %v3012_v1  ;;  %2791 = vmatprep.mubr.msk.bf16.mxu1 %vm3013_vm0, %v3012_v1 }
 0x108   : > { %v628_v61 = vadd.f32 %v627_v56, %v592_v58  ;;  %v1083_v62 = vadd.f32 %v1082_v57, %v1047_v59 }
 0x109   : > { %v461_v63 = vpop.f32.mrb[12].mxu0  ;;  %v916_v0 = vpop.f32.mrb[12].mxu1 }
 0x10a   : > { %v462_v2 = vadd.f32 %v3338_v60, %v461_v63  ;;  %v917_v3 = vadd.f32 %v3338_v60, %v916_v0  ;;  %v2509_v4 = vpop.f32.mrb[13].mxu0  ;;  %v2593_v5 = vpop.f32.mrb[13].mxu1 }
 0x10b   : > { %v464_v8 = vpop.f32.mrb[14].mxu0  ;;  %v919_v9 = vpop.f32.mrb[14].mxu1 }
 0x10c   : > { %v593_v10 = vmax.f32 %v462_v2, 0.0  ;;  %v1048_v11 = vmax.f32 %v917_v3, 0.0  ;;  %v465_v12 = vadd.f32 %v3338_v60, %v464_v8  ;;  %v920_v13 = vadd.f32 %v3338_v60, %v919_v9  ;;  %v2510_v14 = vpop.f32.mrb[15].mxu0  ;;  %v2594_v15 = vpop.f32.mrb[15].mxu1 }
 0x10e   : > { %v629_v16 = vadd.f32 %v628_v61, %v593_v10  ;;  %v1084_v17 = vadd.f32 %v1083_v62, %v1048_v11  ;;  %v594_v18 = vmax.f32 %v465_v12, 0.0  ;;  %v1049_v19 = vmax.f32 %v920_v13, 0.0  ;;  %2708 = vmatmul.mubr.msk.bf16.gmra.mrb[120].mxu0 %vm341_vm2, %v2931_v6  ;;  %2792 = vmatmul.mubr.msk.bf16.gmra.mrb[120].mxu1 %vm341_vm2, %v2932_v7  ;;  %v2937_v10 = vld [vmem:[%s3111_s9 + $0x198] sm:$0xff]   ;;  %v2938_v11 = vld [vmem:[%s3111_s9 + $0x22c] sm:$0xff]  }
 0x10f   : > { %2711 = vmatprep.mubr.msk.bf16.mxu0 %vm3013_vm0, %v3012_v1  ;;  %2795 = vmatprep.mubr.msk.bf16.mxu1 %vm3013_vm0, %v3012_v1 }
 0x110   : > { %v630_v20 = vadd.f32 %v629_v16, %v594_v18  ;;  %v1085_v21 = vadd.f32 %v1084_v17, %v1049_v19 }
 0x111   : > { %v469_v22 = vpop.f32.mrb[16].mxu0  ;;  %v924_v23 = vpop.f32.mrb[16].mxu1 }
 0x112   : > { %v470_v24 = vadd.f32 %v3338_v60, %v469_v22  ;;  %v925_v25 = vadd.f32 %v3338_v60, %v924_v23  ;;  %v2513_v26 = vpop.f32.mrb[17].mxu0  ;;  %v2597_v27 = vpop.f32.mrb[17].mxu1 }
 0x113   : > { %v472_v30 = vpop.f32.mrb[18].mxu0  ;;  %v927_v31 = vpop.f32.mrb[18].mxu1 }
 0x114   : > { %v595_v32 = vmax.f32 %v470_v24, 0.0  ;;  %v1050_v33 = vmax.f32 %v925_v25, 0.0  ;;  %v473_v34 = vadd.f32 %v3338_v60, %v472_v30  ;;  %v928_v35 = vadd.f32 %v3338_v60, %v927_v31  ;;  %v2514_v36 = vpop.f32.mrb[19].mxu0  ;;  %v2598_v37 = vpop.f32.mrb[19].mxu1 }
 0x116   : > { %v631_v38 = vadd.f32 %v630_v20, %v595_v32  ;;  %v1086_v39 = vadd.f32 %v1085_v21, %v1050_v33  ;;  %v596_v40 = vmax.f32 %v473_v34, 0.0  ;;  %v1051_v41 = vmax.f32 %v928_v35, 0.0  ;;  %2712 = vmatmul.mubr.msk.bf16.gmra.mrb[124].mxu0 %vm341_vm2, %v2933_v28  ;;  %2796 = vmatmul.mubr.msk.bf16.gmra.mrb[124].mxu1 %vm341_vm2, %v2934_v29  ;;  %v2939_v32 = vld [vmem:[%s3111_s9 + $0x1a0] sm:$0xff]   ;;  %v2940_v33 = vld [vmem:[%s3111_s9 + $0x234] sm:$0xff]  }
 0x117   : > { %2715 = vmatprep.mubr.msk.bf16.mxu0 %vm3013_vm0, %v3012_v1  ;;  %2799 = vmatprep.mubr.msk.bf16.mxu1 %vm3013_vm0, %v3012_v1 }
 0x118   : > { %v632_v42 = vadd.f32 %v631_v38, %v596_v40  ;;  %v1087_v43 = vadd.f32 %v1086_v39, %v1051_v41 }
 0x119   : > { %v477_v44 = vpop.f32.mrb[20].mxu0  ;;  %v932_v45 = vpop.f32.mrb[20].mxu1 }
 0x11a   : > { %v478_v46 = vadd.f32 %v3338_v60, %v477_v44  ;;  %v933_v47 = vadd.f32 %v3338_v60, %v932_v45  ;;  %v2517_v48 = vpop.f32.mrb[21].mxu0  ;;  %v2601_v49 = vpop.f32.mrb[21].mxu1 }
 0x11b   : > { %v480_v52 = vpop.f32.mrb[22].mxu0  ;;  %v935_v53 = vpop.f32.mrb[22].mxu1 }
 0x11c   : > { %v597_v54 = vmax.f32 %v478_v46, 0.0  ;;  %v1052_v55 = vmax.f32 %v933_v47, 0.0  ;;  %v481_v56 = vadd.f32 %v3338_v60, %v480_v52  ;;  %v936_v57 = vadd.f32 %v3338_v60, %v935_v53  ;;  %v2518_v58 = vpop.f32.mrb[23].mxu0  ;;  %v2602_v59 = vpop.f32.mrb[23].mxu1 }
 0x11e   : > { %v633_v61 = vadd.f32 %v632_v42, %v597_v54  ;;  %v1088_v62 = vadd.f32 %v1087_v43, %v1052_v55  ;;  %v598_v63 = vmax.f32 %v481_v56, 0.0  ;;  %v1053_v0 = vmax.f32 %v936_v57, 0.0  ;;  %2716 = vmatmul.mubr.msk.bf16.gmra.mrb[128].mxu0 %vm341_vm2, %v2935_v50  ;;  %2800 = vmatmul.mubr.msk.bf16.gmra.mrb[128].mxu1 %vm341_vm2, %v2936_v51  ;;  %v2941_v54 = vld [vmem:[%s3111_s9 + $0x1a8] sm:$0xff]   ;;  %v2942_v55 = vld [vmem:[%s3111_s9 + $0x23c] sm:$0xff]  }
 0x11f   : > { %2719 = vmatprep.mubr.msk.bf16.mxu0 %vm3013_vm0, %v3012_v1  ;;  %2803 = vmatprep.mubr.msk.bf16.mxu1 %vm3013_vm0, %v3012_v1 }
 0x120   : > { %v634_v2 = vadd.f32 %v633_v61, %v598_v63  ;;  %v1089_v3 = vadd.f32 %v1088_v62, %v1053_v0 }
 0x121   : > { %v485_v4 = vpop.f32.mrb[24].mxu0  ;;  %v940_v5 = vpop.f32.mrb[24].mxu1 }
 0x122   : > { %v486_v6 = vadd.f32 %v3338_v60, %v485_v4  ;;  %v941_v7 = vadd.f32 %v3338_v60, %v940_v5  ;;  %v2521_v8 = vpop.f32.mrb[25].mxu0  ;;  %v2605_v9 = vpop.f32.mrb[25].mxu1 }
 0x123   : > { %v488_v12 = vpop.f32.mrb[26].mxu0  ;;  %v943_v13 = vpop.f32.mrb[26].mxu1 }
 0x124   : > { %v599_v14 = vmax.f32 %v486_v6, 0.0  ;;  %v1054_v15 = vmax.f32 %v941_v7, 0.0  ;;  %v489_v16 = vadd.f32 %v3338_v60, %v488_v12  ;;  %v944_v17 = vadd.f32 %v3338_v60, %v943_v13  ;;  %v2522_v18 = vpop.f32.mrb[27].mxu0  ;;  %v2606_v19 = vpop.f32.mrb[27].mxu1 }
 0x126   : > { %v635_v20 = vadd.f32 %v634_v2, %v599_v14  ;;  %v1090_v21 = vadd.f32 %v1089_v3, %v1054_v15  ;;  %v600_v22 = vmax.f32 %v489_v16, 0.0  ;;  %v1055_v23 = vmax.f32 %v944_v17, 0.0  ;;  %2720 = vmatmul.mubr.msk.bf16.gmra.mrb[132].mxu0 %vm341_vm2, %v2937_v10  ;;  %2804 = vmatmul.mubr.msk.bf16.gmra.mrb[132].mxu1 %vm341_vm2, %v2938_v11  ;;  %v2943_v14 = vld [vmem:[%s3111_s9 + $0x1b0] sm:$0xff]   ;;  %v2944_v15 = vld [vmem:[%s3111_s9 + $0x244] sm:$0xff]  }
 0x127   : > { %2723 = vmatprep.mubr.msk.bf16.mxu0 %vm3013_vm0, %v3012_v1  ;;  %2807 = vmatprep.mubr.msk.bf16.mxu1 %vm3013_vm0, %v3012_v1 }
 0x128   : > { %v636_v24 = vadd.f32 %v635_v20, %v600_v22  ;;  %v1091_v25 = vadd.f32 %v1090_v21, %v1055_v23 }
 0x129   : > { %v493_v26 = vpop.f32.mrb[28].mxu0  ;;  %v948_v27 = vpop.f32.mrb[28].mxu1 }
 0x12a   : > { %v494_v28 = vadd.f32 %v3338_v60, %v493_v26  ;;  %v949_v29 = vadd.f32 %v3338_v60, %v948_v27  ;;  %v2525_v30 = vpop.f32.mrb[29].mxu0  ;;  %v2609_v31 = vpop.f32.mrb[29].mxu1 }
 0x12b   : > { %v496_v34 = vpop.f32.mrb[30].mxu0  ;;  %v951_v35 = vpop.f32.mrb[30].mxu1 }
 0x12c   : > { %v601_v36 = vmax.f32 %v494_v28, 0.0  ;;  %v1056_v37 = vmax.f32 %v949_v29, 0.0  ;;  %v497_v38 = vadd.f32 %v3338_v60, %v496_v34  ;;  %v952_v39 = vadd.f32 %v3338_v60, %v951_v35  ;;  %v2526_v40 = vpop.f32.mrb[31].mxu0  ;;  %v2610_v41 = vpop.f32.mrb[31].mxu1 }
 0x12e   : > { %v637_v42 = vadd.f32 %v636_v24, %v601_v36  ;;  %v1092_v43 = vadd.f32 %v1091_v25, %v1056_v37  ;;  %v602_v44 = vmax.f32 %v497_v38, 0.0  ;;  %v1057_v45 = vmax.f32 %v952_v39, 0.0  ;;  %2724 = vmatmul.mubr.msk.bf16.gmra.mrb[136].mxu0 %vm341_vm2, %v2939_v32  ;;  %2808 = vmatmul.mubr.msk.bf16.gmra.mrb[136].mxu1 %vm341_vm2, %v2940_v33  ;;  %v2945_v32 = vld [vmem:[%s3111_s9 + $0x1b8] ss:$0 sps:$4 sm:$0x77]  }
 0x12f   : > { %2727 = vmatprep.mubr.msk.bf16.mxu0 %vm3013_vm0, %v3012_v1  ;;  %2811 = vmatprep.mubr.msk.bf16.mxu1 %vm3013_vm0, %v3012_v1  ;;  %v2946_v37 = vld [vmem:[%s3111_s9 + $0x24c] ss:$0 sps:$4 sm:$0x77]  }
 0x130   : > { %v638_v46 = vadd.f32 %v637_v42, %v602_v44  ;;  %v1093_v47 = vadd.f32 %v1092_v43, %v1057_v45 }
 0x131   : > { %v501_v48 = vpop.f32.mrb[32].mxu0  ;;  %v956_v49 = vpop.f32.mrb[32].mxu1 }
 0x132   : > { %v502_v50 = vadd.f32 %v3338_v60, %v501_v48  ;;  %v957_v51 = vadd.f32 %v3338_v60, %v956_v49  ;;  %v2529_v52 = vpop.f32.mrb[33].mxu0  ;;  %v2613_v53 = vpop.f32.mrb[33].mxu1 }
 0x133   : > { %v504_v56 = vpop.f32.mrb[34].mxu0  ;;  %v959_v57 = vpop.f32.mrb[34].mxu1 }
 0x134   : > { %v603_v58 = vmax.f32 %v502_v50, 0.0  ;;  %v1058_v59 = vmax.f32 %v957_v51, 0.0  ;;  %v505_v61 = vadd.f32 %v3338_v60, %v504_v56  ;;  %v960_v62 = vadd.f32 %v3338_v60, %v959_v57  ;;  %v2530_v63 = vpop.f32.mrb[35].mxu0  ;;  %v2614_v0 = vpop.f32.mrb[35].mxu1 }
 0x136   : > { %v639_v2 = vadd.f32 %v638_v46, %v603_v58  ;;  %v1094_v3 = vadd.f32 %v1093_v47, %v1058_v59  ;;  %v604_v4 = vmax.f32 %v505_v61, 0.0  ;;  %v1059_v5 = vmax.f32 %v960_v62, 0.0  ;;  %2728 = vmatmul.mubr.msk.bf16.gmra.mrb[140].mxu0 %vm341_vm2, %v2941_v54  ;;  %2812 = vmatmul.mubr.msk.bf16.gmra.mrb[140].mxu1 %vm341_vm2, %v2942_v55 }
 0x137   : > { %2731 = vmatprep.mubr.msk.bf16.mxu0 %vm3013_vm0, %v3012_v1  ;;  %2815 = vmatprep.mubr.msk.bf16.mxu1 %vm3013_vm0, %v3012_v1 }
 0x138   : > { %v640_v6 = vadd.f32 %v639_v2, %v604_v4  ;;  %v1095_v7 = vadd.f32 %v1094_v3, %v1059_v5 }
 0x139   : > { %v509_v8 = vpop.f32.mrb[36].mxu0  ;;  %v964_v9 = vpop.f32.mrb[36].mxu1 }
 0x13a   : > { %v510_v10 = vadd.f32 %v3338_v60, %v509_v8  ;;  %v965_v11 = vadd.f32 %v3338_v60, %v964_v9  ;;  %v2533_v12 = vpop.f32.mrb[37].mxu0  ;;  %v2617_v13 = vpop.f32.mrb[37].mxu1 }
 0x13b   : > { %v512_v16 = vpop.f32.mrb[38].mxu0  ;;  %v967_v17 = vpop.f32.mrb[38].mxu1 }
 0x13c   : > { %v605_v18 = vmax.f32 %v510_v10, 0.0  ;;  %v1060_v19 = vmax.f32 %v965_v11, 0.0  ;;  %v513_v20 = vadd.f32 %v3338_v60, %v512_v16  ;;  %v968_v21 = vadd.f32 %v3338_v60, %v967_v17  ;;  %v2534_v22 = vpop.f32.mrb[39].mxu0  ;;  %v2618_v23 = vpop.f32.mrb[39].mxu1 }
 0x13e   : > { %v641_v24 = vadd.f32 %v640_v6, %v605_v18  ;;  %v1096_v25 = vadd.f32 %v1095_v7, %v1060_v19  ;;  %v606_v26 = vmax.f32 %v513_v20, 0.0  ;;  %v1061_v27 = vmax.f32 %v968_v21, 0.0  ;;  %2732 = vmatmul.mubr.msk.bf16.gmra.mrb[144].mxu0 %vm341_vm2, %v2943_v14  ;;  %2816 = vmatmul.mubr.msk.bf16.gmra.mrb[144].mxu1 %vm341_vm2, %v2944_v15 }
 0x13f   : > { %2735 = vmatprep.mubr.msk.bf16.mxu0 %vm3013_vm0, %v3012_v1  ;;  %2819 = vmatprep.mubr.msk.bf16.mxu1 %vm3013_vm0, %v3012_v1 }
 0x140   : > { %v642_v28 = vadd.f32 %v641_v24, %v606_v26  ;;  %v1097_v29 = vadd.f32 %v1096_v25, %v1061_v27 }
 0x141   : > { %v517_v30 = vpop.f32.mrb[40].mxu0  ;;  %v972_v31 = vpop.f32.mrb[40].mxu1 }
 0x142   : > { %v518_v33 = vadd.f32 %v3338_v60, %v517_v30  ;;  %v973_v34 = vadd.f32 %v3338_v60, %v972_v31  ;;  %v2537_v35 = vpop.f32.mrb[41].mxu0  ;;  %v2621_v36 = vpop.f32.mrb[41].mxu1 }
 0x143   : > { %v520_v38 = vpop.f32.mrb[42].mxu0  ;;  %v975_v39 = vpop.f32.mrb[42].mxu1 }
 0x144   : > { %v607_v40 = vmax.f32 %v518_v33, 0.0  ;;  %v1062_v41 = vmax.f32 %v973_v34, 0.0  ;;  %v521_v42 = vadd.f32 %v3338_v60, %v520_v38  ;;  %v976_v1 = vadd.f32 %v3338_v60, %v975_v39  ;;  %v2538_v43 = vpop.f32.mrb[43].mxu0  ;;  %v2622_v44 = vpop.f32.mrb[43].mxu1 }
 0x146   : > { %v643_v45 = vadd.f32 %v642_v28, %v607_v40  ;;  %v1098_v46 = vadd.f32 %v1097_v29, %v1062_v41  ;;  %v608_v47 = vmax.f32 %v521_v42, 0.0  ;;  %v1063_v48 = vmax.f32 %v976_v1, 0.0  ;;  %2736 = vmatmul.mubr.msk.bf16.gmra.mrb[148].mxu0 %vm341_vm2, %v2945_v32  ;;  %2820 = vmatmul.mubr.msk.bf16.gmra.mrb[148].mxu1 %vm341_vm2, %v2946_v37 }
 0x148   : > { %v644_v49 = vadd.f32 %v643_v45, %v608_v47  ;;  %v1099_v50 = vadd.f32 %v1098_v46, %v1063_v48 }
 0x149   : > { %v525_v51 = vpop.f32.mrb[44].mxu0  ;;  %v980_v52 = vpop.f32.mrb[44].mxu1 }
 0x14a   : > { %v526_v53 = vadd.f32 %v3338_v60, %v525_v51  ;;  %v981_v54 = vadd.f32 %v3338_v60, %v980_v52  ;;  %v2541_v55 = vpop.f32.mrb[45].mxu0  ;;  %v2625_v56 = vpop.f32.mrb[45].mxu1 }
 0x14b   : > { %v528_v57 = vpop.f32.mrb[46].mxu0  ;;  %v983_v58 = vpop.f32.mrb[46].mxu1 }
 0x14c   : > { %v609_v59 = vmax.f32 %v526_v53, 0.0  ;;  %v1064_v61 = vmax.f32 %v981_v54, 0.0  ;;  %v529_v62 = vadd.f32 %v3338_v60, %v528_v57  ;;  %v984_v63 = vadd.f32 %v3338_v60, %v983_v58  ;;  %v2542_v0 = vpop.f32.mrb[47].mxu0  ;;  %v2626_v2 = vpop.f32.mrb[47].mxu1 }
 0x14e   : > { %v645_v3 = vadd.f32 %v644_v49, %v609_v59  ;;  %v1100_v4 = vadd.f32 %v1099_v50, %v1064_v61  ;;  %v610_v5 = vmax.f32 %v529_v62, 0.0  ;;  %v1065_v6 = vmax.f32 %v984_v63, 0.0 }
 0x150   : > { %v646_v7 = vadd.f32 %v645_v3, %v610_v5  ;;  %v1101_v8 = vadd.f32 %v1100_v4, %v1065_v6 }
 0x151   : > { %v533_v9 = vpop.f32.mrb[48].mxu0  ;;  %v988_v10 = vpop.f32.mrb[48].mxu1 }
 0x152   : > { %v534_v11 = vadd.f32 %v3338_v60, %v533_v9  ;;  %v989_v12 = vadd.f32 %v3338_v60, %v988_v10  ;;  %v2545_v13 = vpop.f32.mrb[49].mxu0  ;;  %v2629_v14 = vpop.f32.mrb[49].mxu1 }
 0x153   : > { %v536_v15 = vpop.f32.mrb[50].mxu0  ;;  %v991_v16 = vpop.f32.mrb[50].mxu1 }
 0x154   : > { %v611_v17 = vmax.f32 %v534_v11, 0.0  ;;  %v1066_v18 = vmax.f32 %v989_v12, 0.0  ;;  %v537_v19 = vadd.f32 %v3338_v60, %v536_v15  ;;  %v992_v20 = vadd.f32 %v3338_v60, %v991_v16  ;;  %v2546_v21 = vpop.f32.mrb[51].mxu0  ;;  %v2630_v22 = vpop.f32.mrb[51].mxu1 }
 0x156   : > { %v647_v23 = vadd.f32 %v646_v7, %v611_v17  ;;  %v1102_v24 = vadd.f32 %v1101_v8, %v1066_v18  ;;  %v612_v25 = vmax.f32 %v537_v19, 0.0  ;;  %v1067_v26 = vmax.f32 %v992_v20, 0.0 }
 0x158   : > { %v648_v27 = vadd.f32 %v647_v23, %v612_v25  ;;  %v1103_v28 = vadd.f32 %v1102_v24, %v1067_v26 }
 0x159   : > { %v541_v29 = vpop.f32.mrb[52].mxu0  ;;  %v996_v30 = vpop.f32.mrb[52].mxu1 }
 0x15a   : > { %v542_v31 = vadd.f32 %v3338_v60, %v541_v29  ;;  %v997_v32 = vadd.f32 %v3338_v60, %v996_v30  ;;  %v2549_v33 = vpop.f32.mrb[53].mxu0  ;;  %v2633_v34 = vpop.f32.mrb[53].mxu1 }
 0x15b   : > { %v544_v35 = vpop.f32.mrb[54].mxu0  ;;  %v999_v36 = vpop.f32.mrb[54].mxu1 }
 0x15c   : > { %v613_v37 = vmax.f32 %v542_v31, 0.0  ;;  %v1068_v38 = vmax.f32 %v997_v32, 0.0  ;;  %v545_v39 = vadd.f32 %v3338_v60, %v544_v35  ;;  %v1000_v40 = vadd.f32 %v3338_v60, %v999_v36  ;;  %v2550_v41 = vpop.f32.mrb[55].mxu0  ;;  %v2634_v42 = vpop.f32.mrb[55].mxu1 }
 0x15e   : > { %v649_v1 = vadd.f32 %v648_v27, %v613_v37  ;;  %v1104_v43 = vadd.f32 %v1103_v28, %v1068_v38  ;;  %v614_v44 = vmax.f32 %v545_v39, 0.0  ;;  %v1069_v45 = vmax.f32 %v1000_v40, 0.0 }
 0x160   : > { %v650_v46 = vadd.f32 %v649_v1, %v614_v44  ;;  %v1105_v47 = vadd.f32 %v1104_v43, %v1069_v45 }
 0x161   : > { %v549_v48 = vpop.f32.mrb[56].mxu0  ;;  %v1004_v49 = vpop.f32.mrb[56].mxu1 }
 0x162   : > { %v550_v50 = vadd.f32 %v3338_v60, %v549_v48  ;;  %v1005_v51 = vadd.f32 %v3338_v60, %v1004_v49  ;;  %v2553_v52 = vpop.f32.mrb[57].mxu0  ;;  %v2637_v53 = vpop.f32.mrb[57].mxu1 }
 0x163   : > { %v552_v54 = vpop.f32.mrb[58].mxu0  ;;  %v1007_v55 = vpop.f32.mrb[58].mxu1 }
 0x164   : > { %v615_v56 = vmax.f32 %v550_v50, 0.0  ;;  %v1070_v57 = vmax.f32 %v1005_v51, 0.0  ;;  %v553_v58 = vadd.f32 %v3338_v60, %v552_v54  ;;  %v1008_v59 = vadd.f32 %v3338_v60, %v1007_v55  ;;  %v2554_v61 = vpop.f32.mrb[59].mxu0  ;;  %v2638_v62 = vpop.f32.mrb[59].mxu1 }
 0x166   : > { %v651_v63 = vadd.f32 %v650_v46, %v615_v56  ;;  %v1106_v0 = vadd.f32 %v1105_v47, %v1070_v57  ;;  %v616_v2 = vmax.f32 %v553_v58, 0.0  ;;  %v1071_v3 = vmax.f32 %v1008_v59, 0.0 }
 0x168   : > { %v652_v4 = vadd.f32 %v651_v63, %v616_v2  ;;  %v1107_v5 = vadd.f32 %v1106_v0, %v1071_v3 }
 0x169   : > { %v557_v6 = vpop.f32.mrb[60].mxu0  ;;  %v1012_v7 = vpop.f32.mrb[60].mxu1 }
 0x16a   : > { %v558_v8 = vadd.f32 %v3338_v60, %v557_v6  ;;  %v1013_v9 = vadd.f32 %v3338_v60, %v1012_v7  ;;  %v2557_v10 = vpop.f32.mrb[61].mxu0  ;;  %v2641_v11 = vpop.f32.mrb[61].mxu1 }
 0x16b   : > { %v560_v12 = vpop.f32.mrb[62].mxu0  ;;  %v1015_v13 = vpop.f32.mrb[62].mxu1 }
 0x16c   : > { %v617_v14 = vmax.f32 %v558_v8, 0.0  ;;  %v1072_v15 = vmax.f32 %v1013_v9, 0.0  ;;  %v561_v16 = vadd.f32 %v3338_v60, %v560_v12  ;;  %v1016_v17 = vadd.f32 %v3338_v60, %v1015_v13  ;;  %v2558_v18 = vpop.f32.mrb[63].mxu0  ;;  %v2642_v19 = vpop.f32.mrb[63].mxu1 }
 0x16e   : > { %v653_v20 = vadd.f32 %v652_v4, %v617_v14  ;;  %v1108_v21 = vadd.f32 %v1107_v5, %v1072_v15  ;;  %v618_v22 = vmax.f32 %v561_v16, 0.0  ;;  %v1073_v23 = vmax.f32 %v1016_v17, 0.0 }
 0x170   : > { %v654_v24 = vadd.f32 %v653_v20, %v618_v22  ;;  %v1109_v25 = vadd.f32 %v1108_v21, %v1073_v23 }
 0x171   : > { %v565_v26 = vpop.f32.mrb[64].mxu0  ;;  %v1020_v27 = vpop.f32.mrb[64].mxu1 }
 0x172   : > { %v566_v28 = vadd.f32 %v3338_v60, %v565_v26  ;;  %v1021_v29 = vadd.f32 %v3338_v60, %v1020_v27  ;;  %v2561_v30 = vpop.f32.mrb[65].mxu0  ;;  %v2645_v31 = vpop.f32.mrb[65].mxu1 }
 0x173   : > { %v568_v32 = vpop.f32.mrb[66].mxu0  ;;  %v1023_v33 = vpop.f32.mrb[66].mxu1 }
 0x174   : > { %v619_v34 = vmax.f32 %v566_v28, 0.0  ;;  %v1074_v35 = vmax.f32 %v1021_v29, 0.0  ;;  %v569_v36 = vadd.f32 %v3338_v60, %v568_v32  ;;  %v1024_v37 = vadd.f32 %v3338_v60, %v1023_v33  ;;  %v2562_v38 = vpop.f32.mrb[67].mxu0  ;;  %v2646_v39 = vpop.f32.mrb[67].mxu1 }
 0x176   : > { %v655_v40 = vadd.f32 %v654_v24, %v619_v34  ;;  %v1110_v41 = vadd.f32 %v1109_v25, %v1074_v35  ;;  %v620_v42 = vmax.f32 %v569_v36, 0.0  ;;  %v1075_v1 = vmax.f32 %v1024_v37, 0.0 }
 0x178   : > { %v656_v43 = vadd.f32 %v655_v40, %v620_v42  ;;  %v1111_v44 = vadd.f32 %v1110_v41, %v1075_v1 }
 0x179   : > { %v573_v45 = vpop.f32.mrb[68].mxu0  ;;  %v1028_v46 = vpop.f32.mrb[68].mxu1 }
 0x17a   : > { %v574_v47 = vadd.f32 %v3338_v60, %v573_v45  ;;  %v1029_v48 = vadd.f32 %v3338_v60, %v1028_v46  ;;  %v2565_v49 = vpop.f32.mrb[69].mxu0  ;;  %v2649_v50 = vpop.f32.mrb[69].mxu1 }
 0x17b   : > { %v576_v51 = vpop.f32.mrb[70].mxu0  ;;  %v1031_v52 = vpop.f32.mrb[70].mxu1 }
 0x17c   : > { %v621_v53 = vmax.f32 %v574_v47, 0.0  ;;  %v1076_v54 = vmax.f32 %v1029_v48, 0.0  ;;  %v577_v55 = vadd.f32 %v3338_v60, %v576_v51  ;;  %v1032_v56 = vadd.f32 %v3338_v60, %v1031_v52  ;;  %v2566_v57 = vpop.f32.mrb[71].mxu0  ;;  %v2650_v58 = vpop.f32.mrb[71].mxu1 }
 0x17e   : > { %v657_v59 = vadd.f32 %v656_v43, %v621_v53  ;;  %v1112_v61 = vadd.f32 %v1111_v44, %v1076_v54  ;;  %v622_v62 = vmax.f32 %v577_v55, 0.0  ;;  %v1077_v63 = vmax.f32 %v1032_v56, 0.0 }
 0x180   : > { %v658_v0 = vadd.f32 %v657_v59, %v622_v62  ;;  %v1113_v2 = vadd.f32 %v1112_v61, %v1077_v63 }
 0x181   : > { %v581_v3 = vpop.f32.mrb[72].mxu0  ;;  %v1036_v4 = vpop.f32.mrb[72].mxu1 }
 0x182   : > { %v582_v5 = vadd.f32 %v3338_v60, %v581_v3  ;;  %v1037_v6 = vadd.f32 %v3338_v60, %v1036_v4  ;;  %v2569_v7 = vpop.f32.mrb[73].mxu0  ;;  %v2653_v8 = vpop.f32.mrb[73].mxu1 }
 0x183   : > { %v584_v9 = vpop.f32.mrb[74].mxu0  ;;  %v1039_v10 = vpop.f32.mrb[74].mxu1 }
 0x184   : > { %v623_v11 = vmax.f32 %v582_v5, 0.0  ;;  %v1078_v12 = vmax.f32 %v1037_v6, 0.0  ;;  %v2570_v13 = vpop.f32.mrb[75].mxu0  ;;  %v2654_v14 = vpop.f32.mrb[75].mxu1 }
 0x186   : > { %v660_v15 = vsel %vm659_vm3, %v623_v11, 0.0  ;;  %v1114_v16 = vsel %vm659_vm3, %v1078_v12, 0.0 }
 0x187   : > { %v661_v17 = vadd.f32 %v660_v15, %v658_v0  ;;  %v1115_v18 = vadd.f32 %v1114_v16, %v1113_v2 }
 0x189   : > { %v662_v19 = vrot.slane %v661_v17, 4  ;;  %v1116_v20 = vrot.slane %v1115_v18, 4  ;;  %v1347_v21 = vpop.f32.mrb[76].mxu0  ;;  %v1802_v22 = vpop.f32.mrb[76].mxu1 }
 0x18a   : > { %v1348_v23 = vadd.f32 %v3338_v60, %v1347_v21  ;;  %v1803_v24 = vadd.f32 %v3338_v60, %v1802_v22  ;;  %v2665_v25 = vpop.f32.mrb[77].mxu0  ;;  %v2749_v26 = vpop.f32.mrb[77].mxu1 }
 0x18b   : > { %v663_v27 = vadd.f32 %v662_v19, %v661_v17  ;;  %v1117_v28 = vadd.f32 %v1116_v20, %v1115_v18  ;;  %v1350_v29 = vpop.f32.mrb[78].mxu0  ;;  %v1805_v30 = vpop.f32.mrb[78].mxu1 }
 0x18c   : > { %v1351_v31 = vadd.f32 %v3338_v60, %v1350_v29  ;;  %v1806_v32 = vadd.f32 %v3338_v60, %v1805_v30  ;;  %v2666_v33 = vpop.f32.mrb[79].mxu0  ;;  %v2750_v34 = vpop.f32.mrb[79].mxu1  ;;  %v1497_v37 = vmax.f32 %v1348_v23, 0.0  ;;  %v1952_v38 = vmax.f32 %v1803_v24, 0.0  ;;  %v3526_v30 = vld [vmem:[%s3648_s2] ss:$0 sm:$0xff] }
 0x18d   : > { %v664_v35 = vrot.slane %v663_v27, 2  ;;  %v1118_v36 = vrot.slane %v1117_v28, 2 }
 0x18e   : > { %v1498_v39 = vmax.f32 %v1351_v31, 0.0  ;;  %v1953_v40 = vmax.f32 %v1806_v32, 0.0 }
 0x18f   : > { %v665_v41 = vadd.f32 %v664_v35, %v663_v27  ;;  %v1119_v42 = vadd.f32 %v1118_v36, %v1117_v28 }
 0x190   : > { %v1534_v1 = vadd.f32 %v1498_v39, %v1497_v37  ;;  %v1989_v43 = vadd.f32 %v1953_v40, %v1952_v38 }
 0x191   : > { %v666_v44 = vrot.slane %v665_v41, 1  ;;  %v1120_v45 = vrot.slane %v1119_v42, 1  ;;  %v1355_v46 = vpop.f32.mrb[80].mxu0  ;;  %v1810_v47 = vpop.f32.mrb[80].mxu1 }
 0x192   : > { %v1356_v48 = vadd.f32 %v3338_v60, %v1355_v46  ;;  %v1811_v49 = vadd.f32 %v3338_v60, %v1810_v47  ;;  %v2669_v50 = vpop.f32.mrb[81].mxu0  ;;  %v2753_v51 = vpop.f32.mrb[81].mxu1 }
 0x193   : > { %v667_v52 = vadd.f32 %v666_v44, %v665_v41  ;;  %v1121_v53 = vadd.f32 %v1120_v45, %v1119_v42  ;;  %v1358_v54 = vpop.f32.mrb[82].mxu0  ;;  %v1813_v55 = vpop.f32.mrb[82].mxu1 }
 0x194   : > { %v1499_v56 = vmax.f32 %v1356_v48, 0.0  ;;  %v1954_v57 = vmax.f32 %v1811_v49, 0.0  ;;  %v1359_v58 = vadd.f32 %v3338_v60, %v1358_v54  ;;  %v1814_v59 = vadd.f32 %v3338_v60, %v1813_v55  ;;  %v2670_v61 = vpop.f32.mrb[83].mxu0  ;;  %v2754_v62 = vpop.f32.mrb[83].mxu1 }
 0x195   : > { %v668_v63 = vmul.f32 0.0034013605, %v667_v52  ;;  %v1122_v0 = vmul.f32 0.0034013605, %v1121_v53 }
 0x196   : > { %v1535_v2 = vadd.f32 %v1534_v1, %v1499_v56  ;;  %v1990_v3 = vadd.f32 %v1989_v43, %v1954_v57  ;;  %v1500_v4 = vmax.f32 %v1359_v58, 0.0  ;;  %v1955_v5 = vmax.f32 %v1814_v59, 0.0 }
 0x197   : > { %669 = vst [vmem:[%s3515_s20] sm:$0x1] %v668_v63  ;;  %2236 = vst [vmem:[%s3515_s20 + $0x1] sm:$0x1] %v1122_v0 }
 0x198   : > { %v1536_v6 = vadd.f32 %v1535_v2, %v1500_v4  ;;  %v1991_v7 = vadd.f32 %v1990_v3, %v1955_v5 }
 0x199   : > { %v1363_v8 = vpop.f32.mrb[84].mxu0  ;;  %v1818_v9 = vpop.f32.mrb[84].mxu1 }
 0x19a   : > { %v1364_v10 = vadd.f32 %v3338_v60, %v1363_v8  ;;  %v1819_v11 = vadd.f32 %v3338_v60, %v1818_v9  ;;  %v2673_v12 = vpop.f32.mrb[85].mxu0  ;;  %v2757_v13 = vpop.f32.mrb[85].mxu1 }
 0x19b   : > { %v1366_v14 = vpop.f32.mrb[86].mxu0  ;;  %v1821_v15 = vpop.f32.mrb[86].mxu1 }
 0x19c   : > { %v1501_v16 = vmax.f32 %v1364_v10, 0.0  ;;  %v1956_v17 = vmax.f32 %v1819_v11, 0.0  ;;  %v1367_v18 = vadd.f32 %v3338_v60, %v1366_v14  ;;  %v1822_v19 = vadd.f32 %v3338_v60, %v1821_v15  ;;  %v2674_v20 = vpop.f32.mrb[87].mxu0  ;;  %v2758_v21 = vpop.f32.mrb[87].mxu1 }
 0x19e   : > { %v1537_v22 = vadd.f32 %v1536_v6, %v1501_v16  ;;  %v1992_v23 = vadd.f32 %v1991_v7, %v1956_v17  ;;  %v1502_v24 = vmax.f32 %v1367_v18, 0.0  ;;  %v1957_v25 = vmax.f32 %v1822_v19, 0.0 }
 0x1a0   : > { %v1538_v26 = vadd.f32 %v1537_v22, %v1502_v24  ;;  %v1993_v27 = vadd.f32 %v1992_v23, %v1957_v25 }
 0x1a1   : > { %v1371_v28 = vpop.f32.mrb[88].mxu0  ;;  %v1826_v29 = vpop.f32.mrb[88].mxu1 }
 0x1a2   : > { %v1372_v31 = vadd.f32 %v3526_v30, %v1371_v28  ;;  %v1827_v32 = vadd.f32 %v3526_v30, %v1826_v29  ;;  %v2677_v60 = vpop.f32.mrb[89].mxu0  ;;  %v2761_v33 = vpop.f32.mrb[89].mxu1 }
 0x1a3   : > { %v1374_v34 = vpop.f32.mrb[90].mxu0  ;;  %v1829_v35 = vpop.f32.mrb[90].mxu1 }
 0x1a4   : > { %v1503_v36 = vmax.f32 %v1372_v31, 0.0  ;;  %v1958_v37 = vmax.f32 %v1827_v32, 0.0  ;;  %v1375_v38 = vadd.f32 %v3526_v30, %v1374_v34  ;;  %v1830_v39 = vadd.f32 %v3526_v30, %v1829_v35  ;;  %v2678_v40 = vpop.f32.mrb[91].mxu0  ;;  %v2762_v41 = vpop.f32.mrb[91].mxu1 }
 0x1a6   : > { %v1539_v42 = vadd.f32 %v1538_v26, %v1503_v36  ;;  %v1994_v1 = vadd.f32 %v1993_v27, %v1958_v37  ;;  %v1504_v43 = vmax.f32 %v1375_v38, 0.0  ;;  %v1959_v44 = vmax.f32 %v1830_v39, 0.0 }
 0x1a8   : > { %v1540_v45 = vadd.f32 %v1539_v42, %v1504_v43  ;;  %v1995_v46 = vadd.f32 %v1994_v1, %v1959_v44 }
 0x1a9   : > { %v1379_v47 = vpop.f32.mrb[92].mxu0  ;;  %v1834_v48 = vpop.f32.mrb[92].mxu1 }
 0x1aa   : > { %v1380_v49 = vadd.f32 %v3526_v30, %v1379_v47  ;;  %v1835_v50 = vadd.f32 %v3526_v30, %v1834_v48  ;;  %v2681_v51 = vpop.f32.mrb[93].mxu0  ;;  %v2765_v52 = vpop.f32.mrb[93].mxu1 }
 0x1ab   : > { %v1382_v53 = vpop.f32.mrb[94].mxu0  ;;  %v1837_v54 = vpop.f32.mrb[94].mxu1 }
 0x1ac   : > { %v1505_v55 = vmax.f32 %v1380_v49, 0.0  ;;  %v1960_v56 = vmax.f32 %v1835_v50, 0.0  ;;  %v1383_v57 = vadd.f32 %v3526_v30, %v1382_v53  ;;  %v1838_v58 = vadd.f32 %v3526_v30, %v1837_v54  ;;  %v2682_v59 = vpop.f32.mrb[95].mxu0  ;;  %v2766_v61 = vpop.f32.mrb[95].mxu1 }
 0x1ae   : > { %v1541_v62 = vadd.f32 %v1540_v45, %v1505_v55  ;;  %v1996_v63 = vadd.f32 %v1995_v46, %v1960_v56  ;;  %v1506_v0 = vmax.f32 %v1383_v57, 0.0  ;;  %v1961_v2 = vmax.f32 %v1838_v58, 0.0 }
 0x1b0   : > { %v1542_v3 = vadd.f32 %v1541_v62, %v1506_v0  ;;  %v1997_v4 = vadd.f32 %v1996_v63, %v1961_v2 }
 0x1b1   : > { %v1387_v5 = vpop.f32.mrb[96].mxu0  ;;  %v1842_v6 = vpop.f32.mrb[96].mxu1 }
 0x1b2   : > { %v1388_v7 = vadd.f32 %v3526_v30, %v1387_v5  ;;  %v1843_v8 = vadd.f32 %v3526_v30, %v1842_v6  ;;  %v2685_v9 = vpop.f32.mrb[97].mxu0  ;;  %v2769_v10 = vpop.f32.mrb[97].mxu1 }
 0x1b3   : > { %v1390_v11 = vpop.f32.mrb[98].mxu0  ;;  %v1845_v12 = vpop.f32.mrb[98].mxu1 }
 0x1b4   : > { %v1507_v13 = vmax.f32 %v1388_v7, 0.0  ;;  %v1962_v14 = vmax.f32 %v1843_v8, 0.0  ;;  %v1391_v15 = vadd.f32 %v3526_v30, %v1390_v11  ;;  %v1846_v16 = vadd.f32 %v3526_v30, %v1845_v12  ;;  %v2686_v17 = vpop.f32.mrb[99].mxu0  ;;  %v2770_v18 = vpop.f32.mrb[99].mxu1 }
 0x1b6   : > { %v1543_v19 = vadd.f32 %v1542_v3, %v1507_v13  ;;  %v1998_v20 = vadd.f32 %v1997_v4, %v1962_v14  ;;  %v1508_v21 = vmax.f32 %v1391_v15, 0.0  ;;  %v1963_v22 = vmax.f32 %v1846_v16, 0.0 }
 0x1b8   : > { %v1544_v23 = vadd.f32 %v1543_v19, %v1508_v21  ;;  %v1999_v24 = vadd.f32 %v1998_v20, %v1963_v22 }
 0x1b9   : > { %v1395_v25 = vpop.f32.mrb[100].mxu0  ;;  %v1850_v26 = vpop.f32.mrb[100].mxu1 }
 0x1ba   : > { %v1396_v27 = vadd.f32 %v3526_v30, %v1395_v25  ;;  %v1851_v28 = vadd.f32 %v3526_v30, %v1850_v26  ;;  %v2689_v29 = vpop.f32.mrb[101].mxu0  ;;  %v2773_v31 = vpop.f32.mrb[101].mxu1 }
 0x1bb   : > { %v1398_v32 = vpop.f32.mrb[102].mxu0  ;;  %v1853_v60 = vpop.f32.mrb[102].mxu1 }
 0x1bc   : > { %v1509_v33 = vmax.f32 %v1396_v27, 0.0  ;;  %v1964_v34 = vmax.f32 %v1851_v28, 0.0  ;;  %v1399_v35 = vadd.f32 %v3526_v30, %v1398_v32  ;;  %v1854_v36 = vadd.f32 %v3526_v30, %v1853_v60  ;;  %v2690_v37 = vpop.f32.mrb[103].mxu0  ;;  %v2774_v38 = vpop.f32.mrb[103].mxu1 }
 0x1be   : > { %v1545_v39 = vadd.f32 %v1544_v23, %v1509_v33  ;;  %v2000_v40 = vadd.f32 %v1999_v24, %v1964_v34  ;;  %v1510_v41 = vmax.f32 %v1399_v35, 0.0  ;;  %v1965_v42 = vmax.f32 %v1854_v36, 0.0 }
 0x1c0   : > { %v1546_v1 = vadd.f32 %v1545_v39, %v1510_v41  ;;  %v2001_v43 = vadd.f32 %v2000_v40, %v1965_v42 }
 0x1c1   : > { %v1403_v44 = vpop.f32.mrb[104].mxu0  ;;  %v1858_v45 = vpop.f32.mrb[104].mxu1 }
 0x1c2   : > { %v1404_v46 = vadd.f32 %v3526_v30, %v1403_v44  ;;  %v1859_v47 = vadd.f32 %v3526_v30, %v1858_v45  ;;  %v2693_v48 = vpop.f32.mrb[105].mxu0  ;;  %v2777_v49 = vpop.f32.mrb[105].mxu1 }
 0x1c3   : > { %v1406_v50 = vpop.f32.mrb[106].mxu0  ;;  %v1861_v51 = vpop.f32.mrb[106].mxu1 }
 0x1c4   : > { %v1511_v52 = vmax.f32 %v1404_v46, 0.0  ;;  %v1966_v53 = vmax.f32 %v1859_v47, 0.0  ;;  %v1407_v54 = vadd.f32 %v3526_v30, %v1406_v50  ;;  %v1862_v55 = vadd.f32 %v3526_v30, %v1861_v51  ;;  %v2694_v56 = vpop.f32.mrb[107].mxu0  ;;  %v2778_v57 = vpop.f32.mrb[107].mxu1 }
 0x1c6   : > { %v1547_v58 = vadd.f32 %v1546_v1, %v1511_v52  ;;  %v2002_v59 = vadd.f32 %v2001_v43, %v1966_v53  ;;  %v1512_v61 = vmax.f32 %v1407_v54, 0.0  ;;  %v1967_v62 = vmax.f32 %v1862_v55, 0.0 }
 0x1c8   : > { %v1548_v63 = vadd.f32 %v1547_v58, %v1512_v61  ;;  %v2003_v0 = vadd.f32 %v2002_v59, %v1967_v62 }
 0x1c9   : > { %v1411_v2 = vpop.f32.mrb[108].mxu0  ;;  %v1866_v3 = vpop.f32.mrb[108].mxu1 }
 0x1ca   : > { %v1412_v4 = vadd.f32 %v3526_v30, %v1411_v2  ;;  %v1867_v5 = vadd.f32 %v3526_v30, %v1866_v3  ;;  %v2697_v6 = vpop.f32.mrb[109].mxu0  ;;  %v2781_v7 = vpop.f32.mrb[109].mxu1 }
 0x1cb   : > { %v1414_v8 = vpop.f32.mrb[110].mxu0  ;;  %v1869_v9 = vpop.f32.mrb[110].mxu1 }
 0x1cc   : > { %v1513_v10 = vmax.f32 %v1412_v4, 0.0  ;;  %v1968_v11 = vmax.f32 %v1867_v5, 0.0  ;;  %v1415_v12 = vadd.f32 %v3526_v30, %v1414_v8  ;;  %v1870_v13 = vadd.f32 %v3526_v30, %v1869_v9  ;;  %v2698_v14 = vpop.f32.mrb[111].mxu0  ;;  %v2782_v15 = vpop.f32.mrb[111].mxu1 }
 0x1ce   : > { %v1549_v16 = vadd.f32 %v1548_v63, %v1513_v10  ;;  %v2004_v17 = vadd.f32 %v2003_v0, %v1968_v11  ;;  %v1514_v18 = vmax.f32 %v1415_v12, 0.0  ;;  %v1969_v19 = vmax.f32 %v1870_v13, 0.0 }
 0x1d0   : > { %v1550_v20 = vadd.f32 %v1549_v16, %v1514_v18  ;;  %v2005_v21 = vadd.f32 %v2004_v17, %v1969_v19 }
 0x1d1   : > { %v1419_v22 = vpop.f32.mrb[112].mxu0  ;;  %v1874_v23 = vpop.f32.mrb[112].mxu1 }
 0x1d2   : > { %v1420_v24 = vadd.f32 %v3526_v30, %v1419_v22  ;;  %v1875_v25 = vadd.f32 %v3526_v30, %v1874_v23  ;;  %v2701_v26 = vpop.f32.mrb[113].mxu0  ;;  %v2785_v27 = vpop.f32.mrb[113].mxu1 }
 0x1d3   : > { %v1422_v28 = vpop.f32.mrb[114].mxu0  ;;  %v1877_v29 = vpop.f32.mrb[114].mxu1 }
 0x1d4   : > { %v1515_v31 = vmax.f32 %v1420_v24, 0.0  ;;  %v1970_v32 = vmax.f32 %v1875_v25, 0.0  ;;  %v1423_v60 = vadd.f32 %v3526_v30, %v1422_v28  ;;  %v1878_v33 = vadd.f32 %v3526_v30, %v1877_v29  ;;  %v2702_v34 = vpop.f32.mrb[115].mxu0  ;;  %v2786_v35 = vpop.f32.mrb[115].mxu1 }
 0x1d6   : > { %v1551_v36 = vadd.f32 %v1550_v20, %v1515_v31  ;;  %v2006_v37 = vadd.f32 %v2005_v21, %v1970_v32  ;;  %v1516_v38 = vmax.f32 %v1423_v60, 0.0  ;;  %v1971_v39 = vmax.f32 %v1878_v33, 0.0 }
 0x1d8   : > { %v1552_v40 = vadd.f32 %v1551_v36, %v1516_v38  ;;  %v2007_v41 = vadd.f32 %v2006_v37, %v1971_v39 }
 0x1d9   : > { %v1427_v42 = vpop.f32.mrb[116].mxu0  ;;  %v1882_v1 = vpop.f32.mrb[116].mxu1 }
 0x1da   : > { %v1428_v43 = vadd.f32 %v3526_v30, %v1427_v42  ;;  %v1883_v44 = vadd.f32 %v3526_v30, %v1882_v1  ;;  %v2705_v45 = vpop.f32.mrb[117].mxu0  ;;  %v2789_v46 = vpop.f32.mrb[117].mxu1 }
 0x1db   : > { %v1430_v47 = vpop.f32.mrb[118].mxu0  ;;  %v1885_v48 = vpop.f32.mrb[118].mxu1 }
 0x1dc   : > { %v1517_v49 = vmax.f32 %v1428_v43, 0.0  ;;  %v1972_v50 = vmax.f32 %v1883_v44, 0.0  ;;  %v1431_v51 = vadd.f32 %v3526_v30, %v1430_v47  ;;  %v1886_v52 = vadd.f32 %v3526_v30, %v1885_v48  ;;  %v2706_v53 = vpop.f32.mrb[119].mxu0  ;;  %v2790_v54 = vpop.f32.mrb[119].mxu1 }
 0x1de   : > { %v1553_v55 = vadd.f32 %v1552_v40, %v1517_v49  ;;  %v2008_v56 = vadd.f32 %v2007_v41, %v1972_v50  ;;  %v1518_v57 = vmax.f32 %v1431_v51, 0.0  ;;  %v1973_v58 = vmax.f32 %v1886_v52, 0.0 }
 0x1e0   : > { %v1554_v59 = vadd.f32 %v1553_v55, %v1518_v57  ;;  %v2009_v61 = vadd.f32 %v2008_v56, %v1973_v58 }
 0x1e1   : > { %v1435_v62 = vpop.f32.mrb[120].mxu0  ;;  %v1890_v63 = vpop.f32.mrb[120].mxu1 }
 0x1e2   : > { %v1436_v0 = vadd.f32 %v3526_v30, %v1435_v62  ;;  %v1891_v2 = vadd.f32 %v3526_v30, %v1890_v63  ;;  %v2709_v3 = vpop.f32.mrb[121].mxu0  ;;  %v2793_v4 = vpop.f32.mrb[121].mxu1 }
 0x1e3   : > { %v1438_v5 = vpop.f32.mrb[122].mxu0  ;;  %v1893_v6 = vpop.f32.mrb[122].mxu1 }
 0x1e4   : > { %v1519_v7 = vmax.f32 %v1436_v0, 0.0  ;;  %v1974_v8 = vmax.f32 %v1891_v2, 0.0  ;;  %v1439_v9 = vadd.f32 %v3526_v30, %v1438_v5  ;;  %v1894_v10 = vadd.f32 %v3526_v30, %v1893_v6  ;;  %v2710_v11 = vpop.f32.mrb[123].mxu0  ;;  %v2794_v12 = vpop.f32.mrb[123].mxu1 }
 0x1e6   : > { %v1555_v13 = vadd.f32 %v1554_v59, %v1519_v7  ;;  %v2010_v14 = vadd.f32 %v2009_v61, %v1974_v8  ;;  %v1520_v15 = vmax.f32 %v1439_v9, 0.0  ;;  %v1975_v16 = vmax.f32 %v1894_v10, 0.0 }
 0x1e8   : > { %v1556_v17 = vadd.f32 %v1555_v13, %v1520_v15  ;;  %v2011_v18 = vadd.f32 %v2010_v14, %v1975_v16 }
 0x1e9   : > { %v1443_v19 = vpop.f32.mrb[124].mxu0  ;;  %v1898_v20 = vpop.f32.mrb[124].mxu1 }
 0x1ea   : > { %v1444_v21 = vadd.f32 %v3526_v30, %v1443_v19  ;;  %v1899_v22 = vadd.f32 %v3526_v30, %v1898_v20  ;;  %v2713_v23 = vpop.f32.mrb[125].mxu0  ;;  %v2797_v24 = vpop.f32.mrb[125].mxu1 }
 0x1eb   : > { %v1446_v25 = vpop.f32.mrb[126].mxu0  ;;  %v1901_v26 = vpop.f32.mrb[126].mxu1 }
 0x1ec   : > { %v1521_v27 = vmax.f32 %v1444_v21, 0.0  ;;  %v1976_v28 = vmax.f32 %v1899_v22, 0.0  ;;  %v1447_v29 = vadd.f32 %v3526_v30, %v1446_v25  ;;  %v1902_v31 = vadd.f32 %v3526_v30, %v1901_v26  ;;  %v2714_v32 = vpop.f32.mrb[127].mxu0  ;;  %v2798_v60 = vpop.f32.mrb[127].mxu1 }
 0x1ee   : > { %v1557_v33 = vadd.f32 %v1556_v17, %v1521_v27  ;;  %v2012_v34 = vadd.f32 %v2011_v18, %v1976_v28  ;;  %v1522_v35 = vmax.f32 %v1447_v29, 0.0  ;;  %v1977_v36 = vmax.f32 %v1902_v31, 0.0 }
 0x1f0   : > { %v1558_v37 = vadd.f32 %v1557_v33, %v1522_v35  ;;  %v2013_v38 = vadd.f32 %v2012_v34, %v1977_v36 }
 0x1f1   : > { %v1451_v39 = vpop.f32.mrb[128].mxu0  ;;  %v1906_v40 = vpop.f32.mrb[128].mxu1 }
 0x1f2   : > { %v1452_v41 = vadd.f32 %v3526_v30, %v1451_v39  ;;  %v1907_v42 = vadd.f32 %v3526_v30, %v1906_v40  ;;  %v2717_v1 = vpop.f32.mrb[129].mxu0  ;;  %v2801_v43 = vpop.f32.mrb[129].mxu1 }
 0x1f3   : > { %v1454_v44 = vpop.f32.mrb[130].mxu0  ;;  %v1909_v45 = vpop.f32.mrb[130].mxu1 }
 0x1f4   : > { %v1523_v46 = vmax.f32 %v1452_v41, 0.0  ;;  %v1978_v47 = vmax.f32 %v1907_v42, 0.0  ;;  %v1455_v48 = vadd.f32 %v3526_v30, %v1454_v44  ;;  %v1910_v49 = vadd.f32 %v3526_v30, %v1909_v45  ;;  %v2718_v50 = vpop.f32.mrb[131].mxu0  ;;  %v2802_v51 = vpop.f32.mrb[131].mxu1 }
 0x1f6   : > { %v1559_v52 = vadd.f32 %v1558_v37, %v1523_v46  ;;  %v2014_v53 = vadd.f32 %v2013_v38, %v1978_v47  ;;  %v1524_v54 = vmax.f32 %v1455_v48, 0.0  ;;  %v1979_v55 = vmax.f32 %v1910_v49, 0.0 }
 0x1f8   : > { %v1560_v56 = vadd.f32 %v1559_v52, %v1524_v54  ;;  %v2015_v57 = vadd.f32 %v2014_v53, %v1979_v55 }
 0x1f9   : > { %v1459_v58 = vpop.f32.mrb[132].mxu0  ;;  %v1914_v59 = vpop.f32.mrb[132].mxu1 }
 0x1fa   : > { %v1460_v61 = vadd.f32 %v3526_v30, %v1459_v58  ;;  %v1915_v62 = vadd.f32 %v3526_v30, %v1914_v59  ;;  %v2721_v63 = vpop.f32.mrb[133].mxu0  ;;  %v2805_v0 = vpop.f32.mrb[133].mxu1 }
 0x1fb   : > { %v1462_v2 = vpop.f32.mrb[134].mxu0  ;;  %v1917_v3 = vpop.f32.mrb[134].mxu1 }
 0x1fc   : > { %v1525_v4 = vmax.f32 %v1460_v61, 0.0  ;;  %v1980_v5 = vmax.f32 %v1915_v62, 0.0  ;;  %v1463_v6 = vadd.f32 %v3526_v30, %v1462_v2  ;;  %v1918_v7 = vadd.f32 %v3526_v30, %v1917_v3  ;;  %v2722_v8 = vpop.f32.mrb[135].mxu0  ;;  %v2806_v9 = vpop.f32.mrb[135].mxu1 }
 0x1fe   : > { %v1561_v10 = vadd.f32 %v1560_v56, %v1525_v4  ;;  %v2016_v11 = vadd.f32 %v2015_v57, %v1980_v5  ;;  %v1526_v12 = vmax.f32 %v1463_v6, 0.0  ;;  %v1981_v13 = vmax.f32 %v1918_v7, 0.0 }
 0x200   : > { %v1562_v14 = vadd.f32 %v1561_v10, %v1526_v12  ;;  %v2017_v15 = vadd.f32 %v2016_v11, %v1981_v13 }
 0x201   : > { %v1467_v16 = vpop.f32.mrb[136].mxu0  ;;  %v1922_v17 = vpop.f32.mrb[136].mxu1 }
 0x202   : > { %v1468_v18 = vadd.f32 %v3526_v30, %v1467_v16  ;;  %v1923_v19 = vadd.f32 %v3526_v30, %v1922_v17  ;;  %v2725_v20 = vpop.f32.mrb[137].mxu0  ;;  %v2809_v21 = vpop.f32.mrb[137].mxu1 }
 0x203   : > { %v1470_v22 = vpop.f32.mrb[138].mxu0  ;;  %v1925_v23 = vpop.f32.mrb[138].mxu1 }
 0x204   : > { %v1527_v24 = vmax.f32 %v1468_v18, 0.0  ;;  %v1982_v25 = vmax.f32 %v1923_v19, 0.0  ;;  %v1471_v26 = vadd.f32 %v3526_v30, %v1470_v22  ;;  %v1926_v27 = vadd.f32 %v3526_v30, %v1925_v23  ;;  %v2726_v28 = vpop.f32.mrb[139].mxu0  ;;  %v2810_v29 = vpop.f32.mrb[139].mxu1 }
 0x206   : > { %v1563_v31 = vadd.f32 %v1562_v14, %v1527_v24  ;;  %v2018_v32 = vadd.f32 %v2017_v15, %v1982_v25  ;;  %v1528_v60 = vmax.f32 %v1471_v26, 0.0  ;;  %v1983_v33 = vmax.f32 %v1926_v27, 0.0 }
 0x208   : > { %v1564_v34 = vadd.f32 %v1563_v31, %v1528_v60  ;;  %v2019_v35 = vadd.f32 %v2018_v32, %v1983_v33 }
 0x209   : > { %v1475_v36 = vpop.f32.mrb[140].mxu0  ;;  %v1930_v37 = vpop.f32.mrb[140].mxu1 }
 0x20a   : > { %v1476_v38 = vadd.f32 %v3526_v30, %v1475_v36  ;;  %v1931_v39 = vadd.f32 %v3526_v30, %v1930_v37  ;;  %v2729_v40 = vpop.f32.mrb[141].mxu0  ;;  %v2813_v41 = vpop.f32.mrb[141].mxu1 }
 0x20b   : > { %v1478_v42 = vpop.f32.mrb[142].mxu0  ;;  %v1933_v1 = vpop.f32.mrb[142].mxu1 }
 0x20c   : > { %v1529_v43 = vmax.f32 %v1476_v38, 0.0  ;;  %v1984_v44 = vmax.f32 %v1931_v39, 0.0  ;;  %v1479_v45 = vadd.f32 %v3526_v30, %v1478_v42  ;;  %v1934_v46 = vadd.f32 %v3526_v30, %v1933_v1  ;;  %v2730_v47 = vpop.f32.mrb[143].mxu0  ;;  %v2814_v48 = vpop.f32.mrb[143].mxu1 }
 0x20e   : > { %v1565_v49 = vadd.f32 %v1564_v34, %v1529_v43  ;;  %v2020_v50 = vadd.f32 %v2019_v35, %v1984_v44  ;;  %v1530_v51 = vmax.f32 %v1479_v45, 0.0  ;;  %v1985_v52 = vmax.f32 %v1934_v46, 0.0 }
 0x210   : > { %v1566_v53 = vadd.f32 %v1565_v49, %v1530_v51  ;;  %v2021_v54 = vadd.f32 %v2020_v50, %v1985_v52 }
 0x211   : > { %v1483_v55 = vpop.f32.mrb[144].mxu0  ;;  %v1938_v56 = vpop.f32.mrb[144].mxu1 }
 0x212   : > { %v1484_v57 = vadd.f32 %v3526_v30, %v1483_v55  ;;  %v1939_v58 = vadd.f32 %v3526_v30, %v1938_v56  ;;  %v2733_v59 = vpop.f32.mrb[145].mxu0  ;;  %v2817_v61 = vpop.f32.mrb[145].mxu1 }
 0x213   : > { %v1486_v62 = vpop.f32.mrb[146].mxu0  ;;  %v1941_v63 = vpop.f32.mrb[146].mxu1 }
 0x214   : > { %v1531_v0 = vmax.f32 %v1484_v57, 0.0  ;;  %v1986_v2 = vmax.f32 %v1939_v58, 0.0  ;;  %v1487_v3 = vadd.f32 %v3526_v30, %v1486_v62  ;;  %v1942_v4 = vadd.f32 %v3526_v30, %v1941_v63  ;;  %v2734_v5 = vpop.f32.mrb[147].mxu0  ;;  %v2818_v6 = vpop.f32.mrb[147].mxu1 }
 0x216   : > { %v1567_v7 = vadd.f32 %v1566_v53, %v1531_v0  ;;  %v2022_v8 = vadd.f32 %v2021_v54, %v1986_v2  ;;  %v1532_v9 = vmax.f32 %v1487_v3, 0.0  ;;  %v1987_v10 = vmax.f32 %v1942_v4, 0.0 }
 0x218   : > { %v1568_v11 = vadd.f32 %v1567_v7, %v1532_v9  ;;  %v2023_v12 = vadd.f32 %v2022_v8, %v1987_v10 }
 0x219   : > { %v1491_v13 = vpop.f32.mrb[148].mxu0  ;;  %v1946_v14 = vpop.f32.mrb[148].mxu1 }
 0x21a   : > { %v1492_v15 = vadd.f32 %v3526_v30, %v1491_v13  ;;  %v1947_v16 = vadd.f32 %v3526_v30, %v1946_v14  ;;  %v2737_v17 = vpop.f32.mrb[149].mxu0  ;;  %v2821_v18 = vpop.f32.mrb[149].mxu1 }
 0x21b   : > { %v1494_v19 = vpop.f32.mrb[150].mxu0  ;;  %v1949_v20 = vpop.f32.mrb[150].mxu1 }
 0x21c   : > { %v1533_v21 = vmax.f32 %v1492_v15, 0.0  ;;  %v1988_v22 = vmax.f32 %v1947_v16, 0.0  ;;  %v2738_v23 = vpop.f32.mrb[151].mxu0  ;;  %v2822_v24 = vpop.f32.mrb[151].mxu1 }
 0x21e   : > { %v1569_v25 = vsel %vm659_vm3, %v1533_v21, 0.0  ;;  %v2024_v26 = vsel %vm659_vm3, %v1988_v22, 0.0 }
 0x21f   : > { %v1570_v27 = vadd.f32 %v1569_v25, %v1568_v11  ;;  %v2025_v28 = vadd.f32 %v2024_v26, %v2023_v12 }
 0x221   : > { %v1571_v29 = vrot.slane %v1570_v27, 4  ;;  %v2026_v31 = vrot.slane %v2025_v28, 4 }
 0x223   : > { %v1572_v32 = vadd.f32 %v1571_v29, %v1570_v27  ;;  %v2027_v30 = vadd.f32 %v2026_v31, %v2025_v28 }
 0x225   : > { %v1573_v60 = vrot.slane %v1572_v32, 2  ;;  %v2028_v33 = vrot.slane %v2027_v30, 2 }
 0x227   : > { %v1574_v34 = vadd.f32 %v1573_v60, %v1572_v32  ;;  %v2029_v35 = vadd.f32 %v2028_v33, %v2027_v30 }
 0x229   : > { %v1575_v36 = vrot.slane %v1574_v34, 1  ;;  %v2030_v37 = vrot.slane %v2029_v35, 1 }
 0x22b   : > { %v1576_v38 = vadd.f32 %v1575_v36, %v1574_v34  ;;  %v2031_v39 = vadd.f32 %v2030_v37, %v2029_v35 }
 0x22d   : > { %v1577_v40 = vmul.f32 0.0034013605, %v1576_v38  ;;  %v2032_v41 = vmul.f32 0.0034013605, %v2031_v39 }
 0x22f   : > { %2312 = vst [vmem:[%s3515_s20 + $0x2] sm:$0x1] %v1577_v40  ;;  %2388 = vst [vmem:[%s3515_s20 + $0x3] sm:$0x1] %v2032_v41 }
 0x230   : > { %2961 = shalt.err (!%p2958_p3)
}
 0x231   : > { %s2962_s8 = scalar_lea.hbm %s3597_s30, 64  ;;  %s2966_s11 = scalar_lea.hbm %s3649_s3, 128 }
 0x232   : > { %p2963_p4 = scmp.ne.s32.totalorder %s3597_s30, %s2962_s8  ;;  %p2967_p9 = scmp.lt.u32.totalorder %s3597_s30, %s3649_s3 }
 0x233   : > { %p2968_p10 = scmp.lt.u32.totalorder %s2966_s11, %s2962_s8  ;;  %p2970_p12 = scmp.lt.u32.totalorder %s2962_s8, %s3597_s30 }
 0x234   : > { %p2964_p7 = pnand %p2963_p4, %p3075_p5 }
 0x235   : > { %p2969_p11 = por %p2968_p10, %p2967_p9 }
 0x236   : > { %p2965_p8 = pneg %p2964_p7 }
 0x237   : > { %p2971_p13 = por %p2970_p12, %p2969_p11 }
 0x239   : > { %p2972_p0 = pnand %p2971_p13, %p2965_p8 }
 0x23b   : > { %2975 = shalt.err (!%p2972_p0)
}
 0x23c   : > { %s3015_s20 = smov 16   ;;  %s3016_s24 = smov 1  }
 0x23d   : > { %2824 = dma.vmem_to_hbm [thread:$0]  (%p3075_p5), %s3599_s27, 64, %s3597_s30, %s3605_s4, %s3015_s20, %s3015_s20, %s3016_s24  }
 0x23e PF: > { %p2830_p1 = scmp.ge.s32.totalorder %s3010_s15, 2  ;;  %s2064_s25 = sand.u32 1, %s2998_s12  }
 0x23f   : > { %s2065_s26 = scalar_lea.sflag [#allocation3], %s2064_s25 }
 0x240   : > { %p2827_p2 = pnand %p2830_p1, %p3079_p6 }
 0x242   : > { %2993 = dma.done.wait (!%p2827_p2), %s2065_s26, 64  }
 0x243   : > { %2995 = vsyncadd (!%p2827_p2), %s2065_s26, 4294967232  ;;  %p13_p3 = scmp.ge.s32.totalorder %s3062_s18, 4   ;;  %s3652_s12 = smov %s3002_s13 }
 0x244   : > { %s3653_s13 = smov %s3006_s14  ;;  %s3654_s14 = smov %s3073_s21 }
 0x245   : > { %s3655_s15 = smov %s3062_s18  ;;  %15 = sbr.rel (!%p13_p3) target bundleno = 3 (0x3), region = 73 }
 0x24c   :  { %2070 = vsyncpa [#allocation3], 1 }
 0x24d   :  { %2072 = vsyncpa [#allocation3 + $0x1], 1 }

</bundles_post_ra>
